<compile_context>
chip_gen: v7x
topology: tpu7x:2x2x1
jax: 0.10.0
libtpu: 0.0.40
codegen_flags: <defaults>
</compile_context>

<pallas_src>
import functools

import jax
import jax.numpy as jnp
from jax import lax
from jax.experimental import pallas as pl
from jax.experimental.pallas import tpu as pltpu

TARGET_CODEBOOK_SIZE = 1024


def _ce_kernel(logits_ref, tgt_ref, out_ref, *,
               seq_len: int, tile_l: int, need_mask: bool):
    """Per-(batch, L-tile) cross-entropy partial sums.

    logits_ref: (1, C, tile_l)     logits; classes on sublanes, positions on lanes
    tgt_ref:    (1, 1, tile_l)     int32 target class per position
    out_ref:    (1, 1, 1, tile_l)  f32 per-lane CE for this (batch, L-tile)
    """
    li = pl.program_id(1)

    x = logits_ref[0]                                    # (C, tile_l), native dtype
    tgt = tgt_ref[0]                                     # (1, tile_l) int32
    c = x.shape[0]

    # max & shift in the native dtype (bf16 inputs stay 2-per-vreg on the VPU)
    m = jnp.max(x, axis=0, keepdims=True)                # (1, tile_l)
    shifted = x - m                                      # (C, tile_l)

    # exp + class-axis sum accumulate in f32 (EUP exp, accurate accumulation)
    sum_exp = jnp.sum(jnp.exp(shifted.astype(jnp.float32)),
                      axis=0, keepdims=True)             # (1, tile_l) f32

    # target-logit pick via a (C, 1) sublane iota broadcast-compared against
    # the target row; exactly one nonzero per lane so the sum is exact.
    cls_col = lax.broadcasted_iota(jnp.int32, (c, 1), 0)       # (C, 1)
    tgt_shifted = jnp.sum(
        jnp.where(cls_col == tgt, shifted, jnp.zeros((), shifted.dtype)),
        axis=0, keepdims=True).astype(jnp.float32)              # (1, tile_l)

    # (lse + m) - (tgt_logit + m) == log(sum_exp) - tgt_shifted : m cancels.
    loss = jnp.log(sum_exp) - tgt_shifted                        # (1, tile_l) f32

    if need_mask:
        last = pl.num_programs(1) - 1

        @pl.when(li == last)  # only the ragged tail pays for the lane mask
        def _():
            col = lax.broadcasted_iota(jnp.int32, (1, tile_l), 1) + li * tile_l
            out_ref[0, 0] = jnp.where(col < seq_len, loss, 0.0)

        @pl.when(li != last)
        def _():
            out_ref[0, 0] = loss
    else:
        out_ref[0, 0] = loss


@functools.lru_cache(maxsize=1)
def _default_tiling():
    """(max_tile_l, vmem_limit_bytes) chosen from the chip's physical VMEM."""
    vmem = 64 * 1024 * 1024  # conservative default if the query fails
    try:
        info = pltpu.get_tpu_info()
        for attr in ("vmem_capacity_bytes", "vmem_size_bytes", "vmem_bytes"):
            v = getattr(info, attr, None)
            if v:
                vmem = int(v)
                break
    except Exception:
        pass
    if vmem >= 128 * 1024 * 1024:        # v4 / v5e / v6e: 128 MiB physical VMEM
        return 2048, 64 * 1024 * 1024
    if vmem >= 64 * 1024 * 1024:         # v7x: 64 MiB physical per TensorCore
        return 1024, 48 * 1024 * 1024
    return 512, 16 * 1024 * 1024         # old / unknown chips: stay small


@functools.partial(jax.jit, static_argnames=("max_tile_l", "vmem_limit_bytes"))
def _cross_entropy_mean(logits_bcl: jax.Array, targets_bl: jax.Array,
                        max_tile_l: int = 1024,
                        vmem_limit_bytes: int = 48 * 1024 * 1024) -> jax.Array:
    """Mean cross-entropy; logits_bcl: (B, C, L), targets_bl: (B, L) ints."""
    b, c, seq_len = logits_bcl.shape
    tile_l = seq_len if seq_len <= max_tile_l else max_tile_l
    num_l_tiles = pl.cdiv(seq_len, tile_l)
    need_mask = (num_l_tiles * tile_l) != seq_len

    targets = targets_bl.reshape(b, 1, seq_len).astype(jnp.int32)

    n = b * seq_len
    bytes_accessed = (logits_bcl.size * logits_bcl.dtype.itemsize
                      + targets.size * 4
                      + b * num_l_tiles * tile_l * 4)
    cost = pl.CostEstimate(flops=6 * n * c,
                           transcendentals=n * c,
                           bytes_accessed=bytes_accessed)

    kernel = functools.partial(_ce_kernel, seq_len=seq_len, tile_l=tile_l,
                               need_mask=need_mask)

    partials = pl.pallas_call(
        kernel,
        out_shape=jax.ShapeDtypeStruct((b, num_l_tiles, 1, tile_l), jnp.float32),
        grid_spec=pltpu.PrefetchScalarGridSpec(
            num_scalar_prefetch=0,
            grid=(b, num_l_tiles),
            in_specs=[
                pl.BlockSpec((1, c, tile_l), lambda bi, li: (bi, 0, li)),
                pl.BlockSpec((1, 1, tile_l), lambda bi, li: (bi, 0, li)),
            ],
            out_specs=pl.BlockSpec((1, 1, 1, tile_l),
                                   lambda bi, li: (bi, li, 0, 0)),
        ),
        compiler_params=pltpu.CompilerParams(
            dimension_semantics=("parallel", "parallel"),
            vmem_limit_bytes=vmem_limit_bytes,
        ),
        cost_estimate=cost,
    )(logits_bcl, targets)

    return jnp.sum(partials) / jnp.float32(n)


class ReconstructionLossStage1:
    """JAX/Pallas port of ReconstructionLoss_Stage1 (forward)."""

    def __init__(self, quantizer_weight: float = 1.0):
        self.quantizer_weight = quantizer_weight
        self.target_codebook_size = TARGET_CODEBOOK_SIZE

    def __call__(self, target_codes, reconstructions, quantizer_loss):
        # reconstructions: (B, 1024, L) logits (matches torch .view(B, 1024, -1))
        # target_codes:    (B, L) int class indices (matches .view(B, -1))
        b = reconstructions.shape[0]
        logits_bcl = reconstructions.reshape(b, self.target_codebook_size, -1)
        targets_bl = target_codes.reshape(b, -1)

        max_tile_l, vmem_limit = _default_tiling()
        reconstruction_loss = _cross_entropy_mean(
            logits_bcl, targets_bl,
            max_tile_l=max_tile_l, vmem_limit_bytes=vmem_limit)

        q_term = self.quantizer_weight * quantizer_loss["quantizer_loss"]
        total_loss = reconstruction_loss + q_term

        loss_dict = dict(
            total_loss=jax.lax.stop_gradient(total_loss),
            reconstruction_loss=jax.lax.stop_gradient(reconstruction_loss),
            quantizer_loss=jax.lax.stop_gradient(q_term),
            commitment_loss=jax.lax.stop_gradient(
                quantizer_loss["commitment_loss"]),
            codebook_loss=jax.lax.stop_gradient(
                quantizer_loss["codebook_loss"]),
        )
        return total_loss, loss_dict


def _reference_ce(logits_bcl, targets_bl):
    """Pure-JAX reference for CrossEntropyLoss(reduction='mean') on (B,C,L)."""
    lse = jax.scipy.special.logsumexp(logits_bcl, axis=1)               # (B, L)
    tgt = jnp.take_along_axis(logits_bcl, targets_bl[:, None, :], axis=1)[:, 0, :]
    return jnp.mean(lse - tgt)


if __name__ == "__main__":
    key = jax.random.PRNGKey(0)
    k1, k2, k3, k4, k5, k6 = jax.random.split(key, 6)

    # ---- primary small-shape check (L smaller than a lane tile) ----
    B, L = 2, 8
    reconstructions = jax.random.normal(
        k1, (B, TARGET_CODEBOOK_SIZE, L), dtype=jnp.float32)
    target_codes = jax.random.randint(
        k2, (B, L), 0, TARGET_CODEBOOK_SIZE, dtype=jnp.int32)
    q_losses = {
        "quantizer_loss": jnp.float32(0.25),
        "commitment_loss": jnp.float32(0.10),
        "codebook_loss": jnp.float32(0.15),
    }

    loss_mod = ReconstructionLossStage1(quantizer_weight=1.0)
    total_loss, loss_dict = loss_mod(target_codes, reconstructions, q_losses)
    total_loss = jax.block_until_ready(total_loss)

    ref_recon = _reference_ce(reconstructions, target_codes)
    ref_total = ref_recon + 1.0 * q_losses["quantizer_loss"]
    assert jnp.allclose(total_loss, ref_total, atol=1e-4, rtol=1e-4), (
        total_loss, ref_total)

    # ---- ragged-tail / multi-tile check (L not a multiple of the tile) ----
    B2, L2 = 2, 200
    recon2 = jax.random.normal(
        k3, (B2, TARGET_CODEBOOK_SIZE, L2), dtype=jnp.float32)
    codes2 = jax.random.randint(
        k4, (B2, L2), 0, TARGET_CODEBOOK_SIZE, dtype=jnp.int32)
    ce2 = jax.block_until_ready(
        _cross_entropy_mean(recon2, codes2, max_tile_l=128))
    ref2 = _reference_ce(recon2, codes2)
    assert jnp.allclose(ce2, ref2, atol=1e-4, rtol=1e-4), (ce2, ref2)

    # ---- bf16 logits path (native-dtype max/shift/select, f32 accumulate) ----
    B3, L3 = 2, 256
    recon3_f32 = jax.random.normal(
        k5, (B3, TARGET_CODEBOOK_SIZE, L3), dtype=jnp.float32)
    recon3_bf16 = recon3_f32.astype(jnp.bfloat16)
    codes3 = jax.random.randint(
        k6, (B3, L3), 0, TARGET_CODEBOOK_SIZE, dtype=jnp.int32)
    ce3 = jax.block_until_ready(
        _cross_entropy_mean(recon3_bf16, codes3, max_tile_l=128))
    ref3 = _reference_ce(recon3_bf16.astype(jnp.float32), codes3)
    assert jnp.allclose(ce3, ref3, atol=5e-2, rtol=5e-2), (ce3, ref3)

    print("KERNEL_OK")
</pallas_src>

<mosaic_0001>
module attributes {stable_mosaic.version = 11 : i64} {
  func.func @_ce_kernel(%arg0: i32, %arg1: i32, %arg2: memref<1x1024x8xf32, #tpu.memory_space<vmem>>, %arg3: memref<1x1x8xi32, #tpu.memory_space<vmem>>, %arg4: memref<1x1x1x8xf32, #tpu.memory_space<vmem>>) attributes {dimension_semantics = [#tpu.dimension_semantics<parallel>, #tpu.dimension_semantics<parallel>], iteration_bounds = array<i64: 2, 1>, scalar_prefetch = 0 : i64, scratch_operands = 0 : i64, tpu.core_type = #tpu.core_type<tc>, window_params = [{transform_indices = @transform_0, window_bounds = array<i64: 1, 1024, 8>}, {transform_indices = @transform_1, window_bounds = array<i64: 1, 1, 8>}, {transform_indices = @transform_2, window_bounds = array<i64: 1, 1, 1, 8>}]} {
    %c0 = arith.constant 0 : index
    %c0_0 = arith.constant 0 : index
    %c0_1 = arith.constant 0 : index
    %0 = vector.load %arg2[%c0, %c0_0, %c0_1] : memref<1x1024x8xf32, #tpu.memory_space<vmem>>, vector<1x1024x8xf32>
    %1 = vector.shape_cast %0 : vector<1x1024x8xf32> to vector<1024x8xf32>
    %c0_2 = arith.constant 0 : index
    %c0_3 = arith.constant 0 : index
    %c0_4 = arith.constant 0 : index
    %2 = vector.load %arg3[%c0_2, %c0_3, %c0_4] : memref<1x1x8xi32, #tpu.memory_space<vmem>>, vector<1x1x8xi32>
    %3 = vector.shape_cast %2 : vector<1x1x8xi32> to vector<1x8xi32>
    %cst = arith.constant dense<0xFF800000> : vector<8xf32>
    %4 = vector.multi_reduction <maximumf>, %1, %cst [0] : vector<1024x8xf32> to vector<8xf32>
    %5 = vector.shape_cast %4 : vector<8xf32> to vector<1x8xf32>
    %6 = vector.broadcast %5 : vector<1x8xf32> to vector<1024x8xf32>
    %7 = arith.subf %1, %6 : vector<1024x8xf32>
    %8 = math.exp %7 : vector<1024x8xf32>
    %cst_5 = arith.constant dense<0.000000e+00> : vector<8xf32>
    %9 = vector.multi_reduction <add>, %8, %cst_5 [0] : vector<1024x8xf32> to vector<8xf32>
    %10 = vector.shape_cast %9 : vector<8xf32> to vector<1x8xf32>
    %11 = tpu.iota {dimensions = array<i32: 0>} : vector<1024x1xi32>
    %12 = vector.broadcast %11 : vector<1024x1xi32> to vector<1024x8xi32>
    %13 = vector.broadcast %3 : vector<1x8xi32> to vector<1024x8xi32>
    %14 = arith.cmpi eq, %12, %13 : vector<1024x8xi32>
    %cst_6 = arith.constant 0.000000e+00 : f32
    %15 = vector.broadcast %cst_6 : f32 to vector<1024x8xf32>
    %16 = arith.select %14, %7, %15 : vector<1024x8xi1>, vector<1024x8xf32>
    %cst_7 = arith.constant dense<0.000000e+00> : vector<8xf32>
    %17 = vector.multi_reduction <add>, %16, %cst_7 [0] : vector<1024x8xf32> to vector<8xf32>
    %18 = vector.shape_cast %17 : vector<8xf32> to vector<1x8xf32>
    %19 = math.log %10 : vector<1x8xf32>
    %20 = arith.subf %19, %18 : vector<1x8xf32>
    %c0_8 = arith.constant 0 : index
    %c0_9 = arith.constant 0 : index
    %c0_10 = arith.constant 0 : index
    %c0_11 = arith.constant 0 : index
    %21 = vector.load %arg4[%c0_8, %c0_9, %c0_10, %c0_11] : memref<1x1x1x8xf32, #tpu.memory_space<vmem>>, vector<1x1x1x8xf32>
    %22 = vector.shape_cast %21 : vector<1x1x1x8xf32> to vector<1x8xf32>
    %23 = vector.shape_cast %20 : vector<1x8xf32> to vector<1x1x1x8xf32>
    tpu.vector_store %arg4[%c0_8, %c0_9, %c0_10, %c0_11], %23 {strides = array<i32>} : memref<1x1x1x8xf32, #tpu.memory_space<vmem>>, vector<1x1x1x8xf32>,
    return
  }
  func.func @transform_0(%arg0: i32, %arg1: i32) -> (i32, i32, i32) {
    %c0_i32 = arith.constant 0 : i32
    %c0_i32_0 = arith.constant 0 : i32
    return %arg0, %c0_i32, %arg1 : i32, i32, i32
  }
  func.func @transform_1(%arg0: i32, %arg1: i32) -> (i32, i32, i32) {
    %c0_i32 = arith.constant 0 : i32
    %c0_i32_0 = arith.constant 0 : i32
    return %arg0, %c0_i32, %arg1 : i32, i32, i32
  }
  func.func @transform_2(%arg0: i32, %arg1: i32) -> (i32, i32, i32, i32) {
    %c0_i32 = arith.constant 0 : i32
    %c0_i32_0 = arith.constant 0 : i32
    %c0_i32_1 = arith.constant 0 : i32
    return %arg0, %arg1, %c0_i32, %c0_i32_0 : i32, i32, i32, i32
  }
}

</mosaic_0001>

<bundles_post_ra>
// kernel: _cross_entropy_mean.1
= control target key start
LH: loop header
LB: loop body
LE: loop exit
PB: predicated region body
PF: predicated region fallthrough
CT: control target
= control target key end

     0   :  { %s2345_s9 = smov 0   ;;  %s2347_s10 = smov 0   ;;  %s4441_s0 = inlined_call_operand.vmem [shape: f32[2,1024,8], index: 0, kind: input, shape index: {}]   ;;  %s4442_s1 = inlined_call_operand.vmem [shape: s32[2,1,8], index: 1, kind: input, shape index: {}]   ;;  %s4443_s2 = inlined_call_operand.vmem [shape: f32[2,1,1,8], index: 2, kind: output, shape index: {}]  }
   0x1   :  { %s2349_s11 = smov 0  }
   0x2 LB: > { %s24_s12 = sadd.s32 1, %s2324_s10  ;;  %p1974_p0 = scmp.ge.s32.totalorder %s2328_s11, 1  ;;  %s2328_s11 = sphi %s2349_s11, %s12_s11   ;;  %s2324_s10 = sphi %s2347_s10, %s4916_s10   ;;  %s2320_s9 = sphi %s2345_s9, %s4915_s9  }
   0x3   : > { %p26_p1 = scmp.ge.s32.totalorder %s24_s12, 2  ;;  %p144_p2 = scmp.lt.s32.totalorder %s2328_s11, 3 }
   0x5   : > { %s4918_s12 = smov (%p26_p1, %s24_s12), 0  ;;  %p145_p3 = pnand %p1974_p0, %p144_p2 }
   0x7   : > { %148 = sbr.rel (%p145_p3) target bundleno = 567 (0x237), region = 28 }
   0xe   : > { %p176_p4 = scmp.lt.s32.totalorder %s2320_s9, 1  ;;  %vm325_vm0 = vcmask 64512  }
  0x10   : > { %s4920_s9 = smov (!%p176_p4, %s2320_s9), 1 }
  0x11   : > { %s1980_s13 = sshll.u32 %s4920_s9, 10  ;;  %s3578_s19 = scalar_lea.vmem %s4442_s1, %s4920_s9 }
  0x12   : > { %s2369_s16 = scalar_lea.vmem %s4441_s0, %s1980_s13  ;;  %s195_s22 = scalar_lea.vmem %s4443_s2, %s4920_s9 }
  0x13   : > { %v2372_v0 = vld [vmem:[%s2369_s16] sm:$0xff]  ;;  %v2375_v1 = vld [vmem:[%s2369_s16 + $0x8] sm:$0xff]  ;;  %v2378_v2 = vld [vmem:[%s2369_s16 + $0x10] sm:$0xff] }
  0x14   : > { %4594 = vst [vmem:[#allocation2_spill] sm:$0xff] %v2372_v0  ;;  %4595 = vst [vmem:[#allocation3_spill] sm:$0xff] %v2375_v1  ;;  %v2381_v3 = vld [vmem:[%s2369_s16 + $0x18] sm:$0xff]  ;;  %v2384_v4 = vld [vmem:[%s2369_s16 + $0x20] sm:$0xff]  ;;  %v326_v6 = vsel %vm325_vm0, %v2372_v0, -inf  ;;  %v327_v7 = vsel %vm325_vm0, %v2375_v1, -inf }
  0x15   : > { %4596 = vst [vmem:[#allocation4_spill] sm:$0xff] %v2378_v2  ;;  %4597 = vst [vmem:[#allocation5_spill] sm:$0xff] %v2381_v3  ;;  %v2387_v5 = vld [vmem:[%s2369_s16 + $0x28] sm:$0xff]  ;;  %v328_v8 = vsel %vm325_vm0, %v2378_v2, -inf  ;;  %v2396_v9 = vld [vmem:[%s2369_s16 + $0x30] sm:$0xff]  ;;  %v329_v12 = vsel %vm325_vm0, %v2381_v3, -inf }
  0x16   : > { %4598 = vst [vmem:[#allocation6_spill] sm:$0xff] %v2384_v4  ;;  %4599 = vst [vmem:[#allocation7_spill] sm:$0xff] %v2387_v5  ;;  %v2399_v10 = vld [vmem:[%s2369_s16 + $0x38] sm:$0xff]  ;;  %v2402_v11 = vld [vmem:[%s2369_s16 + $0x40] sm:$0xff]  ;;  %v330_v13 = vsel %vm325_vm0, %v2384_v4, -inf  ;;  %v332_v14 = vsel %vm325_vm0, %v2387_v5, -inf }
  0x17   : > { %4600 = vst [vmem:[#allocation8_spill] sm:$0xff] %v2396_v9  ;;  %4601 = vst [vmem:[#allocation9_spill] sm:$0xff] %v2399_v10  ;;  %v2411_v15 = vld [vmem:[%s2369_s16 + $0x48] sm:$0xff]  ;;  %v2414_v16 = vld [vmem:[%s2369_s16 + $0x50] sm:$0xff]  ;;  %v331_v18 = vmax.f32 %v326_v6, %v330_v13  ;;  %v333_v19 = vmax.f32 %v327_v7, %v332_v14  ;;  %v334_v20 = vsel %vm325_vm0, %v2396_v9, -inf  ;;  %v336_v21 = vsel %vm325_vm0, %v2399_v10, -inf }
  0x18   : > { %4602 = vst [vmem:[#allocation10_spill] sm:$0xff] %v2402_v11  ;;  %4603 = vst [vmem:[#allocation11_spill] sm:$0xff] %v2411_v15  ;;  %v2417_v17 = vld [vmem:[%s2369_s16 + $0x58] sm:$0xff]  ;;  %v2424_v22 = vld [vmem:[%s2369_s16 + $0x60] sm:$0xff]  ;;  %v335_v25 = vmax.f32 %v328_v8, %v334_v20  ;;  %v337_v26 = vmax.f32 %v329_v12, %v336_v21  ;;  %v338_v27 = vsel %vm325_vm0, %v2402_v11, -inf  ;;  %v340_v28 = vsel %vm325_vm0, %v2411_v15, -inf }
  0x19   : > { %4604 = vst [vmem:[#allocation12_spill] sm:$0xff] %v2414_v16  ;;  %4605 = vst [vmem:[#allocation13_spill] sm:$0xff] %v2417_v17  ;;  %v2427_v23 = vld [vmem:[%s2369_s16 + $0x68] sm:$0xff]  ;;  %v2430_v24 = vld [vmem:[%s2369_s16 + $0x70] sm:$0xff]  ;;  %v339_v32 = vmax.f32 %v331_v18, %v338_v27  ;;  %v341_v33 = vmax.f32 %v333_v19, %v340_v28  ;;  %v342_v34 = vsel %vm325_vm0, %v2414_v16, -inf  ;;  %v344_v35 = vsel %vm325_vm0, %v2417_v17, -inf }
  0x1a   : > { %4606 = vst [vmem:[#allocation14_spill] sm:$0xff] %v2424_v22  ;;  %4607 = vst [vmem:[#allocation15_spill] sm:$0xff] %v2427_v23  ;;  %v2437_v29 = vld [vmem:[%s2369_s16 + $0x78] sm:$0xff]  ;;  %v2440_v30 = vld [vmem:[%s2369_s16 + $0x80] sm:$0xff]  ;;  %v343_v38 = vmax.f32 %v335_v25, %v342_v34  ;;  %v345_v39 = vmax.f32 %v337_v26, %v344_v35  ;;  %v346_v40 = vsel %vm325_vm0, %v2424_v22, -inf  ;;  %v348_v41 = vsel %vm325_vm0, %v2427_v23, -inf }
  0x1b   : > { %4608 = vst [vmem:[#allocation16_spill] sm:$0xff] %v2430_v24  ;;  %4609 = vst [vmem:[#allocation17_spill] sm:$0xff] %v2437_v29  ;;  %v2443_v31 = vld [vmem:[%s2369_s16 + $0x88] sm:$0xff]  ;;  %v2450_v36 = vld [vmem:[%s2369_s16 + $0x90] sm:$0xff]  ;;  %v347_v44 = vmax.f32 %v339_v32, %v346_v40  ;;  %v349_v45 = vmax.f32 %v341_v33, %v348_v41  ;;  %v350_v46 = vsel %vm325_vm0, %v2430_v24, -inf  ;;  %v352_v47 = vsel %vm325_vm0, %v2437_v29, -inf }
  0x1c   : > { %4610 = vst [vmem:[#allocation18_spill] sm:$0xff] %v2440_v30  ;;  %4611 = vst [vmem:[#allocation19_spill] sm:$0xff] %v2443_v31  ;;  %v2453_v37 = vld [vmem:[%s2369_s16 + $0x98] sm:$0xff]  ;;  %v2460_v42 = vld [vmem:[%s2369_s16 + $0xa0] sm:$0xff]  ;;  %v351_v50 = vmax.f32 %v343_v38, %v350_v46  ;;  %v353_v51 = vmax.f32 %v345_v39, %v352_v47  ;;  %v354_v52 = vsel %vm325_vm0, %v2440_v30, -inf  ;;  %v356_v53 = vsel %vm325_vm0, %v2443_v31, -inf }
  0x1d   : > { %4612 = vst [vmem:[#allocation20_spill] sm:$0xff] %v2450_v36  ;;  %4613 = vst [vmem:[#allocation21_spill] sm:$0xff] %v2453_v37  ;;  %v2463_v43 = vld [vmem:[%s2369_s16 + $0xa8] sm:$0xff]  ;;  %v2470_v48 = vld [vmem:[%s2369_s16 + $0xb0] sm:$0xff]  ;;  %v355_v56 = vmax.f32 %v347_v44, %v354_v52  ;;  %v357_v57 = vmax.f32 %v349_v45, %v356_v53  ;;  %v358_v58 = vsel %vm325_vm0, %v2450_v36, -inf  ;;  %v360_v59 = vsel %vm325_vm0, %v2453_v37, -inf }
  0x1e   : > { %4614 = vst [vmem:[#allocation22_spill] sm:$0xff] %v2460_v42  ;;  %4615 = vst [vmem:[#allocation23_spill] sm:$0xff] %v2463_v43  ;;  %v2473_v49 = vld [vmem:[%s2369_s16 + $0xb8] sm:$0xff]  ;;  %v2480_v54 = vld [vmem:[%s2369_s16 + $0xc0] sm:$0xff]  ;;  %v359_v62 = vmax.f32 %v351_v50, %v358_v58  ;;  %v361_v63 = vmax.f32 %v353_v51, %v360_v59  ;;  %v362_v6 = vsel %vm325_vm0, %v2460_v42, -inf  ;;  %v364_v7 = vsel %vm325_vm0, %v2463_v43, -inf }
  0x1f   : > { %4616 = vst [vmem:[#allocation24_spill] sm:$0xff] %v2470_v48  ;;  %4617 = vst [vmem:[#allocation25_spill] sm:$0xff] %v2473_v49  ;;  %v2483_v55 = vld [vmem:[%s2369_s16 + $0xc8] sm:$0xff]  ;;  %v2490_v60 = vld [vmem:[%s2369_s16 + $0xd0] sm:$0xff]  ;;  %v363_v13 = vmax.f32 %v355_v56, %v362_v6  ;;  %v365_v14 = vmax.f32 %v357_v57, %v364_v7  ;;  %v366_v18 = vsel %vm325_vm0, %v2470_v48, -inf  ;;  %v368_v19 = vsel %vm325_vm0, %v2473_v49, -inf }
  0x20   : > { %4618 = vst [vmem:[#allocation26_spill] sm:$0xff] %v2480_v54  ;;  %4619 = vst [vmem:[#allocation27_spill] sm:$0xff] %v2483_v55  ;;  %v2493_v61 = vld [vmem:[%s2369_s16 + $0xd8] sm:$0xff]  ;;  %v224_v8 = vld [vmem:[%s2369_s16 + $0xe0] sm:$0xff]  ;;  %v367_v25 = vmax.f32 %v359_v62, %v366_v18  ;;  %v369_v26 = vmax.f32 %v361_v63, %v368_v19  ;;  %v370_v27 = vsel %vm325_vm0, %v2480_v54, -inf  ;;  %v372_v28 = vsel %vm325_vm0, %v2483_v55, -inf }
  0x21   : > { %4620 = vst [vmem:[#allocation28_spill] sm:$0xff] %v2490_v60  ;;  %4621 = vst [vmem:[#allocation29_spill] sm:$0xff] %v2493_v61  ;;  %v225_v12 = vld [vmem:[%s2369_s16 + $0xe8] sm:$0xff]  ;;  %v226_v20 = vld [vmem:[%s2369_s16 + $0xf0] sm:$0xff]  ;;  %v371_v34 = vmax.f32 %v363_v13, %v370_v27  ;;  %v373_v35 = vmax.f32 %v365_v14, %v372_v28  ;;  %v374_v38 = vsel %vm325_vm0, %v2490_v60, -inf  ;;  %v376_v39 = vsel %vm325_vm0, %v2493_v61, -inf }
  0x22   : > { %v227_v21 = vld [vmem:[%s2369_s16 + $0xf8] sm:$0xff]  ;;  %v228_v32 = vld [vmem:[%s2369_s16 + $0x100] sm:$0xff]  ;;  %v229_v33 = vld [vmem:[%s2369_s16 + $0x108] sm:$0xff]  ;;  %v375_v44 = vmax.f32 %v367_v25, %v374_v38  ;;  %v377_v45 = vmax.f32 %v369_v26, %v376_v39  ;;  %v378_v46 = vsel %vm325_vm0, %v224_v8, -inf  ;;  %v380_v47 = vsel %vm325_vm0, %v225_v12, -inf }
  0x23   : > { %v230_v40 = vld [vmem:[%s2369_s16 + $0x110] sm:$0xff]  ;;  %v231_v41 = vld [vmem:[%s2369_s16 + $0x118] sm:$0xff]  ;;  %v232_v50 = vld [vmem:[%s2369_s16 + $0x120] sm:$0xff]  ;;  %v379_v52 = vmax.f32 %v371_v34, %v378_v46  ;;  %v381_v53 = vmax.f32 %v373_v35, %v380_v47  ;;  %v382_v56 = vsel %vm325_vm0, %v226_v20, -inf  ;;  %v384_v57 = vsel %vm325_vm0, %v227_v21, -inf }
  0x24   : > { %v233_v51 = vld [vmem:[%s2369_s16 + $0x128] sm:$0xff]  ;;  %v234_v58 = vld [vmem:[%s2369_s16 + $0x130] sm:$0xff]  ;;  %v235_v59 = vld [vmem:[%s2369_s16 + $0x138] sm:$0xff]  ;;  %v383_v62 = vmax.f32 %v375_v44, %v382_v56  ;;  %v385_v63 = vmax.f32 %v377_v45, %v384_v57  ;;  %v386_v6 = vsel %vm325_vm0, %v228_v32, -inf  ;;  %v388_v7 = vsel %vm325_vm0, %v229_v33, -inf }
  0x25   : > { %v236_v8 = vld [vmem:[%s2369_s16 + $0x140] sm:$0xff]  ;;  %v237_v12 = vld [vmem:[%s2369_s16 + $0x148] sm:$0xff]  ;;  %v387_v13 = vmax.f32 %v379_v52, %v386_v6  ;;  %v389_v14 = vmax.f32 %v381_v53, %v388_v7  ;;  %v390_v18 = vsel %vm325_vm0, %v230_v40, -inf  ;;  %v392_v19 = vsel %vm325_vm0, %v231_v41, -inf  ;;  %v238_v20 = vld [vmem:[%s2369_s16 + $0x150] sm:$0xff] }
  0x26   : > { %v239_v21 = vld [vmem:[%s2369_s16 + $0x158] sm:$0xff]  ;;  %v391_v25 = vmax.f32 %v383_v62, %v390_v18  ;;  %v393_v26 = vmax.f32 %v385_v63, %v392_v19  ;;  %v394_v27 = vsel %vm325_vm0, %v232_v50, -inf  ;;  %v396_v28 = vsel %vm325_vm0, %v233_v51, -inf  ;;  %v240_v32 = vld [vmem:[%s2369_s16 + $0x160] sm:$0xff]  ;;  %v241_v33 = vld [vmem:[%s2369_s16 + $0x168] sm:$0xff] }
  0x27   : > { %v395_v34 = vmax.f32 %v387_v13, %v394_v27  ;;  %v397_v35 = vmax.f32 %v389_v14, %v396_v28  ;;  %v398_v38 = vsel %vm325_vm0, %v234_v58, -inf  ;;  %v400_v39 = vsel %vm325_vm0, %v235_v59, -inf  ;;  %v242_v40 = vld [vmem:[%s2369_s16 + $0x170] sm:$0xff]  ;;  %v243_v41 = vld [vmem:[%s2369_s16 + $0x178] sm:$0xff]  ;;  %v244_v50 = vld [vmem:[%s2369_s16 + $0x180] sm:$0xff] }
  0x28   : > { %v399_v44 = vmax.f32 %v391_v25, %v398_v38  ;;  %v401_v45 = vmax.f32 %v393_v26, %v400_v39  ;;  %v402_v46 = vsel %vm325_vm0, %v236_v8, -inf  ;;  %v404_v47 = vsel %vm325_vm0, %v237_v12, -inf  ;;  %v245_v51 = vld [vmem:[%s2369_s16 + $0x188] sm:$0xff]  ;;  %v246_v58 = vld [vmem:[%s2369_s16 + $0x190] sm:$0xff]  ;;  %v247_v59 = vld [vmem:[%s2369_s16 + $0x198] sm:$0xff] }
  0x29   : > { %v403_v52 = vmax.f32 %v395_v34, %v402_v46  ;;  %v405_v53 = vmax.f32 %v397_v35, %v404_v47  ;;  %v406_v56 = vsel %vm325_vm0, %v238_v20, -inf  ;;  %v408_v57 = vsel %vm325_vm0, %v239_v21, -inf  ;;  %v248_v8 = vld [vmem:[%s2369_s16 + $0x1a0] sm:$0xff]  ;;  %v249_v12 = vld [vmem:[%s2369_s16 + $0x1a8] sm:$0xff]  ;;  %v250_v20 = vld [vmem:[%s2369_s16 + $0x1b0] sm:$0xff] }
  0x2a   : > { %v407_v62 = vmax.f32 %v399_v44, %v406_v56  ;;  %v409_v63 = vmax.f32 %v401_v45, %v408_v57  ;;  %v410_v6 = vsel %vm325_vm0, %v240_v32, -inf  ;;  %v412_v7 = vsel %vm325_vm0, %v241_v33, -inf  ;;  %v251_v21 = vld [vmem:[%s2369_s16 + $0x1b8] sm:$0xff]  ;;  %v252_v32 = vld [vmem:[%s2369_s16 + $0x1c0] sm:$0xff]  ;;  %v253_v33 = vld [vmem:[%s2369_s16 + $0x1c8] sm:$0xff] }
  0x2b   : > { %v411_v13 = vmax.f32 %v403_v52, %v410_v6  ;;  %v413_v14 = vmax.f32 %v405_v53, %v412_v7  ;;  %v414_v18 = vsel %vm325_vm0, %v242_v40, -inf  ;;  %v416_v19 = vsel %vm325_vm0, %v243_v41, -inf  ;;  %v254_v40 = vld [vmem:[%s2369_s16 + $0x1d0] sm:$0xff]  ;;  %v255_v41 = vld [vmem:[%s2369_s16 + $0x1d8] sm:$0xff] }
  0x2c   : > { %v415_v25 = vmax.f32 %v407_v62, %v414_v18  ;;  %v417_v26 = vmax.f32 %v409_v63, %v416_v19  ;;  %v418_v27 = vsel %vm325_vm0, %v244_v50, -inf  ;;  %v420_v28 = vsel %vm325_vm0, %v245_v51, -inf  ;;  %v256_v50 = vld [vmem:[%s2369_s16 + $0x1e0] sm:$0xff]  ;;  %v257_v51 = vld [vmem:[%s2369_s16 + $0x1e8] sm:$0xff] }
  0x2d   : > { %v419_v34 = vmax.f32 %v411_v13, %v418_v27  ;;  %v421_v35 = vmax.f32 %v413_v14, %v420_v28  ;;  %v422_v38 = vsel %vm325_vm0, %v246_v58, -inf  ;;  %v424_v39 = vsel %vm325_vm0, %v247_v59, -inf  ;;  %v258_v58 = vld [vmem:[%s2369_s16 + $0x1f0] sm:$0xff]  ;;  %v259_v59 = vld [vmem:[%s2369_s16 + $0x1f8] sm:$0xff] }
  0x2e   : > { %v423_v44 = vmax.f32 %v415_v25, %v422_v38  ;;  %v425_v45 = vmax.f32 %v417_v26, %v424_v39  ;;  %v426_v46 = vsel %vm325_vm0, %v248_v8, -inf  ;;  %v428_v47 = vsel %vm325_vm0, %v249_v12, -inf  ;;  %v260_v8 = vld [vmem:[%s2369_s16 + $0x200] sm:$0xff]  ;;  %v261_v12 = vld [vmem:[%s2369_s16 + $0x208] sm:$0xff] }
  0x2f   : > { %v427_v52 = vmax.f32 %v419_v34, %v426_v46  ;;  %v429_v53 = vmax.f32 %v421_v35, %v428_v47  ;;  %v430_v56 = vsel %vm325_vm0, %v250_v20, -inf  ;;  %v432_v57 = vsel %vm325_vm0, %v251_v21, -inf  ;;  %v262_v20 = vld [vmem:[%s2369_s16 + $0x210] sm:$0xff]  ;;  %v263_v21 = vld [vmem:[%s2369_s16 + $0x218] sm:$0xff] }
  0x30   : > { %v431_v62 = vmax.f32 %v423_v44, %v430_v56  ;;  %v433_v63 = vmax.f32 %v425_v45, %v432_v57  ;;  %v434_v6 = vsel %vm325_vm0, %v252_v32, -inf  ;;  %v436_v7 = vsel %vm325_vm0, %v253_v33, -inf  ;;  %v264_v32 = vld [vmem:[%s2369_s16 + $0x220] sm:$0xff]  ;;  %v265_v33 = vld [vmem:[%s2369_s16 + $0x228] sm:$0xff] }
  0x31   : > { %v435_v13 = vmax.f32 %v427_v52, %v434_v6  ;;  %v437_v14 = vmax.f32 %v429_v53, %v436_v7  ;;  %v438_v18 = vsel %vm325_vm0, %v254_v40, -inf  ;;  %v440_v19 = vsel %vm325_vm0, %v255_v41, -inf  ;;  %v2590_v40 = vld [vmem:[%s2369_s16 + $0x230] sm:$0xff]  ;;  %v2593_v41 = vld [vmem:[%s2369_s16 + $0x238] sm:$0xff] }
  0x32   : > { %v439_v25 = vmax.f32 %v431_v62, %v438_v18  ;;  %v441_v26 = vmax.f32 %v433_v63, %v440_v19  ;;  %v442_v27 = vsel %vm325_vm0, %v256_v50, -inf  ;;  %v444_v28 = vsel %vm325_vm0, %v257_v51, -inf  ;;  %v2598_v50 = vld [vmem:[%s2369_s16 + $0x240] sm:$0xff]  ;;  %v2601_v51 = vld [vmem:[%s2369_s16 + $0x248] sm:$0xff] }
  0x33   : > { %v443_v34 = vmax.f32 %v435_v13, %v442_v27  ;;  %v445_v35 = vmax.f32 %v437_v14, %v444_v28  ;;  %v446_v38 = vsel %vm325_vm0, %v258_v58, -inf  ;;  %v448_v39 = vsel %vm325_vm0, %v259_v59, -inf  ;;  %v2606_v58 = vld [vmem:[%s2369_s16 + $0x250] sm:$0xff]  ;;  %v2609_v59 = vld [vmem:[%s2369_s16 + $0x258] sm:$0xff] }
  0x34   : > { %v447_v44 = vmax.f32 %v439_v25, %v446_v38  ;;  %v449_v45 = vmax.f32 %v441_v26, %v448_v39  ;;  %v450_v46 = vsel %vm325_vm0, %v260_v8, -inf  ;;  %v452_v47 = vsel %vm325_vm0, %v261_v12, -inf  ;;  %v2614_v8 = vld [vmem:[%s2369_s16 + $0x260] sm:$0xff]  ;;  %v2617_v12 = vld [vmem:[%s2369_s16 + $0x268] sm:$0xff] }
  0x35   : > { %v451_v52 = vmax.f32 %v443_v34, %v450_v46  ;;  %v453_v53 = vmax.f32 %v445_v35, %v452_v47  ;;  %v454_v56 = vsel %vm325_vm0, %v262_v20, -inf  ;;  %v456_v57 = vsel %vm325_vm0, %v263_v21, -inf  ;;  %v2624_v20 = vld [vmem:[%s2369_s16 + $0x270] sm:$0xff]  ;;  %v2627_v21 = vld [vmem:[%s2369_s16 + $0x278] sm:$0xff] }
  0x36   : > { %v455_v62 = vmax.f32 %v447_v44, %v454_v56  ;;  %v457_v63 = vmax.f32 %v449_v45, %v456_v57  ;;  %v458_v6 = vsel %vm325_vm0, %v264_v32, -inf  ;;  %v460_v7 = vsel %vm325_vm0, %v265_v33, -inf  ;;  %v2634_v32 = vld [vmem:[%s2369_s16 + $0x280] sm:$0xff]  ;;  %v2637_v33 = vld [vmem:[%s2369_s16 + $0x288] sm:$0xff]  ;;  %v2644_v44 = vld [vmem:[%s2369_s16 + $0x290] sm:$0xff] }
  0x37   : > { %v459_v13 = vmax.f32 %v451_v52, %v458_v6  ;;  %v461_v14 = vmax.f32 %v453_v53, %v460_v7  ;;  %v462_v18 = vsel %vm325_vm0, %v2590_v40, -inf  ;;  %v464_v19 = vsel %vm325_vm0, %v2593_v41, -inf  ;;  %v2647_v45 = vld [vmem:[%s2369_s16 + $0x298] sm:$0xff]  ;;  %v2654_v56 = vld [vmem:[%s2369_s16 + $0x2a0] sm:$0xff]  ;;  %v2657_v57 = vld [vmem:[%s2369_s16 + $0x2a8] sm:$0xff] }
  0x38   : > { %v463_v25 = vmax.f32 %v455_v62, %v462_v18  ;;  %v465_v26 = vmax.f32 %v457_v63, %v464_v19  ;;  %v466_v27 = vsel %vm325_vm0, %v2598_v50, -inf  ;;  %v468_v28 = vsel %vm325_vm0, %v2601_v51, -inf }
  0x39   : > { %v467_v34 = vmax.f32 %v459_v13, %v466_v27  ;;  %v469_v35 = vmax.f32 %v461_v14, %v468_v28  ;;  %v470_v38 = vsel %vm325_vm0, %v2606_v58, -inf  ;;  %v472_v39 = vsel %vm325_vm0, %v2609_v59, -inf  ;;  %v2664_v13 = vld [vmem:[%s2369_s16 + $0x2b0] sm:$0xff]  ;;  %v2667_v14 = vld [vmem:[%s2369_s16 + $0x2b8] sm:$0xff]  ;;  %v2674_v27 = vld [vmem:[%s2369_s16 + $0x2c0] sm:$0xff] }
  0x3a   : > { %v471_v46 = vmax.f32 %v463_v25, %v470_v38  ;;  %v473_v47 = vmax.f32 %v465_v26, %v472_v39  ;;  %v474_v52 = vsel %vm325_vm0, %v2614_v8, -inf  ;;  %v476_v53 = vsel %vm325_vm0, %v2617_v12, -inf  ;;  %v2677_v28 = vld [vmem:[%s2369_s16 + $0x2c8] sm:$0xff] }
  0x3b   : > { %v475_v62 = vmax.f32 %v467_v34, %v474_v52  ;;  %v477_v63 = vmax.f32 %v469_v35, %v476_v53  ;;  %v478_v6 = vsel %vm325_vm0, %v2624_v20, -inf  ;;  %v480_v7 = vsel %vm325_vm0, %v2627_v21, -inf }
  0x3c   : > { %v479_v18 = vmax.f32 %v471_v46, %v478_v6  ;;  %v481_v19 = vmax.f32 %v473_v47, %v480_v7  ;;  %v482_v25 = vsel %vm325_vm0, %v2634_v32, -inf  ;;  %v484_v26 = vsel %vm325_vm0, %v2637_v33, -inf  ;;  %v2684_v46 = vld [vmem:[%s2369_s16 + $0x2d0] sm:$0xff]  ;;  %v2687_v47 = vld [vmem:[%s2369_s16 + $0x2d8] sm:$0xff]  ;;  %v2694_v6 = vld [vmem:[%s2369_s16 + $0x2e0] sm:$0xff] }
  0x3d   : > { %v483_v34 = vmax.f32 %v475_v62, %v482_v25  ;;  %v485_v35 = vmax.f32 %v477_v63, %v484_v26  ;;  %v486_v38 = vsel %vm325_vm0, %v2644_v44, -inf  ;;  %v488_v39 = vsel %vm325_vm0, %v2647_v45, -inf  ;;  %v2697_v7 = vld [vmem:[%s2369_s16 + $0x2e8] sm:$0xff] }
  0x3e   : > { %v487_v52 = vmax.f32 %v479_v18, %v486_v38  ;;  %v489_v53 = vmax.f32 %v481_v19, %v488_v39  ;;  %v490_v62 = vsel %vm325_vm0, %v2654_v56, -inf  ;;  %v492_v63 = vsel %vm325_vm0, %v2657_v57, -inf  ;;  %v2704_v38 = vld [vmem:[%s2369_s16 + $0x2f0] sm:$0xff]  ;;  %v2707_v39 = vld [vmem:[%s2369_s16 + $0x2f8] sm:$0xff] }
  0x3f   : > { %v491_v25 = vmax.f32 %v483_v34, %v490_v62  ;;  %v493_v26 = vmax.f32 %v485_v35, %v492_v63  ;;  %v494_v18 = vsel %vm325_vm0, %v2664_v13, -inf  ;;  %v496_v19 = vsel %vm325_vm0, %v2667_v14, -inf  ;;  %v2714_v62 = vld [vmem:[%s2369_s16 + $0x300] sm:$0xff]  ;;  %v2717_v63 = vld [vmem:[%s2369_s16 + $0x308] sm:$0xff] }
  0x40   : > { %v495_v61 = vmax.f32 %v487_v52, %v494_v18  ;;  %v497_v60 = vmax.f32 %v489_v53, %v496_v19  ;;  %v498_v34 = vsel %vm325_vm0, %v2674_v27, -inf  ;;  %v500_v35 = vsel %vm325_vm0, %v2677_v28, -inf  ;;  %v2724_v18 = vld [vmem:[%s2369_s16 + $0x310] sm:$0xff]  ;;  %v2727_v19 = vld [vmem:[%s2369_s16 + $0x318] sm:$0xff] }
  0x41   : > { %v499_v55 = vmax.f32 %v491_v25, %v498_v34  ;;  %v501_v54 = vmax.f32 %v493_v26, %v500_v35  ;;  %v502_v52 = vsel %vm325_vm0, %v2684_v46, -inf  ;;  %v504_v53 = vsel %vm325_vm0, %v2687_v47, -inf  ;;  %v2734_v34 = vld [vmem:[%s2369_s16 + $0x320] sm:$0xff]  ;;  %v2737_v35 = vld [vmem:[%s2369_s16 + $0x328] sm:$0xff] }
  0x42   : > { %v503_v49 = vmax.f32 %v495_v61, %v502_v52  ;;  %v505_v48 = vmax.f32 %v497_v60, %v504_v53  ;;  %v506_v25 = vsel %vm325_vm0, %v2694_v6, -inf  ;;  %v508_v26 = vsel %vm325_vm0, %v2697_v7, -inf  ;;  %v2744_v52 = vld [vmem:[%s2369_s16 + $0x330] sm:$0xff]  ;;  %v2747_v53 = vld [vmem:[%s2369_s16 + $0x338] sm:$0xff] }
  0x43   : > { %v507_v43 = vmax.f32 %v499_v55, %v506_v25  ;;  %v509_v42 = vmax.f32 %v501_v54, %v508_v26  ;;  %v510_v61 = vsel %vm325_vm0, %v2704_v38, -inf  ;;  %v512_v60 = vsel %vm325_vm0, %v2707_v39, -inf  ;;  %v2754_v25 = vld [vmem:[%s2369_s16 + $0x340] sm:$0xff]  ;;  %v2757_v26 = vld [vmem:[%s2369_s16 + $0x348] sm:$0xff] }
  0x44   : > { %v511_v37 = vmax.f32 %v503_v49, %v510_v61  ;;  %v513_v36 = vmax.f32 %v505_v48, %v512_v60  ;;  %v514_v55 = vsel %vm325_vm0, %v2714_v62, -inf  ;;  %v516_v54 = vsel %vm325_vm0, %v2717_v63, -inf  ;;  %v2764_v61 = vld [vmem:[%s2369_s16 + $0x350] sm:$0xff]  ;;  %v2767_v60 = vld [vmem:[%s2369_s16 + $0x358] sm:$0xff] }
  0x45   : > { %v515_v31 = vmax.f32 %v507_v43, %v514_v55  ;;  %v517_v30 = vmax.f32 %v509_v42, %v516_v54  ;;  %v518_v49 = vsel %vm325_vm0, %v2724_v18, -inf  ;;  %v520_v48 = vsel %vm325_vm0, %v2727_v19, -inf  ;;  %v2774_v55 = vld [vmem:[%s2369_s16 + $0x360] sm:$0xff]  ;;  %v2777_v54 = vld [vmem:[%s2369_s16 + $0x368] sm:$0xff] }
  0x46   : > { %v519_v29 = vmax.f32 %v511_v37, %v518_v49  ;;  %v521_v24 = vmax.f32 %v513_v36, %v520_v48  ;;  %v522_v43 = vsel %vm325_vm0, %v2734_v34, -inf  ;;  %v524_v42 = vsel %vm325_vm0, %v2737_v35, -inf  ;;  %v2784_v49 = vld [vmem:[%s2369_s16 + $0x370] sm:$0xff]  ;;  %v2787_v48 = vld [vmem:[%s2369_s16 + $0x378] sm:$0xff] }
  0x47   : > { %v523_v23 = vmax.f32 %v515_v31, %v522_v43  ;;  %v525_v22 = vmax.f32 %v517_v30, %v524_v42  ;;  %v526_v37 = vsel %vm325_vm0, %v2744_v52, -inf  ;;  %v528_v36 = vsel %vm325_vm0, %v2747_v53, -inf  ;;  %4622 = vst [vmem:[#allocation30_spill] sm:$0xff] %v2784_v49  ;;  %4623 = vst [vmem:[#allocation31_spill] sm:$0xff] %v2787_v48  ;;  %v2794_v43 = vld [vmem:[%s2369_s16 + $0x380] sm:$0xff]  ;;  %v2797_v42 = vld [vmem:[%s2369_s16 + $0x388] sm:$0xff] }
  0x48   : > { %v527_v17 = vmax.f32 %v519_v29, %v526_v37  ;;  %v529_v16 = vmax.f32 %v521_v24, %v528_v36  ;;  %v530_v31 = vsel %vm325_vm0, %v2754_v25, -inf  ;;  %v532_v30 = vsel %vm325_vm0, %v2757_v26, -inf  ;;  %4624 = vst [vmem:[#allocation32_spill] sm:$0xff] %v2794_v43  ;;  %4625 = vst [vmem:[#allocation33_spill] sm:$0xff] %v2797_v42  ;;  %v2804_v37 = vld [vmem:[%s2369_s16 + $0x390] sm:$0xff]  ;;  %v2807_v36 = vld [vmem:[%s2369_s16 + $0x398] sm:$0xff] }
  0x49   : > { %v531_v15 = vmax.f32 %v523_v23, %v530_v31  ;;  %v533_v11 = vmax.f32 %v525_v22, %v532_v30  ;;  %v534_v29 = vsel %vm325_vm0, %v2764_v61, -inf  ;;  %v536_v24 = vsel %vm325_vm0, %v2767_v60, -inf  ;;  %4626 = vst [vmem:[#allocation34_spill] sm:$0xff] %v2804_v37  ;;  %4627 = vst [vmem:[#allocation35_spill] sm:$0xff] %v2807_v36  ;;  %v2814_v31 = vld [vmem:[%s2369_s16 + $0x3a0] sm:$0xff]  ;;  %v2817_v30 = vld [vmem:[%s2369_s16 + $0x3a8] sm:$0xff] }
  0x4a   : > { %v535_v10 = vmax.f32 %v527_v17, %v534_v29  ;;  %v537_v9 = vmax.f32 %v529_v16, %v536_v24  ;;  %v538_v23 = vsel %vm325_vm0, %v2774_v55, -inf  ;;  %v540_v22 = vsel %vm325_vm0, %v2777_v54, -inf  ;;  %4628 = vst [vmem:[#allocation36_spill] sm:$0xff] %v2814_v31  ;;  %4629 = vst [vmem:[#allocation37_spill] sm:$0xff] %v2817_v30  ;;  %v2824_v29 = vld [vmem:[%s2369_s16 + $0x3b0] sm:$0xff]  ;;  %v2827_v24 = vld [vmem:[%s2369_s16 + $0x3b8] sm:$0xff] }
  0x4b   : > { %v539_v5 = vmax.f32 %v531_v15, %v538_v23  ;;  %v541_v4 = vmax.f32 %v533_v11, %v540_v22  ;;  %v542_v17 = vsel %vm325_vm0, %v2784_v49, -inf  ;;  %v544_v16 = vsel %vm325_vm0, %v2787_v48, -inf  ;;  %4630 = vst [vmem:[#allocation38_spill] sm:$0xff] %v2824_v29  ;;  %4631 = vst [vmem:[#allocation39_spill] sm:$0xff] %v2827_v24  ;;  %v2834_v23 = vld [vmem:[%s2369_s16 + $0x3c0] sm:$0xff]  ;;  %v2837_v22 = vld [vmem:[%s2369_s16 + $0x3c8] sm:$0xff] }
  0x4c   : > { %v543_v3 = vmax.f32 %v535_v10, %v542_v17  ;;  %v545_v2 = vmax.f32 %v537_v9, %v544_v16  ;;  %v546_v15 = vsel %vm325_vm0, %v2794_v43, -inf  ;;  %v548_v11 = vsel %vm325_vm0, %v2797_v42, -inf  ;;  %4632 = vst [vmem:[#allocation40_spill] sm:$0xff] %v2834_v23  ;;  %4633 = vst [vmem:[#allocation41_spill] sm:$0xff] %v2837_v22  ;;  %v2844_v17 = vld [vmem:[%s2369_s16 + $0x3d0] sm:$0xff]  ;;  %v2847_v16 = vld [vmem:[%s2369_s16 + $0x3d8] sm:$0xff] }
  0x4d   : > { %v547_v1 = vmax.f32 %v539_v5, %v546_v15  ;;  %v549_v0 = vmax.f32 %v541_v4, %v548_v11  ;;  %v550_v10 = vsel %vm325_vm0, %v2804_v37, -inf  ;;  %v552_v9 = vsel %vm325_vm0, %v2807_v36, -inf  ;;  %4634 = vst [vmem:[#allocation42_spill] sm:$0xff] %v2844_v17  ;;  %4635 = vst [vmem:[#allocation43_spill] sm:$0xff] %v2847_v16  ;;  %v2854_v4 = vld [vmem:[%s2369_s16 + $0x3e0] sm:$0xff]  ;;  %v2857_v15 = vld [vmem:[%s2369_s16 + $0x3e8] sm:$0xff] }
  0x4e   : > { %v551_v43 = vmax.f32 %v543_v3, %v550_v10  ;;  %v553_v42 = vmax.f32 %v545_v2, %v552_v9  ;;  %v554_v48 = vsel %vm325_vm0, %v2814_v31, -inf  ;;  %v556_v5 = vsel %vm325_vm0, %v2817_v30, -inf  ;;  %4636 = vst [vmem:[#allocation44_spill] sm:$0xff] %v2854_v4  ;;  %v2864_v3 = vld [vmem:[%s2369_s16 + $0x3f0] sm:$0xff]  ;;  %v2867_v2 = vld [vmem:[%s2369_s16 + $0x3f8] sm:$0xff] }
  0x4f   : > { %v555_v11 = vmax.f32 %v547_v1, %v554_v48  ;;  %v557_v37 = vmax.f32 %v549_v0, %v556_v5  ;;  %v558_v36 = vsel %vm325_vm0, %v2824_v29, -inf  ;;  %v560_v49 = vsel %vm325_vm0, %v2827_v24, -inf  ;;  %4637 = vst [vmem:[#allocation45_spill] sm:$0xff] %v2864_v3 }
  0x50   : > { %v559_v10 = vmax.f32 %v551_v43, %v558_v36  ;;  %v561_v9 = vmax.f32 %v553_v42, %v560_v49  ;;  %v562_v30 = vsel %vm325_vm0, %v2834_v23, -inf  ;;  %v564_v31 = vsel %vm325_vm0, %v2837_v22, -inf }
  0x51   : > { %v563_v1 = vmax.f32 %v555_v11, %v562_v30  ;;  %v565_v0 = vmax.f32 %v557_v37, %v564_v31  ;;  %v566_v48 = vsel %vm325_vm0, %v2844_v17, -inf  ;;  %v568_v5 = vsel %vm325_vm0, %v2847_v16, -inf }
  0x52   : > { %v567_v24 = vmax.f32 %v559_v10, %v566_v48  ;;  %v569_v29 = vmax.f32 %v561_v9, %v568_v5  ;;  %v570_v43 = vsel %vm325_vm0, %v2854_v4, -inf  ;;  %v572_v49 = vsel %vm325_vm0, %v2857_v15, -inf }
  0x53   : > { %v574_v42 = vsel %vm325_vm0, %v2864_v3, -inf  ;;  %v576_v37 = vsel %vm325_vm0, %v2867_v2, -inf  ;;  %v571_v36 = vmax.f32 %v563_v1, %v570_v43  ;;  %v573_v31 = vmax.f32 %v565_v0, %v572_v49  ;;  %v4672_v0 = vld [vmem:[#allocation33_spill] sm:$0xff]  ;;  %v4674_v43 = vld [vmem:[#allocation34_spill] sm:$0xff]  ;;  %v4676_v49 = vld [vmem:[#allocation35_spill] sm:$0xff] }
  0x54   : > { %v575_v30 = vmax.f32 %v567_v24, %v574_v42  ;;  %v577_v11 = vmax.f32 %v569_v29, %v576_v37  ;;  %v4678_v37 = vld [vmem:[#allocation36_spill] sm:$0xff] }
  0x55   : > { %v578_v17 = vmax.f32 %v571_v36, %v573_v31  ;;  %v4680_v31 = vld [vmem:[#allocation37_spill] sm:$0xff] }
  0x56   : > { %v579_v16 = vmax.f32 %v575_v30, %v577_v11  ;;  %v4682_v11 = vld [vmem:[#allocation38_spill] sm:$0xff] }
  0x58   : > { %v580_v10 = vmax.f32 %v578_v17, %v579_v16  ;;  %v4666_v17 = vld [vmem:[#allocation30_spill] sm:$0xff]  ;;  %v4668_v16 = vld [vmem:[#allocation31_spill] sm:$0xff] }
  0x5a   : > { %v581_v9 = vrot.slane %v580_v10, 4 }
  0x5c   : > { %v582_v48 = vmax.f32 %v580_v10, %v581_v9  ;;  %v4684_v9 = vld [vmem:[#allocation39_spill] sm:$0xff] }
  0x5e   : > { %v583_v5 = vrot.slane %v582_v48, 2 }
  0x60   : > { %v584_v4 = vmax.f32 %v582_v48, %v583_v5  ;;  %v4686_v5 = vld [vmem:[#allocation40_spill] sm:$0xff] }
  0x62   : > { %v585_v22 = vrot.slane %v584_v4, 1 }
  0x64   : > { %v2885_v23 = vmax.f32 %v584_v4, %v585_v22  ;;  %v4670_v4 = vld [vmem:[#allocation32_spill] sm:$0xff] }
  0x66   : > { %v2889_v3 = vsub.f32 %v2590_v40, %v2885_v23  ;;  %v2893_v1 = vsub.f32 %v2593_v41, %v2885_v23  ;;  %v2897_v29 = vsub.f32 %v2598_v50, %v2885_v23  ;;  %v2901_v24 = vsub.f32 %v2601_v51, %v2885_v23 }
  0x67   : > { %v2905_v22 = vsub.f32 %v2606_v58, %v2885_v23  ;;  %v2909_v40 = vsub.f32 %v2609_v59, %v2885_v23  ;;  %v2913_v41 = vsub.f32 %v2614_v8, %v2885_v23  ;;  %v2917_v50 = vsub.f32 %v2617_v12, %v2885_v23 }
  0x68   : > { %4638 = vst [vmem:[#allocation46_spill] sm:$0xff] %v2889_v3  ;;  %4639 = vst [vmem:[#allocation47_spill] sm:$0xff] %v2893_v1  ;;  %v2921_v51 = vsub.f32 %v2624_v20, %v2885_v23  ;;  %v2925_v58 = vsub.f32 %v2627_v21, %v2885_v23  ;;  %v2929_v59 = vsub.f32 %v2634_v32, %v2885_v23 }
  0x69   : > { %4640 = vst [vmem:[#allocation48_spill] sm:$0xff] %v2897_v29  ;;  %4641 = vst [vmem:[#allocation49_spill] sm:$0xff] %v2901_v24  ;;  %v2933_v8 = vsub.f32 %v2637_v33, %v2885_v23  ;;  %v2937_v12 = vsub.f32 %v2644_v44, %v2885_v23  ;;  %v2941_v20 = vsub.f32 %v2647_v45, %v2885_v23 }
  0x6a   : > { %4642 = vst [vmem:[#allocation50_spill] sm:$0xff] %v2905_v22  ;;  %4643 = vst [vmem:[#allocation51_spill] sm:$0xff] %v2909_v40  ;;  %v2945_v21 = vsub.f32 %v2654_v56, %v2885_v23  ;;  %v2949_v32 = vsub.f32 %v2657_v57, %v2885_v23  ;;  %v2953_v33 = vsub.f32 %v2664_v13, %v2885_v23 }
  0x6b   : > { %4644 = vst [vmem:[#allocation52_spill] sm:$0xff] %v2913_v41  ;;  %4645 = vst [vmem:[#allocation53_spill] sm:$0xff] %v2917_v50  ;;  %v2957_v44 = vsub.f32 %v2667_v14, %v2885_v23  ;;  %v2961_v45 = vsub.f32 %v2674_v27, %v2885_v23  ;;  %v2965_v56 = vsub.f32 %v2677_v28, %v2885_v23 }
  0x6c   : > { %4646 = vst [vmem:[#allocation54_spill] sm:$0xff] %v2921_v51  ;;  %4647 = vst [vmem:[#allocation55_spill] sm:$0xff] %v2925_v58  ;;  %v2969_v57 = vsub.f32 %v2684_v46, %v2885_v23  ;;  %v2973_v13 = vsub.f32 %v2687_v47, %v2885_v23  ;;  %v2977_v14 = vsub.f32 %v2694_v6, %v2885_v23 }
  0x6d   : > { %4648 = vst [vmem:[#allocation56_spill] sm:$0xff] %v2929_v59  ;;  %4649 = vst [vmem:[#allocation57_spill] sm:$0xff] %v2933_v8  ;;  %v2981_v27 = vsub.f32 %v2697_v7, %v2885_v23  ;;  %v2985_v28 = vsub.f32 %v2704_v38, %v2885_v23  ;;  %v2989_v46 = vsub.f32 %v2707_v39, %v2885_v23 }
  0x6e   : > { %4650 = vst [vmem:[#allocation58_spill] sm:$0xff] %v2937_v12  ;;  %4651 = vst [vmem:[#allocation59_spill] sm:$0xff] %v2941_v20  ;;  %v2993_v47 = vsub.f32 %v2714_v62, %v2885_v23  ;;  %v2997_v6 = vsub.f32 %v2717_v63, %v2885_v23  ;;  %v3001_v7 = vsub.f32 %v2724_v18, %v2885_v23 }
  0x6f   : > { %4652 = vst [vmem:[#allocation60_spill] sm:$0xff] %v2945_v21  ;;  %4653 = vst [vmem:[#allocation61_spill] sm:$0xff] %v2949_v32  ;;  %v3005_v38 = vsub.f32 %v2727_v19, %v2885_v23  ;;  %v3009_v39 = vsub.f32 %v2734_v34, %v2885_v23  ;;  %v3013_v62 = vsub.f32 %v2737_v35, %v2885_v23 }
  0x70   : > { %4654 = vst [vmem:[#allocation62_spill] sm:$0xff] %v2953_v33  ;;  %4655 = vst [vmem:[#allocation63_spill] sm:$0xff] %v2957_v44  ;;  %v3017_v63 = vsub.f32 %v2744_v52, %v2885_v23  ;;  %v3021_v18 = vsub.f32 %v2747_v53, %v2885_v23  ;;  %v3025_v19 = vsub.f32 %v2754_v25, %v2885_v23 }
  0x71   : > { %4656 = vst [vmem:[#allocation64_spill] sm:$0xff] %v2961_v45  ;;  %4657 = vst [vmem:[#allocation65_spill] sm:$0xff] %v2965_v56  ;;  %v3029_v34 = vsub.f32 %v2757_v26, %v2885_v23  ;;  %v3033_v35 = vsub.f32 %v2764_v61, %v2885_v23  ;;  %v3037_v52 = vsub.f32 %v2767_v60, %v2885_v23 }
  0x72   : > { %4658 = vst [vmem:[#allocation66_spill] sm:$0xff] %v2977_v14  ;;  %4659 = vst [vmem:[#allocation67_spill] sm:$0xff] %v2989_v46  ;;  %v3041_v53 = vsub.f32 %v2774_v55, %v2885_v23  ;;  %v3045_v25 = vsub.f32 %v2777_v54, %v2885_v23  ;;  %v3049_v26 = vsub.f32 %v4666_v17, %v2885_v23 }
  0x73   : > { %4660 = vst [vmem:[#allocation68_spill] sm:$0xff] %v3025_v19  ;;  %4661 = vst [vmem:[#allocation69_spill] sm:$0xff] %v3029_v34  ;;  %v3053_v61 = vsub.f32 %v4668_v16, %v2885_v23  ;;  %v3057_v60 = vsub.f32 %v4670_v4, %v2885_v23  ;;  %v3061_v55 = vsub.f32 %v4672_v0, %v2885_v23  ;;  %v4688_v16 = vld [vmem:[#allocation41_spill] sm:$0xff]  ;;  %v4690_v0 = vld [vmem:[#allocation42_spill] sm:$0xff] }
  0x74   : > { %4662 = vst [vmem:[#allocation70_spill] sm:$0xff] %v3033_v35  ;;  %4663 = vst [vmem:[#allocation71_spill] sm:$0xff] %v3037_v52  ;;  %v3065_v54 = vsub.f32 %v4674_v43, %v2885_v23  ;;  %v3069_v42 = vsub.f32 %v4676_v49, %v2885_v23  ;;  %v3073_v36 = vsub.f32 %v4678_v37, %v2885_v23  ;;  %v4692_v49 = vld [vmem:[#allocation43_spill] sm:$0xff] }
  0x75   : > { %4664 = vst [vmem:[#allocation72_spill] sm:$0xff] %v3041_v53  ;;  %4665 = vst [vmem:[#allocation73_spill] sm:$0xff] %v3045_v25  ;;  %v3077_v30 = vsub.f32 %v4680_v31, %v2885_v23  ;;  %v3081_v10 = vsub.f32 %v4682_v11, %v2885_v23  ;;  %v3085_v48 = vsub.f32 %v4684_v9, %v2885_v23  ;;  %v4694_v31 = vld [vmem:[#allocation44_spill] sm:$0xff] }
  0x76   : > { %4667 = vst [vmem:[#allocation30_spill] sm:$0xff] %v3049_v26  ;;  %4669 = vst [vmem:[#allocation31_spill] sm:$0xff] %v3053_v61  ;;  %v3089_v17 = vsub.f32 %v4686_v5, %v2885_v23  ;;  %v3093_v4 = vsub.f32 %v4688_v16, %v2885_v23  ;;  %v3097_v43 = vsub.f32 %v4690_v0, %v2885_v23  ;;  %v4697_v5 = vld [vmem:[#allocation45_spill] sm:$0xff]  ;;  %v4716_v26 = vld [vmem:[#allocation14_spill] sm:$0xff] }
  0x77   : > { %4671 = vst [vmem:[#allocation32_spill] sm:$0xff] %v3057_v60  ;;  %4673 = vst [vmem:[#allocation33_spill] sm:$0xff] %v3061_v55  ;;  %v3101_v37 = vsub.f32 %v4692_v49, %v2885_v23  ;;  %v3105_v11 = vsub.f32 %v4694_v31, %v2885_v23  ;;  %v3109_v9 = vsub.f32 %v2857_v15, %v2885_v23 }
  0x78   : > { %4675 = vst [vmem:[#allocation34_spill] sm:$0xff] %v3065_v54  ;;  %4677 = vst [vmem:[#allocation35_spill] sm:$0xff] %v3069_v42  ;;  %v3113_v16 = vsub.f32 %v4697_v5, %v2885_v23  ;;  %v3117_v0 = vsub.f32 %v2867_v2, %v2885_v23  ;;  %v3179_v25 = vsub.f32 %v4716_v26, %v2885_v23 }
  0x79   : > { %4679 = vst [vmem:[#allocation36_spill] sm:$0xff] %v3073_v36  ;;  %4681 = vst [vmem:[#allocation37_spill] sm:$0xff] %v3077_v30 }
  0x7a   : > { %4683 = vst [vmem:[#allocation38_spill] sm:$0xff] %v3081_v10  ;;  %4685 = vst [vmem:[#allocation39_spill] sm:$0xff] %v3085_v48 }
  0x7b   : > { %4687 = vst [vmem:[#allocation40_spill] sm:$0xff] %v3089_v17  ;;  %4689 = vst [vmem:[#allocation41_spill] sm:$0xff] %v3093_v4 }
  0x7c   : > { %4691 = vst [vmem:[#allocation42_spill] sm:$0xff] %v3097_v43  ;;  %4693 = vst [vmem:[#allocation43_spill] sm:$0xff] %v3101_v37  ;;  %v4700_v43 = vld [vmem:[#allocation2_spill] sm:$0xff]  ;;  %v4701_v37 = vld [vmem:[#allocation3_spill] sm:$0xff] }
  0x7d   : > { %4695 = vst [vmem:[#allocation44_spill] sm:$0xff] %v3105_v11  ;;  %4696 = vst [vmem:[#allocation74_spill] sm:$0xff] %v3109_v9  ;;  %v3121_v49 = vsub.f32 %v4700_v43, %v2885_v23  ;;  %v3125_v31 = vsub.f32 %v4701_v37, %v2885_v23  ;;  %v4702_v11 = vld [vmem:[#allocation4_spill] sm:$0xff]  ;;  %v4703_v9 = vld [vmem:[#allocation5_spill] sm:$0xff] }
  0x7e   : > { %4698 = vst [vmem:[#allocation45_spill] sm:$0xff] %v3113_v16  ;;  %4699 = vst [vmem:[#allocation75_spill] sm:$0xff] %v3117_v0  ;;  %v3129_v15 = vsub.f32 %v4702_v11, %v2885_v23  ;;  %v3133_v5 = vsub.f32 %v4703_v9, %v2885_v23  ;;  %v4704_v0 = vld [vmem:[#allocation6_spill] sm:$0xff]  ;;  %v4705_v37 = vld [vmem:[#allocation7_spill] sm:$0xff] }
  0x7f   : > { %v715_v16 = vmul.f32 1.442695, %v3121_v49  ;;  %v717_v2 = vmul.f32 1.442695, %v3125_v31  ;;  %v3139_v43 = vsub.f32 %v4704_v0, %v2885_v23  ;;  %v3144_v17 = vsub.f32 %v4705_v37, %v2885_v23  ;;  %v4706_v9 = vld [vmem:[#allocation8_spill] sm:$0xff]  ;;  %v4707_v0 = vld [vmem:[#allocation9_spill] sm:$0xff] }
  0x80   : > { %v719_v4 = vmul.f32 1.442695, %v3129_v15  ;;  %v721_v11 = vmul.f32 1.442695, %v3133_v5  ;;  %v3149_v48 = vsub.f32 %v4706_v9, %v2885_v23  ;;  %v3154_v30 = vsub.f32 %v4707_v0, %v2885_v23  ;;  %v4708_v37 = vld [vmem:[#allocation10_spill] sm:$0xff]  ;;  %v4710_v9 = vld [vmem:[#allocation11_spill] sm:$0xff] }
  0x81   : > { %2005 = vpow2.f32 %v715_v16  ;;  %v723_v10 = vmul.f32 1.442695, %v3139_v43  ;;  %v725_v36 = vmul.f32 1.442695, %v3144_v17  ;;  %v3159_v16 = vsub.f32 %v4708_v37, %v2885_v23  ;;  %v4712_v0 = vld [vmem:[#allocation12_spill] sm:$0xff]  ;;  %4717 = vst [vmem:[#allocation6_spill] sm:$0xff] %v3179_v25 }
  0x82   : > { %2007 = vpow2.f32 %v717_v2  ;;  %v727_v2 = vmul.f32 1.442695, %v3149_v48  ;;  %v3164_v42 = vsub.f32 %v4710_v9, %v2885_v23 }
  0x83   : > { %2009 = vpow2.f32 %v719_v4  ;;  %4709 = vst [vmem:[#allocation2_spill] sm:$0xff] %v3159_v16  ;;  %v729_v4 = vmul.f32 1.442695, %v3154_v30  ;;  %v731_v55 = vmul.f32 1.442695, %v3159_v16 }
  0x84   : > { %2011 = vpow2.f32 %v721_v11  ;;  %4711 = vst [vmem:[#allocation3_spill] sm:$0xff] %v3164_v42  ;;  %v3169_v11 = vsub.f32 %v4712_v0, %v2885_v23  ;;  %v733_v9 = vmul.f32 1.442695, %v3164_v42 }
  0x85   : > { %2013 = vpow2.f32 %v723_v10  ;;  %v4714_v10 = vld [vmem:[#allocation13_spill] sm:$0xff] }
  0x86   : > { %2015 = vpow2.f32 %v725_v36  ;;  %4713 = vst [vmem:[#allocation4_spill] sm:$0xff] %v3169_v11  ;;  %v3174_v61 = vsub.f32 %v4714_v10, %v2885_v23  ;;  %v735_v0 = vmul.f32 1.442695, %v3169_v11  ;;  %v4718_v10 = vld [vmem:[#allocation15_spill] sm:$0xff]  ;;  %v4720_v11 = vld [vmem:[#allocation16_spill] sm:$0xff] }
  0x87   : > { %2017 = vpow2.f32 %v727_v2  ;;  %v3193_v19 = vsub.f32 %v4720_v11, %v2885_v23  ;;  %v4724_v11 = vld [vmem:[#allocation18_spill] sm:$0xff] }
  0x88   : > { %4715 = vst [vmem:[#allocation5_spill] sm:$0xff] %v3174_v61  ;;  %2019 = vpow2.f32 %v729_v4  ;;  %v3187_v4 = vsub.f32 %v4718_v10, %v2885_v23  ;;  %v737_v42 = vmul.f32 1.442695, %v3174_v61  ;;  %v4722_v10 = vld [vmem:[#allocation17_spill] sm:$0xff] }
  0x89   : > { %2021 = vpow2.f32 %v731_v55  ;;  %4721 = vst [vmem:[#allocation8_spill] sm:$0xff] %v3193_v19 }
  0x8a   : > { %4719 = vst [vmem:[#allocation7_spill] sm:$0xff] %v3187_v4  ;;  %2023 = vpow2.f32 %v733_v9  ;;  %v3199_v9 = vsub.f32 %v4722_v10, %v2885_v23  ;;  %v4726_v10 = vld [vmem:[#allocation19_spill] sm:$0xff] }
  0x8b   : > { %v2006_v54 = vpop.eup %2005  ;;  %2025 = vpow2.f32 %v735_v0  ;;  %v3205_v0 = vsub.f32 %v4724_v11, %v2885_v23  ;;  %v4728_v11 = vld [vmem:[#allocation20_spill] sm:$0xff] }
  0x8c   : > { %v2008_v37 = vpop.eup %2007  ;;  %v971_v2 = vsel %vm325_vm0, %v2006_v54, 0.0  ;;  %v739_v54 = vmul.f32 1.442695, %v3179_v25  ;;  %4723 = vst [vmem:[#allocation9_spill] sm:$0xff] %v3199_v9  ;;  %2027 = vpow2.f32 %v737_v42  ;;  %v3211_v42 = vsub.f32 %v4726_v10, %v2885_v23  ;;  %v4730_v10 = vld [vmem:[#allocation21_spill] sm:$0xff] }
  0x8d   : > { %v2010_v60 = vpop.eup %2009  ;;  %v972_v53 = vsel %vm325_vm0, %v2008_v37, 0.0  ;;  %4725 = vst [vmem:[#allocation10_spill] sm:$0xff] %v3205_v0 }
  0x8e   : > { %v2012_v36 = vpop.eup %2011  ;;  %v974_v52 = vsel %vm325_vm0, %v2010_v60, 0.0  ;;  %v973_v34 = vadd.f32 %v972_v53, %v971_v2  ;;  %v741_v53 = vmul.f32 1.442695, %v3187_v4  ;;  %2029 = vpow2.f32 %v739_v54  ;;  %4727 = vst [vmem:[#allocation11_spill] sm:$0xff] %v3211_v42 }
  0x8f   : > { %v2014_v35 = vpop.eup %2013  ;;  %v976_v26 = vsel %vm325_vm0, %v2012_v36, 0.0  ;;  %v3217_v54 = vsub.f32 %v4728_v11, %v2885_v23  ;;  %v4732_v11 = vld [vmem:[#allocation22_spill] sm:$0xff] }
  0x90   : > { %v2016_v55 = vpop.eup %2015  ;;  %v975_v60 = vadd.f32 %v974_v52, %v973_v34  ;;  %v978_v37 = vsel %vm325_vm0, %v2014_v35, 0.0  ;;  %v743_v34 = vmul.f32 1.442695, %v3193_v19  ;;  %2031 = vpow2.f32 %v741_v53 }
  0x91   : > { %v2018_v16 = vpop.eup %2017  ;;  %v980_v2 = vsel %vm325_vm0, %v2016_v55, 0.0  ;;  %4729 = vst [vmem:[#allocation12_spill] sm:$0xff] %v3217_v54  ;;  %v3223_v53 = vsub.f32 %v4730_v10, %v2885_v23  ;;  %v4734_v10 = vld [vmem:[#allocation23_spill] sm:$0xff] }
  0x92   : > { %v977_v36 = vadd.f32 %v976_v26, %v975_v60  ;;  %v2020_v61 = vpop.eup %2019  ;;  %v982_v52 = vsel %vm325_vm0, %v2018_v16, 0.0  ;;  %v745_v26 = vmul.f32 1.442695, %v3199_v9  ;;  %2033 = vpow2.f32 %v743_v34 }
  0x93   : > { %v2022_v25 = vpop.eup %2021  ;;  %v984_v60 = vsel %vm325_vm0, %v2020_v61, 0.0  ;;  %4731 = vst [vmem:[#allocation13_spill] sm:$0xff] %v3223_v53  ;;  %v3229_v34 = vsub.f32 %v4732_v11, %v2885_v23  ;;  %v4736_v11 = vld [vmem:[#allocation24_spill] sm:$0xff] }
  0x94   : > { %v979_v35 = vadd.f32 %v978_v37, %v977_v36  ;;  %v2024_v4 = vpop.eup %2023  ;;  %v747_v37 = vmul.f32 1.442695, %v3205_v0  ;;  %v986_v36 = vsel %vm325_vm0, %v2022_v25, 0.0  ;;  %2035 = vpow2.f32 %v745_v26 }
  0x95   : > { %v2026_v19 = vpop.eup %2025  ;;  %4733 = vst [vmem:[#allocation14_spill] sm:$0xff] %v3229_v34  ;;  %v3235_v26 = vsub.f32 %v4734_v10, %v2885_v23  ;;  %v4738_v10 = vld [vmem:[#allocation25_spill] sm:$0xff] }
  0x96   : > { %v981_v55 = vadd.f32 %v980_v2, %v979_v35  ;;  %v749_v2 = vmul.f32 1.442695, %v3211_v42  ;;  %v988_v35 = vsel %vm325_vm0, %v2024_v4, 0.0  ;;  %v2028_v9 = vpop.eup %2027  ;;  %2037 = vpow2.f32 %v747_v37 }
  0x97   : > { %4735 = vst [vmem:[#allocation15_spill] sm:$0xff] %v3235_v26  ;;  %v3241_v37 = vsub.f32 %v4736_v11, %v2885_v23  ;;  %v4740_v11 = vld [vmem:[#allocation26_spill] sm:$0xff] }
  0x98   : > { %v983_v16 = vadd.f32 %v982_v52, %v981_v55  ;;  %v751_v52 = vmul.f32 1.442695, %v3217_v54  ;;  %v990_v55 = vsel %vm325_vm0, %v2026_v19, 0.0  ;;  %v2030_v0 = vpop.eup %2029  ;;  %2039 = vpow2.f32 %v749_v2 }
  0x99   : > { %4737 = vst [vmem:[#allocation16_spill] sm:$0xff] %v3241_v37  ;;  %v3247_v2 = vsub.f32 %v4738_v10, %v2885_v23  ;;  %v4742_v10 = vld [vmem:[#allocation27_spill] sm:$0xff] }
  0x9a   : > { %v985_v61 = vadd.f32 %v984_v60, %v983_v16  ;;  %v753_v60 = vmul.f32 1.442695, %v3223_v53  ;;  %v992_v16 = vsel %vm325_vm0, %v2028_v9, 0.0  ;;  %v2032_v42 = vpop.eup %2031  ;;  %2041 = vpow2.f32 %v751_v52 }
  0x9b   : > { %4739 = vst [vmem:[#allocation17_spill] sm:$0xff] %v3247_v2  ;;  %v3253_v52 = vsub.f32 %v4740_v11, %v2885_v23 }
  0x9c   : > { %v987_v25 = vadd.f32 %v986_v36, %v985_v61  ;;  %v755_v36 = vmul.f32 1.442695, %v3229_v34  ;;  %v994_v61 = vsel %vm325_vm0, %v2030_v0, 0.0  ;;  %v2034_v54 = vpop.eup %2033  ;;  %2043 = vpow2.f32 %v753_v60 }
  0x9d   : > { %4741 = vst [vmem:[#allocation18_spill] sm:$0xff] %v3253_v52  ;;  %v3259_v60 = vsub.f32 %v4742_v10, %v2885_v23 }
  0x9e   : > { %v989_v4 = vadd.f32 %v988_v35, %v987_v25  ;;  %v757_v35 = vmul.f32 1.442695, %v3235_v26  ;;  %v996_v25 = vsel %vm325_vm0, %v2032_v42, 0.0  ;;  %v2036_v53 = vpop.eup %2035  ;;  %2045 = vpow2.f32 %v755_v36  ;;  %v4744_v36 = vld [vmem:[#allocation28_spill] sm:$0xff] }
  0x9f   : > { %4743 = vst [vmem:[#allocation19_spill] sm:$0xff] %v3259_v60  ;;  %v3265_v26 = vsub.f32 %v4744_v36, %v2885_v23 }
  0xa0   : > { %v991_v19 = vadd.f32 %v990_v55, %v989_v4  ;;  %v759_v55 = vmul.f32 1.442695, %v3241_v37  ;;  %v998_v4 = vsel %vm325_vm0, %v2034_v54, 0.0  ;;  %v2038_v34 = vpop.eup %2037  ;;  %2047 = vpow2.f32 %v757_v35  ;;  %v4746_v35 = vld [vmem:[#allocation29_spill] sm:$0xff]  ;;  %v2303_v37 = vld [vmem:[%s2369_s16 + $0x220] sm:$0xff] }
  0xa1   : > { %4745 = vst [vmem:[#allocation20_spill] sm:$0xff] %v3265_v26  ;;  %v763_v54 = vmul.f32 1.442695, %v3253_v52 }
  0xa2   : > { %v993_v9 = vadd.f32 %v992_v16, %v991_v19  ;;  %v761_v16 = vmul.f32 1.442695, %v3247_v2  ;;  %v1000_v19 = vsel %vm325_vm0, %v2036_v53, 0.0  ;;  %v2040_v11 = vpop.eup %2039  ;;  %2049 = vpow2.f32 %v759_v55  ;;  %v2263_v55 = vld [vmem:[%s2369_s16 + $0xe0] sm:$0xff] }
  0xa3   : > { %v3271_v2 = vsub.f32 %v4746_v35, %v2885_v23  ;;  %v765_v53 = vmul.f32 1.442695, %v3259_v60  ;;  %v3277_v52 = vsub.f32 %v2263_v55, %v2885_v23 }
  0xa4   : > { %v995_v0 = vadd.f32 %v994_v61, %v993_v9  ;;  %v1002_v9 = vsel %vm325_vm0, %v2038_v34, 0.0  ;;  %v2042_v10 = vpop.eup %2041  ;;  %2051 = vpow2.f32 %v761_v16  ;;  %v767_v34 = vmul.f32 1.442695, %v3265_v26  ;;  %v2264_v16 = vld [vmem:[%s2369_s16 + $0xe8] sm:$0xff] }
  0xa5   : > { %4747 = vst [vmem:[#allocation21_spill] sm:$0xff] %v3271_v2  ;;  %4748 = vst [vmem:[#allocation22_spill] sm:$0xff] %v3277_v52  ;;  %2053 = vpow2.f32 %v763_v54  ;;  %v3283_v60 = vsub.f32 %v2264_v16, %v2885_v23  ;;  %v2265_v54 = vld [vmem:[%s2369_s16 + $0xf0] sm:$0xff] }
  0xa6   : > { %v997_v42 = vadd.f32 %v996_v25, %v995_v0  ;;  %v1004_v0 = vsel %vm325_vm0, %v2040_v11, 0.0  ;;  %v2044_v36 = vpop.eup %2043  ;;  %2055 = vpow2.f32 %v765_v53  ;;  %v3289_v26 = vsub.f32 %v2265_v54, %v2885_v23  ;;  %v2266_v53 = vld [vmem:[%s2369_s16 + $0xf8] sm:$0xff] }
  0xa7   : > { %4749 = vst [vmem:[#allocation23_spill] sm:$0xff] %v3283_v60  ;;  %2057 = vpow2.f32 %v767_v34  ;;  %v2267_v34 = vld [vmem:[%s2369_s16 + $0x100] sm:$0xff] }
  0xa8   : > { %v999_v61 = vadd.f32 %v998_v4, %v997_v42  ;;  %v1006_v42 = vsel %vm325_vm0, %v2042_v10, 0.0  ;;  %v2046_v35 = vpop.eup %2045  ;;  %4750 = vst [vmem:[#allocation24_spill] sm:$0xff] %v3289_v26 }
  0xaa   : > { %v1001_v25 = vadd.f32 %v1000_v19, %v999_v61  ;;  %v769_v19 = vmul.f32 1.442695, %v3271_v2  ;;  %v1008_v61 = vsel %vm325_vm0, %v2044_v36, 0.0  ;;  %v2048_v55 = vpop.eup %2047  ;;  %v3295_v2 = vsub.f32 %v2266_v53, %v2885_v23 }
  0xac   : > { %v1003_v4 = vadd.f32 %v1002_v9, %v1001_v25  ;;  %v771_v9 = vmul.f32 1.442695, %v3277_v52  ;;  %v1010_v25 = vsel %vm325_vm0, %v2046_v35, 0.0  ;;  %v2050_v16 = vpop.eup %2049  ;;  %4751 = vst [vmem:[#allocation25_spill] sm:$0xff] %v3295_v2  ;;  %2059 = vpow2.f32 %v769_v19  ;;  %v2268_v19 = vld [vmem:[%s2369_s16 + $0x108] sm:$0xff] }
  0xad   : > { %v3301_v52 = vsub.f32 %v2267_v34, %v2885_v23 }
  0xae   : > { %v1005_v11 = vadd.f32 %v1004_v0, %v1003_v4  ;;  %v773_v0 = vmul.f32 1.442695, %v3283_v60  ;;  %v1012_v4 = vsel %vm325_vm0, %v2048_v55, 0.0  ;;  %v2052_v54 = vpop.eup %2051  ;;  %2061 = vpow2.f32 %v771_v9  ;;  %v2269_v9 = vld [vmem:[%s2369_s16 + $0x110] sm:$0xff] }
  0xaf   : > { %4752 = vst [vmem:[#allocation26_spill] sm:$0xff] %v3301_v52  ;;  %v2054_v53 = vpop.eup %2053  ;;  %v3307_v60 = vsub.f32 %v2268_v19, %v2885_v23 }
  0xb0   : > { %v1007_v10 = vadd.f32 %v1006_v42, %v1005_v11  ;;  %v775_v42 = vmul.f32 1.442695, %v3289_v26  ;;  %v1014_v11 = vsel %vm325_vm0, %v2050_v16, 0.0  ;;  %2063 = vpow2.f32 %v773_v0  ;;  %v2056_v34 = vpop.eup %2055  ;;  %v2270_v0 = vld [vmem:[%s2369_s16 + $0x118] sm:$0xff] }
  0xb1   : > { %4753 = vst [vmem:[#allocation27_spill] sm:$0xff] %v3307_v60  ;;  %v3313_v26 = vsub.f32 %v2269_v9, %v2885_v23  ;;  %v2058_v19 = vpop.eup %2057 }
  0xb2   : > { %v1009_v36 = vadd.f32 %v1008_v61, %v1007_v10  ;;  %v777_v61 = vmul.f32 1.442695, %v3295_v2  ;;  %v1016_v10 = vsel %vm325_vm0, %v2052_v54, 0.0  ;;  %2065 = vpow2.f32 %v775_v42  ;;  %v2271_v42 = vld [vmem:[%s2369_s16 + $0x120] sm:$0xff] }
  0xb3   : > { %4754 = vst [vmem:[#allocation28_spill] sm:$0xff] %v3313_v26  ;;  %v3319_v2 = vsub.f32 %v2270_v0, %v2885_v23 }
  0xb4   : > { %v1011_v35 = vadd.f32 %v1010_v25, %v1009_v36  ;;  %v779_v25 = vmul.f32 1.442695, %v3301_v52  ;;  %v1018_v36 = vsel %vm325_vm0, %v2054_v53, 0.0  ;;  %2067 = vpow2.f32 %v777_v61  ;;  %v2272_v61 = vld [vmem:[%s2369_s16 + $0x128] sm:$0xff] }
  0xb5   : > { %4755 = vst [vmem:[#allocation29_spill] sm:$0xff] %v3319_v2  ;;  %v3325_v52 = vsub.f32 %v2271_v42, %v2885_v23 }
  0xb6   : > { %v1013_v55 = vadd.f32 %v1012_v4, %v1011_v35  ;;  %v781_v4 = vmul.f32 1.442695, %v3307_v60  ;;  %v1020_v35 = vsel %vm325_vm0, %v2056_v34, 0.0  ;;  %v2060_v9 = vpop.eup %2059  ;;  %2069 = vpow2.f32 %v779_v25  ;;  %v2273_v25 = vld [vmem:[%s2369_s16 + $0x130] sm:$0xff] }
  0xb7   : > { %4756 = vst [vmem:[#allocation76_spill] sm:$0xff] %v3325_v52  ;;  %v3331_v60 = vsub.f32 %v2272_v61, %v2885_v23 }
  0xb8   : > { %v1015_v16 = vadd.f32 %v1014_v11, %v1013_v55  ;;  %v783_v11 = vmul.f32 1.442695, %v3313_v26  ;;  %v1022_v55 = vsel %vm325_vm0, %v2058_v19, 0.0  ;;  %v2062_v0 = vpop.eup %2061  ;;  %2071 = vpow2.f32 %v781_v4  ;;  %v2274_v4 = vld [vmem:[%s2369_s16 + $0x138] sm:$0xff] }
  0xb9   : > { %4757 = vst [vmem:[#allocation77_spill] sm:$0xff] %v3331_v60  ;;  %v3337_v26 = vsub.f32 %v2273_v25, %v2885_v23 }
  0xba   : > { %v1017_v54 = vadd.f32 %v1016_v10, %v1015_v16  ;;  %v785_v10 = vmul.f32 1.442695, %v3319_v2  ;;  %v1024_v16 = vsel %vm325_vm0, %v2060_v9, 0.0  ;;  %v2064_v42 = vpop.eup %2063  ;;  %2073 = vpow2.f32 %v783_v11  ;;  %v2275_v11 = vld [vmem:[%s2369_s16 + $0x140] sm:$0xff] }
  0xbb   : > { %4758 = vst [vmem:[#allocation78_spill] sm:$0xff] %v3337_v26  ;;  %v3343_v2 = vsub.f32 %v2274_v4, %v2885_v23 }
  0xbc   : > { %v1019_v53 = vadd.f32 %v1018_v36, %v1017_v54  ;;  %v787_v36 = vmul.f32 1.442695, %v3325_v52  ;;  %v1026_v54 = vsel %vm325_vm0, %v2062_v0, 0.0  ;;  %v2066_v61 = vpop.eup %2065  ;;  %2075 = vpow2.f32 %v785_v10  ;;  %v2276_v10 = vld [vmem:[%s2369_s16 + $0x148] sm:$0xff] }
  0xbd   : > { %4759 = vst [vmem:[#allocation79_spill] sm:$0xff] %v3343_v2  ;;  %v3349_v52 = vsub.f32 %v2275_v11, %v2885_v23 }
  0xbe   : > { %v1021_v34 = vadd.f32 %v1020_v35, %v1019_v53  ;;  %v789_v35 = vmul.f32 1.442695, %v3331_v60  ;;  %v1028_v53 = vsel %vm325_vm0, %v2064_v42, 0.0  ;;  %v2068_v25 = vpop.eup %2067  ;;  %2077 = vpow2.f32 %v787_v36  ;;  %v2277_v36 = vld [vmem:[%s2369_s16 + $0x150] sm:$0xff] }
  0xbf   : > { %4760 = vst [vmem:[#allocation80_spill] sm:$0xff] %v3349_v52  ;;  %v3355_v60 = vsub.f32 %v2276_v10, %v2885_v23 }
  0xc0   : > { %v1023_v19 = vadd.f32 %v1022_v55, %v1021_v34  ;;  %v791_v55 = vmul.f32 1.442695, %v3337_v26  ;;  %v1030_v34 = vsel %vm325_vm0, %v2066_v61, 0.0  ;;  %v2070_v4 = vpop.eup %2069  ;;  %2079 = vpow2.f32 %v789_v35  ;;  %v2278_v35 = vld [vmem:[%s2369_s16 + $0x158] sm:$0xff] }
  0xc1   : > { %4761 = vst [vmem:[#allocation81_spill] sm:$0xff] %v3355_v60  ;;  %v3361_v26 = vsub.f32 %v2277_v36, %v2885_v23 }
  0xc2   : > { %v1025_v9 = vadd.f32 %v1024_v16, %v1023_v19  ;;  %v793_v16 = vmul.f32 1.442695, %v3343_v2  ;;  %v1032_v19 = vsel %vm325_vm0, %v2068_v25, 0.0  ;;  %v2072_v11 = vpop.eup %2071  ;;  %2081 = vpow2.f32 %v791_v55  ;;  %v2279_v55 = vld [vmem:[%s2369_s16 + $0x160] sm:$0xff] }
  0xc3   : > { %4762 = vst [vmem:[#allocation82_spill] sm:$0xff] %v3361_v26  ;;  %v3367_v2 = vsub.f32 %v2278_v35, %v2885_v23 }
  0xc4   : > { %v1027_v0 = vadd.f32 %v1026_v54, %v1025_v9  ;;  %v795_v54 = vmul.f32 1.442695, %v3349_v52  ;;  %v1034_v9 = vsel %vm325_vm0, %v2070_v4, 0.0  ;;  %v2074_v10 = vpop.eup %2073  ;;  %2083 = vpow2.f32 %v793_v16  ;;  %v2280_v16 = vld [vmem:[%s2369_s16 + $0x168] sm:$0xff] }
  0xc5   : > { %4763 = vst [vmem:[#allocation83_spill] sm:$0xff] %v3367_v2  ;;  %v3373_v52 = vsub.f32 %v2279_v55, %v2885_v23 }
  0xc6   : > { %v1029_v42 = vadd.f32 %v1028_v53, %v1027_v0  ;;  %v797_v53 = vmul.f32 1.442695, %v3355_v60  ;;  %v1036_v0 = vsel %vm325_vm0, %v2072_v11, 0.0  ;;  %v2076_v36 = vpop.eup %2075  ;;  %2085 = vpow2.f32 %v795_v54  ;;  %v2281_v54 = vld [vmem:[%s2369_s16 + $0x170] sm:$0xff] }
  0xc7   : > { %4764 = vst [vmem:[#allocation84_spill] sm:$0xff] %v3373_v52  ;;  %v3379_v60 = vsub.f32 %v2280_v16, %v2885_v23 }
  0xc8   : > { %v1031_v61 = vadd.f32 %v1030_v34, %v1029_v42  ;;  %v799_v34 = vmul.f32 1.442695, %v3361_v26  ;;  %v1038_v42 = vsel %vm325_vm0, %v2074_v10, 0.0  ;;  %v2078_v35 = vpop.eup %2077  ;;  %2087 = vpow2.f32 %v797_v53  ;;  %v2282_v53 = vld [vmem:[%s2369_s16 + $0x178] sm:$0xff] }
  0xc9   : > { %4765 = vst [vmem:[#allocation85_spill] sm:$0xff] %v3379_v60  ;;  %v3385_v26 = vsub.f32 %v2281_v54, %v2885_v23 }
  0xca   : > { %v1033_v25 = vadd.f32 %v1032_v19, %v1031_v61  ;;  %v801_v19 = vmul.f32 1.442695, %v3367_v2  ;;  %v1040_v61 = vsel %vm325_vm0, %v2076_v36, 0.0  ;;  %v2080_v55 = vpop.eup %2079  ;;  %2089 = vpow2.f32 %v799_v34  ;;  %v2283_v34 = vld [vmem:[%s2369_s16 + $0x180] sm:$0xff] }
  0xcb   : > { %4766 = vst [vmem:[#allocation86_spill] sm:$0xff] %v3385_v26  ;;  %v3391_v2 = vsub.f32 %v2282_v53, %v2885_v23 }
  0xcc   : > { %v1035_v4 = vadd.f32 %v1034_v9, %v1033_v25  ;;  %v803_v9 = vmul.f32 1.442695, %v3373_v52  ;;  %v1042_v25 = vsel %vm325_vm0, %v2078_v35, 0.0  ;;  %v2082_v16 = vpop.eup %2081  ;;  %2091 = vpow2.f32 %v801_v19  ;;  %v2284_v19 = vld [vmem:[%s2369_s16 + $0x188] sm:$0xff] }
  0xcd   : > { %4767 = vst [vmem:[#allocation87_spill] sm:$0xff] %v3391_v2  ;;  %v3397_v52 = vsub.f32 %v2283_v34, %v2885_v23 }
  0xce   : > { %v1037_v11 = vadd.f32 %v1036_v0, %v1035_v4  ;;  %v805_v0 = vmul.f32 1.442695, %v3379_v60  ;;  %v1044_v4 = vsel %vm325_vm0, %v2080_v55, 0.0  ;;  %v2084_v54 = vpop.eup %2083  ;;  %2093 = vpow2.f32 %v803_v9  ;;  %v2285_v9 = vld [vmem:[%s2369_s16 + $0x190] sm:$0xff] }
  0xcf   : > { %4768 = vst [vmem:[#allocation88_spill] sm:$0xff] %v3397_v52  ;;  %v3403_v60 = vsub.f32 %v2284_v19, %v2885_v23 }
  0xd0   : > { %v1039_v10 = vadd.f32 %v1038_v42, %v1037_v11  ;;  %v807_v42 = vmul.f32 1.442695, %v3385_v26  ;;  %v1046_v11 = vsel %vm325_vm0, %v2082_v16, 0.0  ;;  %v2086_v53 = vpop.eup %2085  ;;  %2095 = vpow2.f32 %v805_v0  ;;  %v2286_v0 = vld [vmem:[%s2369_s16 + $0x198] sm:$0xff] }
  0xd1   : > { %4769 = vst [vmem:[#allocation89_spill] sm:$0xff] %v3403_v60  ;;  %v3409_v26 = vsub.f32 %v2285_v9, %v2885_v23 }
  0xd2   : > { %v1041_v36 = vadd.f32 %v1040_v61, %v1039_v10  ;;  %v809_v61 = vmul.f32 1.442695, %v3391_v2  ;;  %v1048_v10 = vsel %vm325_vm0, %v2084_v54, 0.0  ;;  %v2088_v34 = vpop.eup %2087  ;;  %2097 = vpow2.f32 %v807_v42  ;;  %v2287_v42 = vld [vmem:[%s2369_s16 + $0x1a0] sm:$0xff] }
  0xd3   : > { %4770 = vst [vmem:[#allocation90_spill] sm:$0xff] %v3409_v26  ;;  %v3415_v2 = vsub.f32 %v2286_v0, %v2885_v23 }
  0xd4   : > { %v1043_v35 = vadd.f32 %v1042_v25, %v1041_v36  ;;  %v811_v25 = vmul.f32 1.442695, %v3397_v52  ;;  %v1050_v36 = vsel %vm325_vm0, %v2086_v53, 0.0  ;;  %v2090_v19 = vpop.eup %2089  ;;  %2099 = vpow2.f32 %v809_v61  ;;  %v2288_v61 = vld [vmem:[%s2369_s16 + $0x1a8] sm:$0xff] }
  0xd5   : > { %4771 = vst [vmem:[#allocation91_spill] sm:$0xff] %v3415_v2  ;;  %v3421_v52 = vsub.f32 %v2287_v42, %v2885_v23 }
  0xd6   : > { %v1045_v55 = vadd.f32 %v1044_v4, %v1043_v35  ;;  %v813_v4 = vmul.f32 1.442695, %v3403_v60  ;;  %v1052_v35 = vsel %vm325_vm0, %v2088_v34, 0.0  ;;  %v2092_v9 = vpop.eup %2091  ;;  %2101 = vpow2.f32 %v811_v25  ;;  %v2289_v25 = vld [vmem:[%s2369_s16 + $0x1b0] sm:$0xff] }
  0xd7   : > { %4772 = vst [vmem:[#allocation92_spill] sm:$0xff] %v3421_v52  ;;  %v3427_v60 = vsub.f32 %v2288_v61, %v2885_v23 }
  0xd8   : > { %v1047_v16 = vadd.f32 %v1046_v11, %v1045_v55  ;;  %v815_v11 = vmul.f32 1.442695, %v3409_v26  ;;  %v1054_v55 = vsel %vm325_vm0, %v2090_v19, 0.0  ;;  %v2094_v0 = vpop.eup %2093  ;;  %2103 = vpow2.f32 %v813_v4  ;;  %v2290_v4 = vld [vmem:[%s2369_s16 + $0x1b8] sm:$0xff] }
  0xd9   : > { %4773 = vst [vmem:[#allocation93_spill] sm:$0xff] %v3427_v60  ;;  %v3433_v26 = vsub.f32 %v2289_v25, %v2885_v23 }
  0xda   : > { %v1049_v54 = vadd.f32 %v1048_v10, %v1047_v16  ;;  %v817_v10 = vmul.f32 1.442695, %v3415_v2  ;;  %v1056_v16 = vsel %vm325_vm0, %v2092_v9, 0.0  ;;  %v2096_v42 = vpop.eup %2095  ;;  %2105 = vpow2.f32 %v815_v11  ;;  %v2291_v11 = vld [vmem:[%s2369_s16 + $0x1c0] sm:$0xff] }
  0xdb   : > { %4774 = vst [vmem:[#allocation94_spill] sm:$0xff] %v3433_v26  ;;  %v3439_v2 = vsub.f32 %v2290_v4, %v2885_v23 }
  0xdc   : > { %v1051_v53 = vadd.f32 %v1050_v36, %v1049_v54  ;;  %v819_v36 = vmul.f32 1.442695, %v3421_v52  ;;  %v1058_v54 = vsel %vm325_vm0, %v2094_v0, 0.0  ;;  %v2098_v61 = vpop.eup %2097  ;;  %2107 = vpow2.f32 %v817_v10  ;;  %v2292_v10 = vld [vmem:[%s2369_s16 + $0x1c8] sm:$0xff] }
  0xdd   : > { %4775 = vst [vmem:[#allocation95_spill] sm:$0xff] %v3439_v2  ;;  %v3445_v52 = vsub.f32 %v2291_v11, %v2885_v23 }
  0xde   : > { %v1053_v34 = vadd.f32 %v1052_v35, %v1051_v53  ;;  %v821_v35 = vmul.f32 1.442695, %v3427_v60  ;;  %v1060_v53 = vsel %vm325_vm0, %v2096_v42, 0.0  ;;  %v2100_v25 = vpop.eup %2099  ;;  %2109 = vpow2.f32 %v819_v36  ;;  %v2293_v36 = vld [vmem:[%s2369_s16 + $0x1d0] sm:$0xff] }
  0xdf   : > { %4776 = vst [vmem:[#allocation96_spill] sm:$0xff] %v3445_v52  ;;  %v3451_v60 = vsub.f32 %v2292_v10, %v2885_v23 }
  0xe0   : > { %v1055_v19 = vadd.f32 %v1054_v55, %v1053_v34  ;;  %v823_v55 = vmul.f32 1.442695, %v3433_v26  ;;  %v1062_v34 = vsel %vm325_vm0, %v2098_v61, 0.0  ;;  %v2102_v4 = vpop.eup %2101  ;;  %2111 = vpow2.f32 %v821_v35  ;;  %v2294_v35 = vld [vmem:[%s2369_s16 + $0x1d8] sm:$0xff] }
  0xe1   : > { %4777 = vst [vmem:[#allocation97_spill] sm:$0xff] %v3451_v60  ;;  %v3457_v26 = vsub.f32 %v2293_v36, %v2885_v23 }
  0xe2   : > { %v1057_v9 = vadd.f32 %v1056_v16, %v1055_v19  ;;  %v825_v16 = vmul.f32 1.442695, %v3439_v2  ;;  %v1064_v19 = vsel %vm325_vm0, %v2100_v25, 0.0  ;;  %v2104_v11 = vpop.eup %2103  ;;  %2113 = vpow2.f32 %v823_v55  ;;  %v2295_v55 = vld [vmem:[%s2369_s16 + $0x1e0] sm:$0xff] }
  0xe3   : > { %4778 = vst [vmem:[#allocation98_spill] sm:$0xff] %v3457_v26  ;;  %v3463_v2 = vsub.f32 %v2294_v35, %v2885_v23 }
  0xe4   : > { %v1059_v0 = vadd.f32 %v1058_v54, %v1057_v9  ;;  %v827_v54 = vmul.f32 1.442695, %v3445_v52  ;;  %v1066_v9 = vsel %vm325_vm0, %v2102_v4, 0.0  ;;  %v2106_v10 = vpop.eup %2105  ;;  %2115 = vpow2.f32 %v825_v16  ;;  %v2296_v16 = vld [vmem:[%s2369_s16 + $0x1e8] sm:$0xff] }
  0xe5   : > { %4779 = vst [vmem:[#allocation99_spill] sm:$0xff] %v3463_v2  ;;  %v3469_v52 = vsub.f32 %v2295_v55, %v2885_v23 }
  0xe6   : > { %v1061_v42 = vadd.f32 %v1060_v53, %v1059_v0  ;;  %v829_v53 = vmul.f32 1.442695, %v3451_v60  ;;  %v1068_v0 = vsel %vm325_vm0, %v2104_v11, 0.0  ;;  %v2108_v36 = vpop.eup %2107  ;;  %2117 = vpow2.f32 %v827_v54  ;;  %v2297_v54 = vld [vmem:[%s2369_s16 + $0x1f0] sm:$0xff] }
  0xe7   : > { %4780 = vst [vmem:[#allocation100_spill] sm:$0xff] %v3469_v52  ;;  %v3475_v60 = vsub.f32 %v2296_v16, %v2885_v23 }
  0xe8   : > { %v1063_v61 = vadd.f32 %v1062_v34, %v1061_v42  ;;  %v831_v34 = vmul.f32 1.442695, %v3457_v26  ;;  %v1070_v42 = vsel %vm325_vm0, %v2106_v10, 0.0  ;;  %v2110_v35 = vpop.eup %2109  ;;  %2119 = vpow2.f32 %v829_v53  ;;  %v2298_v53 = vld [vmem:[%s2369_s16 + $0x1f8] sm:$0xff] }
  0xe9   : > { %4781 = vst [vmem:[#allocation101_spill] sm:$0xff] %v3475_v60  ;;  %v3481_v26 = vsub.f32 %v2297_v54, %v2885_v23 }
  0xea   : > { %v1065_v25 = vadd.f32 %v1064_v19, %v1063_v61  ;;  %v833_v19 = vmul.f32 1.442695, %v3463_v2  ;;  %v1072_v61 = vsel %vm325_vm0, %v2108_v36, 0.0  ;;  %v2112_v55 = vpop.eup %2111  ;;  %2121 = vpow2.f32 %v831_v34  ;;  %v2299_v34 = vld [vmem:[%s2369_s16 + $0x200] sm:$0xff] }
  0xeb   : > { %4782 = vst [vmem:[#allocation102_spill] sm:$0xff] %v3481_v26  ;;  %v3487_v2 = vsub.f32 %v2298_v53, %v2885_v23 }
  0xec   : > { %v1067_v4 = vadd.f32 %v1066_v9, %v1065_v25  ;;  %v835_v9 = vmul.f32 1.442695, %v3469_v52  ;;  %v1074_v25 = vsel %vm325_vm0, %v2110_v35, 0.0  ;;  %v2114_v16 = vpop.eup %2113  ;;  %2123 = vpow2.f32 %v833_v19  ;;  %v2300_v19 = vld [vmem:[%s2369_s16 + $0x208] sm:$0xff] }
  0xed   : > { %4783 = vst [vmem:[#allocation103_spill] sm:$0xff] %v3487_v2  ;;  %v3493_v52 = vsub.f32 %v2299_v34, %v2885_v23 }
  0xee   : > { %v1069_v11 = vadd.f32 %v1068_v0, %v1067_v4  ;;  %v837_v0 = vmul.f32 1.442695, %v3475_v60  ;;  %v1076_v4 = vsel %vm325_vm0, %v2112_v55, 0.0  ;;  %v2116_v54 = vpop.eup %2115  ;;  %2125 = vpow2.f32 %v835_v9  ;;  %v2301_v9 = vld [vmem:[%s2369_s16 + $0x210] sm:$0xff] }
  0xef   : > { %4784 = vst [vmem:[#allocation104_spill] sm:$0xff] %v3493_v52  ;;  %v3499_v60 = vsub.f32 %v2300_v19, %v2885_v23 }
  0xf0   : > { %v1071_v10 = vadd.f32 %v1070_v42, %v1069_v11  ;;  %v839_v42 = vmul.f32 1.442695, %v3481_v26  ;;  %v1078_v11 = vsel %vm325_vm0, %v2114_v16, 0.0  ;;  %v2118_v53 = vpop.eup %2117  ;;  %2127 = vpow2.f32 %v837_v0  ;;  %v2302_v0 = vld [vmem:[%s2369_s16 + $0x218] sm:$0xff] }
  0xf1   : > { %4785 = vst [vmem:[#allocation105_spill] sm:$0xff] %v3499_v60  ;;  %v3505_v26 = vsub.f32 %v2301_v9, %v2885_v23 }
  0xf2   : > { %v1073_v36 = vadd.f32 %v1072_v61, %v1071_v10  ;;  %v841_v61 = vmul.f32 1.442695, %v3487_v2  ;;  %v1080_v10 = vsel %vm325_vm0, %v2116_v54, 0.0  ;;  %v2120_v34 = vpop.eup %2119  ;;  %2129 = vpow2.f32 %v839_v42 }
  0xf3   : > { %4786 = vst [vmem:[#allocation106_spill] sm:$0xff] %v3505_v26  ;;  %v3511_v2 = vsub.f32 %v2302_v0, %v2885_v23  ;;  %v3517_v42 = vsub.f32 %v2303_v37, %v2885_v23  ;;  %v2304_v0 = vld [vmem:[%s2369_s16 + $0x228] sm:$0xff] }
  0xf4   : > { %v1075_v35 = vadd.f32 %v1074_v25, %v1073_v36  ;;  %v843_v25 = vmul.f32 1.442695, %v3493_v52  ;;  %v1082_v36 = vsel %vm325_vm0, %v2118_v53, 0.0  ;;  %v2122_v19 = vpop.eup %2121  ;;  %2131 = vpow2.f32 %v841_v61 }
  0xf5   : > { %v3523_v61 = vsub.f32 %v2304_v0, %v2885_v23  ;;  %v851_v37 = vmul.f32 1.442695, %v3517_v42 }
  0xf6   : > { %v1077_v55 = vadd.f32 %v1076_v4, %v1075_v35  ;;  %v845_v4 = vmul.f32 1.442695, %v3499_v60  ;;  %v1084_v35 = vsel %vm325_vm0, %v2120_v34, 0.0  ;;  %v2124_v9 = vpop.eup %2123  ;;  %2133 = vpow2.f32 %v843_v25 }
  0xf7   : > { %4787 = vst [vmem:[#allocation107_spill] sm:$0xff] %v3523_v61 }
  0xf8   : > { %v1079_v16 = vadd.f32 %v1078_v11, %v1077_v55  ;;  %v847_v11 = vmul.f32 1.442695, %v3505_v26  ;;  %v1086_v55 = vsel %vm325_vm0, %v2122_v19, 0.0  ;;  %v2126_v52 = vpop.eup %2125  ;;  %2135 = vpow2.f32 %v845_v4 }
  0xf9   : > { %v853_v19 = vmul.f32 1.442695, %v3523_v61 }
  0xfa   : > { %v1081_v54 = vadd.f32 %v1080_v10, %v1079_v16  ;;  %v849_v10 = vmul.f32 1.442695, %v3511_v2  ;;  %v1088_v16 = vsel %vm325_vm0, %v2124_v9, 0.0  ;;  %v2128_v60 = vpop.eup %2127  ;;  %2137 = vpow2.f32 %v847_v11 }
  0xfb   : > { %v1092_v23 = vsel %vm325_vm0, %v2128_v60, 0.0 }
  0xfc   : > { %v1083_v53 = vadd.f32 %v1082_v36, %v1081_v54  ;;  %v1090_v36 = vsel %vm325_vm0, %v2126_v52, 0.0  ;;  %v2130_v54 = vpop.eup %2129  ;;  %2139 = vpow2.f32 %v849_v10 }
  0xfd   : > { %2141 = vpow2.f32 %v851_v37  ;;  %v1094_v9 = vsel %vm325_vm0, %v2130_v54, 0.0 }
  0xfe   : > { %v1085_v34 = vadd.f32 %v1084_v35, %v1083_v53  ;;  %v2132_v4 = vpop.eup %2131  ;;  %v855_v35 = vmul.f32 1.442695, %v2889_v3  ;;  %2143 = vpow2.f32 %v853_v19  ;;  %v863_v19 = vmul.f32 1.442695, %v2905_v22 }
  0xff   : > { %v1096_v52 = vsel %vm325_vm0, %v2132_v4, 0.0 }
 0x100   : > { %v1087_v25 = vadd.f32 %v1086_v55, %v1085_v34  ;;  %v2134_v11 = vpop.eup %2133  ;;  %v857_v55 = vmul.f32 1.442695, %v2893_v1  ;;  %2145 = vpow2.f32 %v855_v35  ;;  %v859_v34 = vmul.f32 1.442695, %v2897_v29 }
 0x101   : > { %v1098_v60 = vsel %vm325_vm0, %v2134_v11, 0.0 }
 0x102   : > { %v1089_v26 = vadd.f32 %v1088_v16, %v1087_v25  ;;  %v2136_v10 = vpop.eup %2135  ;;  %2147 = vpow2.f32 %v857_v55  ;;  %v1232_v55 = vlaneseq }
 0x103   : > { %2149 = vpow2.f32 %v859_v34 }
 0x104   : > { %v1091_v53 = vadd.f32 %v1090_v36, %v1089_v26  ;;  %v2138_v37 = vpop.eup %2137  ;;  %v861_v26 = vmul.f32 1.442695, %v2901_v24  ;;  %v1100_v36 = vsel %vm325_vm0, %v2136_v10, 0.0 }
 0x105   : > { %v1102_v4 = vsel %vm325_vm0, %v2138_v37, 0.0 }
 0x106   : > { %v1093_v0 = vadd.f32 %v1092_v23, %v1091_v53  ;;  %v2140_v54 = vpop.eup %2139  ;;  %2151 = vpow2.f32 %v861_v26  ;;  %v865_v53 = vmul.f32 1.442695, %v2909_v40  ;;  %v3605_v40 = vld [vmem:[%s3578_s19] ss:$0 sm:$0xff] }
 0x107   : > { %v2142_v35 = vpop.eup %2141  ;;  %v1104_v11 = vsel %vm325_vm0, %v2140_v54, 0.0  ;;  %2153 = vpow2.f32 %v863_v19  ;;  %v871_v54 = vmul.f32 1.442695, %v2921_v51 }
 0x108   : > { %v1095_v16 = vadd.f32 %v1094_v9, %v1093_v0  ;;  %v2144_v0 = vpop.eup %2143  ;;  %v1106_v34 = vsel %vm325_vm0, %v2142_v35, 0.0  ;;  %2155 = vpow2.f32 %v865_v53 }
 0x109   : > { %v1108_v26 = vsel %vm325_vm0, %v2144_v0, 0.0 }
 0x10a   : > { %v1097_v25 = vadd.f32 %v1096_v52, %v1095_v16  ;;  %v867_v52 = vmul.f32 1.442695, %v2913_v41  ;;  %v2146_v16 = vpop.eup %2145 }
 0x10b   : > { %v1110_v19 = vsel %vm325_vm0, %v2146_v16, 0.0 }
 0x10c   : > { %v1099_v23 = vadd.f32 %v1098_v60, %v1097_v25  ;;  %v869_v60 = vmul.f32 1.442695, %v2917_v50  ;;  %v3547_v25 = vshrl.u32 %v1232_v55, 7  ;;  %2157 = vpow2.f32 %v867_v52 }
 0x10d   : > { %v875_v55 = vmul.f32 1.442695, %v2929_v59 }
 0x10e   : > { %v1101_v9 = vadd.f32 %v1100_v36, %v1099_v23  ;;  %v2148_v36 = vpop.eup %2147  ;;  %2159 = vpow2.f32 %v869_v60  ;;  %v3558_v52 = vadd.s32 16, %v3547_v25  ;;  %v3565_v16 = vadd.s32 32, %v3547_v25 }
 0x10f   : > { %v2150_v41 = vpop.eup %2149  ;;  %v1112_v53 = vsel %vm325_vm0, %v2148_v36, 0.0  ;;  %2161 = vpow2.f32 %v871_v54  ;;  %v3568_v60 = vadd.s32 40, %v3547_v25  ;;  %v3572_v54 = vadd.s32 48, %v3547_v25 }
 0x110   : > { %v1103_v10 = vadd.f32 %v1102_v4, %v1101_v9  ;;  %v873_v4 = vmul.f32 1.442695, %v2925_v58  ;;  %v3554_v9 = vadd.s32 8, %v3547_v25  ;;  %v3599_v58 = vadd.s32 96, %v3547_v25 }
 0x111   : > { %v3602_v51 = vadd.s32 104, %v3547_v25  ;;  %v3616_v22 = vadd.s32 128, %v3547_v25  ;;  %v3619_v24 = vadd.s32 136, %v3547_v25  ;;  %vm1365_vm1 = vcmp.eq.s32.totalorder %v3547_v25, %v3605_v40 }
 0x112   : > { %v1105_v37 = vadd.f32 %v1104_v11, %v1103_v10  ;;  %v2152_v11 = vpop.eup %2151  ;;  %v1114_v10 = vsel %vm325_vm0, %v2150_v41, 0.0  ;;  %2163 = vpow2.f32 %v873_v4  ;;  %v3588_v4 = vadd.s32 72, %v3547_v25 }
 0x113   : > { %v1116_v41 = vsel %vm325_vm0, %v2152_v11, 0.0  ;;  %2165 = vpow2.f32 %v875_v55  ;;  %v3596_v11 = vadd.s32 88, %v3547_v25  ;;  %v881_v55 = vmul.f32 1.442695, %v2941_v20 }
 0x114   : > { %v1107_v23 = vadd.f32 %v1106_v34, %v1105_v37  ;;  %v3562_v34 = vadd.s32 24, %v3547_v25  ;;  %v2154_v37 = vpop.eup %2153  ;;  %vm1366_vm2 = vcmp.eq.s32.totalorder %v3554_v9, %v3605_v40  ;;  %vm1367_vm3 = vcmp.eq.s32.totalorder %v3558_v52, %v3605_v40 }
 0x115   : > { %v1118_v59 = vsel %vm325_vm0, %v2154_v37, 0.0  ;;  %vm1369_vm5 = vcmp.eq.s32.totalorder %v3565_v16, %v3605_v40  ;;  %vm1370_vm6 = vcmp.eq.s32.totalorder %v3568_v60, %v3605_v40  ;;  %v3651_v3 = vadd.s32 168, %v3547_v25 }
 0x116   : > { %v1109_v35 = vadd.f32 %v1108_v26, %v1107_v23  ;;  %v877_v26 = vmul.f32 1.442695, %v2933_v8  ;;  %v3582_v23 = vadd.s32 56, %v3547_v25  ;;  %v3592_v8 = vadd.s32 80, %v3547_v25 }
 0x117   : > { %vm1368_vm4 = vcmp.eq.s32.totalorder %v3562_v34, %v3605_v40  ;;  %vm1371_vm7 = vcmp.eq.s32.totalorder %v3572_v54, %v3605_v40  ;;  %vm1374_vm10 = vcmp.eq.s32.totalorder %v3588_v4, %v3605_v40  ;;  %vm1376_vm12 = vcmp.eq.s32.totalorder %v3596_v11, %v3605_v40  ;;  %v4794_v4 = vld [vmem:[#allocation4_spill] sm:$0xff]  ;;  %v4800_v11 = vld [vmem:[#allocation6_spill] sm:$0xff] }
 0x118   : > { %v1111_v0 = vadd.f32 %v1110_v19, %v1109_v35  ;;  %v3585_v19 = vadd.s32 64, %v3547_v25  ;;  %v2156_v35 = vpop.eup %2155  ;;  %2167 = vpow2.f32 %v877_v26  ;;  %v883_v26 = vmul.f32 1.442695, %v2945_v21 }
 0x119   : > { %v2158_v50 = vpop.eup %2157  ;;  %v1120_v37 = vsel %vm325_vm0, %v2156_v35, 0.0  ;;  %vm1372_vm8 = vcmp.eq.s32.totalorder %v3582_v23, %v3605_v40  ;;  %vm1375_vm11 = vcmp.eq.s32.totalorder %v3592_v8, %v3605_v40  ;;  %vm1377_vm13 = vcmp.eq.s32.totalorder %v3599_v58, %v3605_v40  ;;  %v4788_v23 = vld [vmem:[#allocation2_spill] sm:$0xff]  ;;  %v4797_v8 = vld [vmem:[#allocation5_spill] sm:$0xff]  ;;  %v4803_v58 = vld [vmem:[#allocation7_spill] sm:$0xff] }
 0x11a   : > { %v1113_v36 = vadd.f32 %v1112_v53, %v1111_v0  ;;  %v879_v53 = vmul.f32 1.442695, %v2937_v12  ;;  %v3613_v12 = vadd.s32 120, %v3547_v25  ;;  %v2160_v29 = vpop.eup %2159  ;;  %vm1373_vm9 = vcmp.eq.s32.totalorder %v3585_v19, %v3605_v40  ;;  %v4791_v19 = vld [vmem:[#allocation3_spill] sm:$0xff] }
 0x11b   : > { %v2162_v35 = vpop.eup %2161  ;;  %vm1378_vm14 = vcmp.eq.s32.totalorder %v3602_v51, %v3605_v40  ;;  %v4806_v51 = vld [vmem:[#allocation8_spill] sm:$0xff] }
 0x11c   : > { %v1115_v0 = vadd.f32 %v1114_v10, %v1113_v36  ;;  %v3609_v36 = vadd.s32 112, %v3547_v25  ;;  %2169 = vpow2.f32 %v879_v53  ;;  %v885_v53 = vmul.f32 1.442695, %v2949_v32 }
 0x11d   : > { %2171 = vpow2.f32 %v881_v55  ;;  %v887_v55 = vmul.f32 1.442695, %v2953_v33  ;;  %v1126_v1 = vsel %vm325_vm0, %v2162_v35, 0.0  ;;  %v897_v33 = vmul.f32 1.442695, %v2973_v13 }
 0x11e   : > { %v1117_v10 = vadd.f32 %v1116_v41, %v1115_v0  ;;  %v3623_v41 = vadd.s32 144, %v3547_v25  ;;  %v1122_v0 = vsel %vm325_vm0, %v2158_v50, 0.0  ;;  %v2164_v50 = vpop.eup %2163  ;;  %2173 = vpow2.f32 %v883_v26 }
 0x11f   : > { %v2166_v61 = vpop.eup %2165  ;;  %2175 = vpow2.f32 %v885_v53  ;;  %v893_v26 = vmul.f32 1.442695, %v2965_v56  ;;  %v1128_v35 = vsel %vm325_vm0, %v2164_v50, 0.0  ;;  %v1493_v53 = vsel %vm1365_vm1, %v3121_v49, 0.0 }
 0x120   : > { %v1119_v20 = vadd.f32 %v1118_v59, %v1117_v10  ;;  %v3634_v59 = vadd.s32 152, %v3547_v25  ;;  %v1124_v10 = vsel %vm325_vm0, %v2160_v29, 0.0  ;;  %v891_v29 = vmul.f32 1.442695, %v2961_v45 }
 0x121   : > { %2177 = vpow2.f32 %v887_v55  ;;  %v3677_v50 = vmul.f32 1.442695, %v2981_v27  ;;  %v1130_v49 = vsel %vm325_vm0, %v2166_v61, 0.0  ;;  %v1621_v52 = vsel %vm325_vm0, %v1493_v53, 0.0 }
 0x122   : > { %v1121_v21 = vadd.f32 %v1120_v37, %v1119_v20  ;;  %v3645_v20 = vadd.s32 160, %v3547_v25  ;;  %v889_v37 = vmul.f32 1.442695, %v2957_v44  ;;  %v3659_v44 = vmul.f32 1.442695, %v2977_v14  ;;  %v2168_v45 = vpop.eup %2167 }
 0x123   : > { %v3680_v14 = vmul.f32 1.442695, %v2985_v28  ;;  %v3694_v55 = vmul.f32 1.442695, %v2989_v46  ;;  %v1132_v61 = vsel %vm325_vm0, %v2168_v45, 0.0  ;;  %vm1379_vm15 = vcmp.eq.s32.totalorder %v3609_v36, %v3605_v40  ;;  %v4809_v36 = vld [vmem:[#allocation9_spill] sm:$0xff] }
 0x124   : > { %v1123_v32 = vadd.f32 %v1122_v0, %v1121_v21  ;;  %v895_v21 = vmul.f32 1.442695, %v2969_v57  ;;  %2179 = vpow2.f32 %v889_v37  ;;  %v3706_v53 = vmul.f32 1.442695, %v2993_v47 }
 0x125   : > { %2181 = vpow2.f32 %v891_v29  ;;  %v3709_v45 = vmul.f32 1.442695, %v2997_v6  ;;  %vm1380_vm1 = vcmp.eq.s32.totalorder %v3613_v12, %v3605_v40  ;;  %v4812_v12 = vld [vmem:[#allocation10_spill] sm:$0xff] }
 0x126   : > { %v1125_v0 = vadd.f32 %v1124_v10, %v1123_v32  ;;  %v1494_v32 = vsel %vm1366_vm2, %v3125_v31, 0.0  ;;  %v1495_v10 = vsel %vm1367_vm3, %v3129_v15, 0.0  ;;  %v2170_v31 = vpop.eup %2169  ;;  %v1496_v15 = vsel %vm1368_vm4, %v3133_v5, 0.0 }
 0x127   : > { %v1624_v37 = vsel %vm325_vm0, %v1495_v10, 0.0  ;;  %v1497_v5 = vsel %vm1369_vm5, %v3139_v43, 0.0  ;;  %v1134_v46 = vsel %vm325_vm0, %v2170_v31, 0.0  ;;  %v1626_v29 = vsel %vm325_vm0, %v1496_v15, 0.0 }
 0x128   : > { %v1127_v56 = vadd.f32 %v1126_v1, %v1125_v0  ;;  %v3684_v1 = vadd.s32 176, %v3547_v25  ;;  %v1622_v0 = vsel %vm325_vm0, %v1494_v32, 0.0  ;;  %2183 = vpow2.f32 %v893_v26 }
 0x129   : > { %v1623_v34 = vadd.f32 %v1622_v0, %v1621_v52  ;;  %v1498_v43 = vsel %vm1370_vm6, %v3144_v17, 0.0  ;;  %v1628_v26 = vsel %vm325_vm0, %v1497_v5, 0.0  ;;  %2185 = vpow2.f32 %v895_v21 }
 0x12a   : > { %v1129_v9 = vadd.f32 %v1128_v35, %v1127_v56  ;;  %v2172_v56 = vpop.eup %2171  ;;  %v1499_v17 = vsel %vm1371_vm7, %v3149_v48, 0.0  ;;  %v3737_v0 = vmul.f32 1.442695, %v3013_v62  ;;  %v1630_v21 = vsel %vm325_vm0, %v1498_v43, 0.0  ;;  %v4789_v43 = vld [vmem:[#allocation68_spill] sm:$0xff] }
 0x12b   : > { %v2174_v32 = vpop.eup %2173  ;;  %v1625_v16 = vadd.f32 %v1624_v37, %v1623_v34  ;;  %v1136_v31 = vsel %vm325_vm0, %v2172_v56, 0.0  ;;  %2187 = vpow2.f32 %v897_v33  ;;  %v1500_v48 = vsel %vm1372_vm8, %v3154_v30, 0.0 }
 0x12c   : > { %v1131_v35 = vadd.f32 %v1130_v49, %v1129_v9  ;;  %v3720_v49 = vmul.f32 1.442695, %v3001_v7  ;;  %v3723_v9 = vmul.f32 1.442695, %v3005_v38  ;;  %v2176_v15 = vpop.eup %2175  ;;  %v1138_v37 = vsel %vm325_vm0, %v2174_v32, 0.0 }
 0x12d   : > { %v1627_v60 = vadd.f32 %v1626_v29, %v1625_v16  ;;  %v3751_v5 = vmul.f32 1.442695, %v3021_v18  ;;  %v1140_v34 = vsel %vm325_vm0, %v2176_v15, 0.0  ;;  %v1632_v33 = vsel %vm325_vm0, %v1499_v17, 0.0 }
 0x12e   : > { %v1133_v10 = vadd.f32 %v1132_v61, %v1131_v35  ;;  %v3734_v61 = vmul.f32 1.442695, %v3009_v39  ;;  %v3748_v35 = vmul.f32 1.442695, %v3017_v63  ;;  %2189 = vpow2.f32 %v3659_v44 }
 0x12f   : > { %v1629_v54 = vadd.f32 %v1628_v26, %v1627_v60  ;;  %v1501_v30 = vsel %vm1373_vm9, %v4788_v23, 0.0  ;;  %v3763_v16 = vmul.f32 1.442695, %v4789_v43  ;;  %v1634_v44 = vsel %vm325_vm0, %v1500_v48, 0.0 }
 0x130   : > { %v1135_v52 = vadd.f32 %v1134_v46, %v1133_v10  ;;  %v2178_v46 = vpop.eup %2177  ;;  %2191 = vpow2.f32 %v3677_v50  ;;  %v1502_v60 = vsel %vm1374_vm10, %v4791_v19, 0.0  ;;  %v1636_v50 = vsel %vm325_vm0, %v1501_v30, 0.0 }
 0x131   : > { %v2180_v29 = vpop.eup %2179  ;;  %v1631_v10 = vadd.f32 %v1630_v21, %v1629_v54  ;;  %v1142_v15 = vsel %vm325_vm0, %v2178_v46, 0.0  ;;  %v4792_v21 = vld [vmem:[#allocation70_spill] sm:$0xff]  ;;  %v4793_v54 = vld [vmem:[#allocation71_spill] sm:$0xff]  ;;  %2193 = vpow2.f32 %v3680_v14  ;;  %vm1381_vm2 = vcmp.eq.s32.totalorder %v3616_v22, %v3605_v40 }
 0x132   : > { %v1137_v56 = vadd.f32 %v1136_v31, %v1135_v52  ;;  %v4790_v31 = vld [vmem:[#allocation69_spill] sm:$0xff]  ;;  %v2182_v52 = vpop.eup %2181  ;;  %v3781_v46 = vmul.f32 1.442695, %v4793_v54  ;;  %v1144_v23 = vsel %vm325_vm0, %v2180_v29, 0.0  ;;  %v1638_v14 = vsel %vm325_vm0, %v1502_v60, 0.0  ;;  %v4815_v22 = vld [vmem:[#allocation11_spill] sm:$0xff] }
 0x133   : > { %v3766_v26 = vmul.f32 1.442695, %v4790_v31  ;;  %v2184_v48 = vpop.eup %2183  ;;  %v4796_v54 = vld [vmem:[#allocation73_spill] sm:$0xff]  ;;  %2195 = vpow2.f32 %v3694_v55  ;;  %vm1382_vm3 = vcmp.eq.s32.totalorder %v3619_v24, %v3605_v40  ;;  %vm1383_vm4 = vcmp.eq.s32.totalorder %v3623_v41, %v3605_v40 }
 0x134   : > { %v1139_v32 = vadd.f32 %v1138_v37, %v1137_v56  ;;  %v1633_v37 = vadd.f32 %v1632_v33, %v1631_v10  ;;  %v3778_v56 = vmul.f32 1.442695, %v4792_v21  ;;  %v1503_v33 = vsel %vm1375_vm11, %v4794_v4, 0.0  ;;  %v4795_v10 = vld [vmem:[#allocation72_spill] sm:$0xff]  ;;  %v2186_v30 = vpop.eup %2185 }
 0x135   : > { %v3793_v19 = vmul.f32 1.442695, %v4795_v10  ;;  %v3796_v29 = vmul.f32 1.442695, %v4796_v54  ;;  %v1146_v21 = vsel %vm325_vm0, %v2182_v52, 0.0  ;;  %v4799_v54 = vld [vmem:[#allocation31_spill] sm:$0xff]  ;;  %v2188_v60 = vpop.eup %2187  ;;  %2197 = vpow2.f32 %v3706_v53 }
 0x136   : > { %v1141_v17 = vadd.f32 %v1140_v34, %v1139_v32  ;;  %v1635_v32 = vadd.f32 %v1634_v44, %v1633_v37  ;;  %v1504_v44 = vsel %vm1376_vm12, %v4797_v8, 0.0  ;;  %v4798_v37 = vld [vmem:[#allocation30_spill] sm:$0xff]  ;;  %v3811_v52 = vmul.f32 1.442695, %v4799_v54  ;;  %v4802_v54 = vld [vmem:[#allocation33_spill] sm:$0xff] }
 0x137   : > { %v3808_v4 = vmul.f32 1.442695, %v4798_v37  ;;  %v1148_v10 = vsel %vm325_vm0, %v2184_v48, 0.0  ;;  %v1640_v55 = vsel %vm325_vm0, %v1503_v33, 0.0  ;;  %v3826_v48 = vmul.f32 1.442695, %v4802_v54 }
 0x138   : > { %v1143_v34 = vadd.f32 %v1142_v15, %v1141_v17  ;;  %v1637_v17 = vadd.f32 %v1636_v50, %v1635_v32  ;;  %v1505_v50 = vsel %vm1377_vm13, %v4800_v11, 0.0  ;;  %v4801_v32 = vld [vmem:[#allocation32_spill] sm:$0xff]  ;;  %v1150_v37 = vsel %vm325_vm0, %v2186_v30, 0.0  ;;  %v4805_v54 = vld [vmem:[#allocation35_spill] sm:$0xff] }
 0x139   : > { %v3823_v8 = vmul.f32 1.442695, %v4801_v32  ;;  %v1642_v53 = vsel %vm325_vm0, %v1504_v44, 0.0  ;;  %2199 = vpow2.f32 %v3709_v45  ;;  %v3841_v30 = vmul.f32 1.442695, %v4805_v54  ;;  %v4808_v54 = vld [vmem:[#allocation37_spill] sm:$0xff] }
 0x13a   : > { %v1145_v15 = vadd.f32 %v1144_v23, %v1143_v34  ;;  %v1639_v34 = vadd.f32 %v1638_v14, %v1637_v17  ;;  %v1506_v14 = vsel %vm1378_vm14, %v4803_v58, 0.0  ;;  %v4804_v17 = vld [vmem:[#allocation34_spill] sm:$0xff]  ;;  %v1152_v32 = vsel %vm325_vm0, %v2188_v60, 0.0 }
 0x13b   : > { %v3838_v11 = vmul.f32 1.442695, %v4804_v17  ;;  %vm1384_vm5 = vcmp.eq.s32.totalorder %v3634_v59, %v3605_v40  ;;  %v1644_v45 = vsel %vm325_vm0, %v1505_v50, 0.0  ;;  %2201 = vpow2.f32 %v3720_v49 }
 0x13c   : > { %v1147_v23 = vadd.f32 %v1146_v21, %v1145_v15  ;;  %v2190_v21 = vpop.eup %2189  ;;  %v1641_v15 = vadd.f32 %v1640_v55, %v1639_v34  ;;  %v1507_v55 = vsel %vm1379_vm15, %v4806_v51, 0.0  ;;  %v4807_v34 = vld [vmem:[#allocation36_spill] sm:$0xff]  ;;  %v3856_v60 = vmul.f32 1.442695, %v4808_v54  ;;  %v4811_v54 = vld [vmem:[#allocation39_spill] sm:$0xff] }
 0x13d   : > { %v3853_v58 = vmul.f32 1.442695, %v4807_v34  ;;  %v1154_v17 = vsel %vm325_vm0, %v2190_v21, 0.0  ;;  %vm1385_vm6 = vcmp.eq.s32.totalorder %v3645_v20, %v3605_v40  ;;  %v1646_v49 = vsel %vm325_vm0, %v1506_v14, 0.0 }
 0x13e   : > { %v1149_v33 = vadd.f32 %v1148_v10, %v1147_v23  ;;  %v2192_v10 = vpop.eup %2191  ;;  %v1643_v23 = vadd.f32 %v1642_v53, %v1641_v15  ;;  %2203 = vpow2.f32 %v3723_v9  ;;  %v1508_v53 = vsel %vm1380_vm1, %v4809_v36, 0.0  ;;  %v4810_v15 = vld [vmem:[#allocation38_spill] sm:$0xff] }
 0x13f   : > { %v3868_v51 = vmul.f32 1.442695, %v4810_v15  ;;  %v3871_v21 = vmul.f32 1.442695, %v4811_v54  ;;  %v1156_v34 = vsel %vm325_vm0, %v2192_v10, 0.0  ;;  %vm1386_vm7 = vcmp.eq.s32.totalorder %v3651_v3, %v3605_v40  ;;  %v4814_v54 = vld [vmem:[#allocation41_spill] sm:$0xff] }
 0x140   : > { %v1151_v44 = vadd.f32 %v1150_v37, %v1149_v33  ;;  %v2194_v37 = vpop.eup %2193  ;;  %v1645_v33 = vadd.f32 %v1644_v45, %v1643_v23  ;;  %v1648_v9 = vsel %vm325_vm0, %v1507_v55, 0.0  ;;  %2205 = vpow2.f32 %v3734_v61  ;;  %v4813_v23 = vld [vmem:[#allocation40_spill] sm:$0xff] }
 0x141   : > { %v1509_v45 = vsel %vm1381_vm2, %v4812_v12, 0.0  ;;  %v3883_v36 = vmul.f32 1.442695, %v4813_v23  ;;  %v3886_v10 = vmul.f32 1.442695, %v4814_v54  ;;  %v1158_v15 = vsel %vm325_vm0, %v2194_v37, 0.0 }
 0x142   : > { %v1153_v50 = vadd.f32 %v1152_v32, %v1151_v44  ;;  %v2196_v32 = vpop.eup %2195  ;;  %v1647_v44 = vadd.f32 %v1646_v49, %v1645_v33  ;;  %vm1387_vm8 = vcmp.eq.s32.totalorder %v3684_v1, %v3605_v40  ;;  %v1650_v61 = vsel %vm325_vm0, %v1508_v53, 0.0  ;;  %v4816_v33 = vld [vmem:[#allocation42_spill] sm:$0xff]  ;;  %v4817_v54 = vld [vmem:[#allocation43_spill] sm:$0xff] }
 0x143   : > { %2207 = vpow2.f32 %v3737_v0  ;;  %v1510_v49 = vsel %vm1382_vm3, %v4815_v22, 0.0  ;;  %v3898_v12 = vmul.f32 1.442695, %v4816_v33  ;;  %v3901_v37 = vmul.f32 1.442695, %v4817_v54  ;;  %v4820_v22 = vld [vmem:[#allocation74_spill] sm:$0xff] }
 0x144   : > { %v1155_v14 = vadd.f32 %v1154_v17, %v1153_v50  ;;  %v2198_v17 = vpop.eup %2197  ;;  %v1649_v50 = vadd.f32 %v1648_v9, %v1647_v44  ;;  %v1160_v23 = vsel %vm325_vm0, %v2196_v32, 0.0  ;;  %v1652_v53 = vsel %vm325_vm0, %v1509_v45, 0.0 }
 0x145   : > { %v2200_v31 = vpop.eup %2199  ;;  %2209 = vpow2.f32 %v3748_v35  ;;  %v3914_v54 = vmul.f32 1.442695, %v4820_v22  ;;  %v1162_v32 = vsel %vm325_vm0, %v2198_v17, 0.0  ;;  %v1654_v45 = vsel %vm325_vm0, %v1510_v49, 0.0 }
 0x146   : > { %v1157_v55 = vadd.f32 %v1156_v34, %v1155_v14  ;;  %v4818_v34 = vld [vmem:[#allocation12_spill] sm:$0xff]  ;;  %v1651_v9 = vadd.f32 %v1650_v61, %v1649_v50  ;;  %v2202_v33 = vpop.eup %2201  ;;  %2211 = vpow2.f32 %v3751_v5  ;;  %v1256_v22 = vadd.s32 184, %v3547_v25 }
 0x147   : > { %v1511_v24 = vsel %vm1383_vm4, %v4818_v34, 0.0  ;;  %v4819_v14 = vld [vmem:[#allocation44_spill] sm:$0xff]  ;;  %v1164_v34 = vsel %vm325_vm0, %v2200_v31, 0.0  ;;  %2213 = vpow2.f32 %v3763_v16  ;;  %v1257_v31 = vadd.s32 192, %v3547_v25 }
 0x148   : > { %v1159_v0 = vadd.f32 %v1158_v15, %v1157_v55  ;;  %v3911_v44 = vmul.f32 1.442695, %v4819_v14  ;;  %v4821_v15 = vld [vmem:[#allocation13_spill] sm:$0xff]  ;;  %v1653_v61 = vadd.f32 %v1652_v53, %v1651_v9  ;;  %v1656_v17 = vsel %vm325_vm0, %v1511_v24, 0.0  ;;  %v2204_v49 = vpop.eup %2203  ;;  %v4824_v53 = vld [vmem:[#allocation75_spill] sm:$0xff] }
 0x149   : > { %v1512_v41 = vsel %vm1384_vm5, %v4821_v15, 0.0  ;;  %v4822_v55 = vld [vmem:[#allocation45_spill] sm:$0xff]  ;;  %v3935_v9 = vmul.f32 1.442695, %v4824_v53  ;;  %v1166_v15 = vsel %vm325_vm0, %v2202_v33, 0.0  ;;  %2215 = vpow2.f32 %v3766_v26  ;;  %v4826_v26 = vld [vmem:[#allocation16_spill] sm:$0xff] }
 0x14a   : > { %v1161_v35 = vadd.f32 %v1160_v23, %v1159_v0  ;;  %v3924_v50 = vmul.f32 1.442695, %v4822_v55  ;;  %v4823_v23 = vld [vmem:[#allocation14_spill] sm:$0xff]  ;;  %v1655_v0 = vadd.f32 %v1654_v45, %v1653_v61  ;;  %v1658_v55 = vsel %vm325_vm0, %v1512_v41, 0.0  ;;  %v2206_v24 = vpop.eup %2205 }
 0x14b   : > { %v1513_v59 = vsel %vm1385_vm6, %v4823_v23, 0.0  ;;  %v1168_v45 = vsel %vm325_vm0, %v2204_v49, 0.0  ;;  %v1258_v61 = vadd.s32 200, %v3547_v25  ;;  %vm1388_vm9 = vcmp.eq.s32.totalorder %v1256_v22, %v3605_v40 }
 0x14c   : > { %v1163_v5 = vadd.f32 %v1162_v32, %v1161_v35  ;;  %v4825_v32 = vld [vmem:[#allocation15_spill] sm:$0xff]  ;;  %v1657_v35 = vadd.f32 %v1656_v17, %v1655_v0  ;;  %v1660_v33 = vsel %vm325_vm0, %v1513_v59, 0.0  ;;  %2217 = vpow2.f32 %v3778_v56  ;;  %v4827_v56 = vld [vmem:[#allocation17_spill] sm:$0xff] }
 0x14d   : > { %v1514_v20 = vsel %vm1386_vm7, %v4825_v32, 0.0  ;;  %v2208_v23 = vpop.eup %2207  ;;  %v1170_v17 = vsel %vm325_vm0, %v2206_v24, 0.0  ;;  %v1259_v49 = vadd.s32 208, %v3547_v25  ;;  %vm1389_vm10 = vcmp.eq.s32.totalorder %v1257_v31, %v3605_v40  ;;  %v4828_v32 = vld [vmem:[#allocation18_spill] sm:$0xff] }
 0x14e   : > { %v1165_v16 = vadd.f32 %v1164_v34, %v1163_v5  ;;  %v1515_v34 = vsel %vm1387_vm8, %v4826_v26, 0.0  ;;  %v1659_v3 = vadd.f32 %v1658_v55, %v1657_v35  ;;  %v1662_v22 = vsel %vm325_vm0, %v1514_v20, 0.0 }
 0x14f   : > { %v2210_v5 = vpop.eup %2209  ;;  %2219 = vpow2.f32 %v3781_v46  ;;  %v1516_v0 = vsel %vm1388_vm9, %v4827_v56, 0.0  ;;  %v1260_v1 = vadd.s32 216, %v3547_v25  ;;  %vm1390_vm11 = vcmp.eq.s32.totalorder %v1258_v61, %v3605_v40 }
 0x150   : > { %v1167_v41 = vadd.f32 %v1166_v15, %v1165_v16  ;;  %v1661_v15 = vadd.f32 %v1660_v33, %v1659_v3  ;;  %v1172_v16 = vsel %vm325_vm0, %v2208_v23, 0.0  ;;  %v1664_v55 = vsel %vm325_vm0, %v1515_v34, 0.0  ;;  %v2212_v24 = vpop.eup %2211 }
 0x151   : > { %2221 = vpow2.f32 %v3793_v19  ;;  %v1517_v20 = vsel %vm1389_vm10, %v4828_v32, 0.0  ;;  %v1174_v46 = vsel %vm325_vm0, %v2210_v5, 0.0  ;;  %vm1391_vm12 = vcmp.eq.s32.totalorder %v1259_v49, %v3605_v40  ;;  %v2214_v23 = vpop.eup %2213  ;;  %v4830_v5 = vld [vmem:[#allocation20_spill] sm:$0xff] }
 0x152   : > { %v1169_v59 = vadd.f32 %v1168_v45, %v1167_v41  ;;  %v1663_v35 = vadd.f32 %v1662_v22, %v1661_v15  ;;  %v1261_v45 = vadd.s32 224, %v3547_v25  ;;  %v1666_v33 = vsel %vm325_vm0, %v1516_v0, 0.0  ;;  %v4829_v41 = vld [vmem:[#allocation19_spill] sm:$0xff] }
 0x153   : > { %2223 = vpow2.f32 %v3796_v29  ;;  %v1518_v26 = vsel %vm1390_vm11, %v4829_v41, 0.0  ;;  %v1176_v19 = vsel %vm325_vm0, %v2212_v24, 0.0  ;;  %v1262_v3 = vadd.s32 232, %v3547_v25  ;;  %v2216_v22 = vpop.eup %2215 }
 0x154   : > { %v1171_v31 = vadd.f32 %v1170_v17, %v1169_v59  ;;  %v1665_v34 = vadd.f32 %v1664_v55, %v1663_v35  ;;  %vm1392_vm13 = vcmp.eq.s32.totalorder %v1260_v1, %v3605_v40  ;;  %v1668_v17 = vsel %vm325_vm0, %v1517_v20, 0.0  ;;  %v4831_v55 = vld [vmem:[#allocation21_spill] sm:$0xff] }
 0x155   : > { %2225 = vpow2.f32 %v3808_v4  ;;  %v1519_v59 = vsel %vm1391_vm12, %v4830_v5, 0.0  ;;  %v1178_v29 = vsel %vm325_vm0, %v2214_v23, 0.0  ;;  %v1263_v0 = vadd.s32 240, %v3547_v25 }
 0x156   : > { %v1173_v61 = vadd.f32 %v1172_v16, %v1171_v31  ;;  %v1667_v56 = vadd.f32 %v1666_v33, %v1665_v34  ;;  %vm1393_vm14 = vcmp.eq.s32.totalorder %v1261_v45, %v3605_v40  ;;  %v1670_v15 = vsel %vm325_vm0, %v1518_v26, 0.0  ;;  %v2218_v16 = vpop.eup %2217  ;;  %v4832_v45 = vld [vmem:[#allocation22_spill] sm:$0xff] }
 0x157   : > { %2227 = vpow2.f32 %v3811_v52  ;;  %v1520_v24 = vsel %vm1392_vm13, %v4831_v55, 0.0  ;;  %v1180_v4 = vsel %vm325_vm0, %v2216_v22, 0.0  ;;  %v1264_v32 = vadd.s32 248, %v3547_v25 }
 0x158   : > { %v1175_v49 = vadd.f32 %v1174_v46, %v1173_v61  ;;  %v1669_v31 = vadd.f32 %v1668_v17, %v1667_v56  ;;  %vm1394_vm15 = vcmp.eq.s32.totalorder %v1262_v3, %v3605_v40  ;;  %v1672_v20 = vsel %vm325_vm0, %v1519_v59, 0.0  ;;  %v4834_v56 = vld [vmem:[#allocation24_spill] sm:$0xff] }
 0x159   : > { %v2220_v35 = vpop.eup %2219  ;;  %2229 = vpow2.f32 %v3823_v8  ;;  %v1521_v33 = vsel %vm1393_vm14, %v4832_v45, 0.0  ;;  %v1182_v52 = vsel %vm325_vm0, %v2218_v16, 0.0  ;;  %v1265_v61 = vadd.s32 256, %v3547_v25  ;;  %v4836_v45 = vld [vmem:[#allocation26_spill] sm:$0xff] }
 0x15a   : > { %v1177_v1 = vadd.f32 %v1176_v19, %v1175_v49  ;;  %v1671_v23 = vadd.f32 %v1670_v15, %v1669_v31  ;;  %vm1395_vm1 = vcmp.eq.s32.totalorder %v1263_v0, %v3605_v40  ;;  %v1674_v41 = vsel %vm325_vm0, %v1520_v24, 0.0  ;;  %v4833_v19 = vld [vmem:[#allocation23_spill] sm:$0xff]  ;;  %v4835_v24 = vld [vmem:[#allocation25_spill] sm:$0xff] }
 0x15b   : > { %v2222_v26 = vpop.eup %2221  ;;  %2231 = vpow2.f32 %v3826_v48  ;;  %v1522_v3 = vsel %vm1394_vm15, %v4833_v19, 0.0  ;;  %v1184_v8 = vsel %vm325_vm0, %v2220_v35, 0.0  ;;  %v1266_v22 = vadd.s32 264, %v3547_v25 }
 0x15c   : > { %v1179_v46 = vadd.f32 %v1178_v29, %v1177_v1  ;;  %v1673_v17 = vadd.f32 %v1672_v20, %v1671_v23  ;;  %vm1396_vm2 = vcmp.eq.s32.totalorder %v1264_v32, %v3605_v40  ;;  %v1676_v49 = vsel %vm325_vm0, %v1521_v33, 0.0 }
 0x15d   : > { %v2224_v5 = vpop.eup %2223  ;;  %2233 = vpow2.f32 %v3838_v11  ;;  %v1523_v29 = vsel %vm1395_vm1, %v4834_v56, 0.0  ;;  %v1186_v48 = vsel %vm325_vm0, %v2222_v26, 0.0  ;;  %v1267_v15 = vadd.s32 272, %v3547_v25 }
 0x15e   : > { %v1181_v34 = vadd.f32 %v1180_v4, %v1179_v46  ;;  %v1675_v0 = vadd.f32 %v1674_v41, %v1673_v17  ;;  %vm1397_vm3 = vcmp.eq.s32.totalorder %v1265_v61, %v3605_v40  ;;  %v1678_v16 = vsel %vm325_vm0, %v1522_v3, 0.0 }
 0x15f   : > { %v2226_v1 = vpop.eup %2225  ;;  %2235 = vpow2.f32 %v3841_v30  ;;  %v1524_v31 = vsel %vm1396_vm2, %v4835_v24, 0.0  ;;  %v1188_v11 = vsel %vm325_vm0, %v2224_v5, 0.0  ;;  %v1268_v32 = vadd.s32 280, %v3547_v25  ;;  %v4838_v5 = vld [vmem:[#allocation28_spill] sm:$0xff] }
 0x160   : > { %v1183_v59 = vadd.f32 %v1182_v52, %v1181_v34  ;;  %v1677_v4 = vadd.f32 %v1676_v49, %v1675_v0  ;;  %vm1398_vm4 = vcmp.eq.s32.totalorder %v1266_v22, %v3605_v40  ;;  %v1680_v20 = vsel %vm325_vm0, %v1523_v29, 0.0  ;;  %v4837_v34 = vld [vmem:[#allocation27_spill] sm:$0xff] }
 0x161   : > { %v2228_v35 = vpop.eup %2227  ;;  %2237 = vpow2.f32 %v3853_v58  ;;  %v1525_v33 = vsel %vm1397_vm3, %v4836_v45, 0.0  ;;  %v1190_v30 = vsel %vm325_vm0, %v2226_v1, 0.0  ;;  %v1269_v52 = vadd.s32 288, %v3547_v25 }
 0x162   : > { %v1185_v55 = vadd.f32 %v1184_v8, %v1183_v59  ;;  %v1679_v23 = vadd.f32 %v1678_v16, %v1677_v4  ;;  %vm1399_vm5 = vcmp.eq.s32.totalorder %v1267_v15, %v3605_v40  ;;  %v1682_v61 = vsel %vm325_vm0, %v1524_v31, 0.0  ;;  %v4839_v16 = vld [vmem:[#allocation29_spill] sm:$0xff] }
 0x163   : > { %v2230_v41 = vpop.eup %2229  ;;  %2239 = vpow2.f32 %v3856_v60  ;;  %v1526_v19 = vsel %vm1398_vm4, %v4837_v34, 0.0  ;;  %v1192_v58 = vsel %vm325_vm0, %v2228_v35, 0.0  ;;  %v1270_v17 = vadd.s32 296, %v3547_v25 }
 0x164   : > { %v1187_v46 = vadd.f32 %v1186_v48, %v1185_v55  ;;  %v1681_v3 = vadd.f32 %v1680_v20, %v1679_v23  ;;  %vm1400_vm6 = vcmp.eq.s32.totalorder %v1268_v32, %v3605_v40  ;;  %v1684_v8 = vsel %vm325_vm0, %v1525_v33, 0.0  ;;  %v4840_v32 = vld [vmem:[#allocation76_spill] sm:$0xff] }
 0x165   : > { %v2232_v22 = vpop.eup %2231  ;;  %2241 = vpow2.f32 %v3868_v51  ;;  %v1527_v59 = vsel %vm1399_vm5, %v4838_v5, 0.0  ;;  %v1194_v60 = vsel %vm325_vm0, %v2230_v41, 0.0  ;;  %v1271_v29 = vadd.s32 304, %v3547_v25 }
 0x166   : > { %v1189_v26 = vadd.f32 %v1188_v11, %v1187_v46  ;;  %v1683_v56 = vadd.f32 %v1682_v61, %v1681_v3  ;;  %vm1401_vm7 = vcmp.eq.s32.totalorder %v1269_v52, %v3605_v40  ;;  %v1686_v0 = vsel %vm325_vm0, %v1526_v19, 0.0  ;;  %v4842_v3 = vld [vmem:[#allocation78_spill] sm:$0xff] }
 0x167   : > { %v2234_v48 = vpop.eup %2233  ;;  %2243 = vpow2.f32 %v3871_v21  ;;  %v1528_v1 = vsel %vm1400_vm6, %v4839_v16, 0.0  ;;  %v1196_v51 = vsel %vm325_vm0, %v2232_v22, 0.0  ;;  %v1272_v24 = vadd.s32 312, %v3547_v25  ;;  %v4844_v16 = vld [vmem:[#allocation80_spill] sm:$0xff] }
 0x168   : > { %v1191_v49 = vadd.f32 %v1190_v30, %v1189_v26  ;;  %v1685_v55 = vadd.f32 %v1684_v8, %v1683_v56  ;;  %vm1402_vm8 = vcmp.eq.s32.totalorder %v1270_v17, %v3605_v40  ;;  %v1688_v31 = vsel %vm325_vm0, %v1527_v59, 0.0  ;;  %v4841_v30 = vld [vmem:[#allocation77_spill] sm:$0xff]  ;;  %v4843_v59 = vld [vmem:[#allocation79_spill] sm:$0xff] }
 0x169   : > { %v2236_v4 = vpop.eup %2235  ;;  %2245 = vpow2.f32 %v3883_v36  ;;  %v1529_v20 = vsel %vm1401_vm7, %v4840_v32, 0.0  ;;  %v1198_v21 = vsel %vm325_vm0, %v2234_v48, 0.0  ;;  %v1273_v46 = vadd.s32 320, %v3547_v25 }
 0x16a   : > { %v1193_v15 = vadd.f32 %v1192_v58, %v1191_v49  ;;  %v1687_v35 = vadd.f32 %v1686_v0, %v1685_v55  ;;  %vm1403_vm9 = vcmp.eq.s32.totalorder %v1271_v29, %v3605_v40  ;;  %v1690_v45 = vsel %vm325_vm0, %v1528_v1, 0.0 }
 0x16b   : > { %v2238_v33 = vpop.eup %2237  ;;  %2247 = vpow2.f32 %v3886_v10  ;;  %v1530_v52 = vsel %vm1402_vm8, %v4841_v30, 0.0  ;;  %v1200_v36 = vsel %vm325_vm0, %v2236_v4, 0.0  ;;  %v1274_v41 = vadd.s32 328, %v3547_v25 }
 0x16c   : > { %v1195_v11 = vadd.f32 %v1194_v60, %v1193_v15  ;;  %v1689_v61 = vadd.f32 %v1688_v31, %v1687_v35  ;;  %vm1404_vm10 = vcmp.eq.s32.totalorder %v1272_v24, %v3605_v40  ;;  %v1692_v26 = vsel %vm325_vm0, %v1529_v20, 0.0 }
 0x16d   : > { %v2240_v34 = vpop.eup %2239  ;;  %2249 = vpow2.f32 %v3898_v12  ;;  %v1531_v58 = vsel %vm1403_vm9, %v4842_v3, 0.0  ;;  %v1202_v10 = vsel %vm325_vm0, %v2238_v33, 0.0  ;;  %v1275_v8 = vadd.s32 336, %v3547_v25  ;;  %v4846_v33 = vld [vmem:[#allocation82_spill] sm:$0xff] }
 0x16e   : > { %v1197_v23 = vadd.f32 %v1196_v51, %v1195_v11  ;;  %v1691_v17 = vadd.f32 %v1690_v45, %v1689_v61  ;;  %vm1405_vm11 = vcmp.eq.s32.totalorder %v1273_v46, %v3605_v40  ;;  %v1694_v22 = vsel %vm325_vm0, %v1530_v52, 0.0  ;;  %v4845_v11 = vld [vmem:[#allocation81_spill] sm:$0xff] }
 0x16f   : > { %v2242_v49 = vpop.eup %2241  ;;  %2251 = vpow2.f32 %v3901_v37  ;;  %v1532_v56 = vsel %vm1404_vm10, %v4843_v59, 0.0  ;;  %v1204_v12 = vsel %vm325_vm0, %v2240_v34, 0.0  ;;  %v1276_v29 = vadd.s32 344, %v3547_v25 }
 0x170   : > { %v1199_v19 = vadd.f32 %v1198_v21, %v1197_v23  ;;  %v1693_v60 = vadd.f32 %v1692_v26, %v1691_v17  ;;  %vm1406_vm12 = vcmp.eq.s32.totalorder %v1274_v41, %v3605_v40  ;;  %v1696_v0 = vsel %vm325_vm0, %v1531_v58, 0.0  ;;  %v4847_v26 = vld [vmem:[#allocation83_spill] sm:$0xff] }
 0x171   : > { %v2244_v48 = vpop.eup %2243  ;;  %2253 = vpow2.f32 %v3911_v44  ;;  %v1533_v1 = vsel %vm1405_vm11, %v4844_v16, 0.0  ;;  %v1206_v37 = vsel %vm325_vm0, %v2242_v49, 0.0  ;;  %v1277_v51 = vadd.s32 352, %v3547_v25 }
 0x172   : > { %v1201_v5 = vadd.f32 %v1200_v36, %v1199_v19  ;;  %v1695_v55 = vadd.f32 %v1694_v22, %v1693_v60  ;;  %vm1407_vm13 = vcmp.eq.s32.totalorder %v1275_v8, %v3605_v40  ;;  %v1698_v24 = vsel %vm325_vm0, %v1532_v56, 0.0  ;;  %v4848_v8 = vld [vmem:[#allocation84_spill] sm:$0xff] }
 0x173   : > { %v2246_v31 = vpop.eup %2245  ;;  %2255 = vpow2.f32 %v3914_v54  ;;  %v1534_v32 = vsel %vm1406_vm12, %v4845_v11, 0.0  ;;  %v1208_v44 = vsel %vm325_vm0, %v2244_v48, 0.0  ;;  %v1278_v35 = vadd.s32 360, %v3547_v25 }
 0x174   : > { %v1203_v15 = vadd.f32 %v1202_v10, %v1201_v5  ;;  %v1697_v20 = vadd.f32 %v1696_v0, %v1695_v55  ;;  %vm1408_vm14 = vcmp.eq.s32.totalorder %v1276_v29, %v3605_v40  ;;  %v1700_v21 = vsel %vm325_vm0, %v1533_v1, 0.0 }
 0x175   : > { %v2248_v46 = vpop.eup %2247  ;;  %2257 = vpow2.f32 %v3924_v50  ;;  %v1535_v23 = vsel %vm1407_vm13, %v4846_v33, 0.0  ;;  %v1210_v54 = vsel %vm325_vm0, %v2246_v31, 0.0  ;;  %v1279_v52 = vadd.s32 368, %v3547_v25 }
 0x176   : > { %v1205_v4 = vadd.f32 %v1204_v12, %v1203_v15  ;;  %v1699_v30 = vadd.f32 %v1698_v24, %v1697_v20  ;;  %vm1409_vm15 = vcmp.eq.s32.totalorder %v1277_v51, %v3605_v40  ;;  %v1702_v61 = vsel %vm325_vm0, %v1534_v32, 0.0  ;;  %v4849_v12 = vld [vmem:[#allocation85_spill] sm:$0xff] }
 0x177   : > { %v2250_v36 = vpop.eup %2249  ;;  %2259 = vpow2.f32 %v3935_v9  ;;  %v1536_v34 = vsel %vm1408_vm14, %v4847_v26, 0.0  ;;  %v1212_v50 = vsel %vm325_vm0, %v2248_v46, 0.0  ;;  %v1280_v3 = vadd.s32 376, %v3547_v25 }
 0x178   : > { %v1207_v45 = vadd.f32 %v1206_v37, %v1205_v4  ;;  %v1701_v19 = vadd.f32 %v1700_v21, %v1699_v30  ;;  %vm1410_vm1 = vcmp.eq.s32.totalorder %v1278_v35, %v3605_v40  ;;  %v1704_v58 = vsel %vm325_vm0, %v1535_v23, 0.0  ;;  %v4850_v37 = vld [vmem:[#allocation86_spill] sm:$0xff] }
 0x179   : > { %v2252_v17 = vpop.eup %2251  ;;  %v1537_v22 = vsel %vm1409_vm15, %v4848_v8, 0.0  ;;  %v1214_v5 = vsel %vm325_vm0, %v2250_v36, 0.0  ;;  %v1281_v9 = vadd.s32 384, %v3547_v25  ;;  %vm1411_vm2 = vcmp.eq.s32.totalorder %v1279_v52, %v3605_v40 }
 0x17a   : > { %v1209_v41 = vadd.f32 %v1208_v44, %v1207_v45  ;;  %v1703_v49 = vadd.f32 %v1702_v61, %v1701_v19  ;;  %v1706_v59 = vsel %vm325_vm0, %v1536_v34, 0.0  ;;  %v1538_v29 = vsel %vm1410_vm1, %v4849_v12, 0.0  ;;  %v4851_v44 = vld [vmem:[#allocation87_spill] sm:$0xff]  ;;  %v4853_v19 = vld [vmem:[#allocation89_spill] sm:$0xff] }
 0x17b   : > { %v2254_v56 = vpop.eup %2253  ;;  %v1216_v48 = vsel %vm325_vm0, %v2252_v17, 0.0  ;;  %v1282_v15 = vadd.s32 392, %v3547_v25  ;;  %vm1412_vm3 = vcmp.eq.s32.totalorder %v1280_v3, %v3605_v40  ;;  %v1708_v16 = vsel %vm325_vm0, %v1537_v22, 0.0  ;;  %v4854_v22 = vld [vmem:[#allocation90_spill] sm:$0xff] }
 0x17c   : > { %v1211_v10 = vadd.f32 %v1210_v54, %v1209_v41  ;;  %v1705_v0 = vadd.f32 %v1704_v58, %v1703_v49  ;;  %v1539_v51 = vsel %vm1411_vm2, %v4850_v37, 0.0  ;;  %v1218_v31 = vsel %vm325_vm0, %v2254_v56, 0.0  ;;  %v4852_v54 = vld [vmem:[#allocation88_spill] sm:$0xff] }
 0x17d   : > { %v2256_v1 = vpop.eup %2255  ;;  %v1283_v4 = vadd.s32 400, %v3547_v25  ;;  %vm1413_vm4 = vcmp.eq.s32.totalorder %v1281_v9, %v3605_v40  ;;  %v1710_v11 = vsel %vm325_vm0, %v1538_v29, 0.0  ;;  %v1540_v35 = vsel %vm1412_vm3, %v4851_v44, 0.0 }
 0x17e   : > { %v1213_v60 = vadd.f32 %v1212_v50, %v1211_v10  ;;  %v1707_v24 = vadd.f32 %v1706_v59, %v1705_v0  ;;  %v1220_v46 = vsel %vm325_vm0, %v2256_v1, 0.0  ;;  %v1284_v45 = vadd.s32 408, %v3547_v25 }
 0x17f   : > { %v2258_v32 = vpop.eup %2257  ;;  %vm1414_vm5 = vcmp.eq.s32.totalorder %v1282_v15, %v3605_v40  ;;  %v1712_v33 = vsel %vm325_vm0, %v1539_v51, 0.0  ;;  %v1541_v52 = vsel %vm1413_vm4, %v4852_v54, 0.0  ;;  %v1285_v41 = vadd.s32 416, %v3547_v25  ;;  %v4856_v15 = vld [vmem:[#allocation92_spill] sm:$0xff]  ;;  %v4857_v51 = vld [vmem:[#allocation93_spill] sm:$0xff] }
 0x180   : > { %v1215_v55 = vadd.f32 %v1214_v5, %v1213_v60  ;;  %v1709_v21 = vadd.f32 %v1708_v16, %v1707_v24  ;;  %v1222_v36 = vsel %vm325_vm0, %v2258_v32, 0.0  ;;  %vm1415_vm6 = vcmp.eq.s32.totalorder %v1283_v4, %v3605_v40  ;;  %v4855_v60 = vld [vmem:[#allocation91_spill] sm:$0xff]  ;;  %v4858_v32 = vld [vmem:[#allocation94_spill] sm:$0xff]  ;;  %v4860_v54 = vld [vmem:[#allocation96_spill] sm:$0xff] }
 0x181   : > { %v2260_v23 = vpop.eup %2259  ;;  %v1714_v26 = vsel %vm325_vm0, %v1540_v35, 0.0  ;;  %v1542_v50 = vsel %vm1414_vm5, %v4853_v19, 0.0  ;;  %v1286_v17 = vadd.s32 424, %v3547_v25  ;;  %vm1416_vm7 = vcmp.eq.s32.totalorder %v1284_v45, %v3605_v40  ;;  %v4859_v45 = vld [vmem:[#allocation95_spill] sm:$0xff] }
 0x182   : > { %v1217_v20 = vadd.f32 %v1216_v48, %v1215_v55  ;;  %v1711_v61 = vadd.f32 %v1710_v11, %v1709_v21  ;;  %v1224_v58 = vsel %vm325_vm0, %v2260_v23, 0.0  ;;  %v1716_v10 = vsel %vm325_vm0, %v1541_v52, 0.0  ;;  %v4135_v21 = vld [vmem:[%s3578_s19] ss:$0 sm:$0xff] }
 0x183   : > { %v1543_v49 = vsel %vm1415_vm6, %v4854_v22, 0.0  ;;  %v1287_v9 = vadd.s32 432, %v3547_v25  ;;  %vm1417_vm8 = vcmp.eq.s32.totalorder %v1285_v41, %v3605_v40  ;;  %v1718_v59 = vsel %vm325_vm0, %v1542_v50, 0.0 }
 0x184   : > { %v1219_v30 = vadd.f32 %v1218_v31, %v1217_v20  ;;  %v1713_v3 = vadd.f32 %v1712_v33, %v1711_v61  ;;  %v1544_v12 = vsel %vm1416_vm7, %v4855_v60, 0.0  ;;  %v1288_v0 = vadd.s32 440, %v3547_v25 }
 0x185   : > { %vm1418_vm9 = vcmp.eq.s32.totalorder %v1286_v17, %v3605_v40  ;;  %v1720_v48 = vsel %vm325_vm0, %v1543_v49, 0.0  ;;  %v1545_v16 = vsel %vm1417_vm8, %v4856_v15, 0.0  ;;  %v1289_v55 = vadd.s32 448, %v3547_v25  ;;  %v4863_v49 = vld [vmem:[#allocation99_spill] sm:$0xff] }
 0x186   : > { %v1221_v34 = vadd.f32 %v1220_v46, %v1219_v30  ;;  %v1715_v5 = vadd.f32 %v1714_v26, %v1713_v3  ;;  %vm1419_vm10 = vcmp.eq.s32.totalorder %v1287_v9, %v3605_v40  ;;  %v1722_v37 = vsel %vm325_vm0, %v1544_v12, 0.0  ;;  %v4861_v26 = vld [vmem:[#allocation97_spill] sm:$0xff]  ;;  %v4864_v12 = vld [vmem:[#allocation100_spill] sm:$0xff] }
 0x187   : > { %v1546_v24 = vsel %vm1418_vm9, %v4857_v51, 0.0  ;;  %v1290_v4 = vadd.s32 456, %v3547_v25  ;;  %vm1420_vm11 = vcmp.eq.s32.totalorder %v1288_v0, %v3605_v40  ;;  %v1724_v11 = vsel %vm325_vm0, %v1545_v16, 0.0  ;;  %v4865_v16 = vld [vmem:[#allocation101_spill] sm:$0xff] }
 0x188   : > { %v1223_v8 = vadd.f32 %v1222_v36, %v1221_v34  ;;  %v1717_v29 = vadd.f32 %v1716_v10, %v1715_v5  ;;  %v1547_v20 = vsel %vm1419_vm10, %v4858_v32, 0.0  ;;  %v1291_v35 = vadd.s32 464, %v3547_v25 }
 0x189   : > { %vm1421_vm12 = vcmp.eq.s32.totalorder %v1289_v55, %v4135_v21  ;;  %v1726_v46 = vsel %vm325_vm0, %v1546_v24, 0.0  ;;  %v1548_v33 = vsel %vm1420_vm11, %v4859_v45, 0.0  ;;  %v1292_v30 = vadd.s32 472, %v3547_v25  ;;  %v4866_v24 = vld [vmem:[#allocation102_spill] sm:$0xff] }
 0x18a   : > { %v4118_v56 = vadd.f32 %v1224_v58, %v1223_v8  ;;  %v1719_v1 = vadd.f32 %v1718_v59, %v1717_v29  ;;  %vm1422_vm13 = vcmp.eq.s32.totalorder %v1290_v4, %v4135_v21  ;;  %v1728_v40 = vsel %vm325_vm0, %v1547_v20, 0.0  ;;  %v4862_v58 = vld [vmem:[#allocation98_spill] sm:$0xff]  ;;  %v4867_v20 = vld [vmem:[#allocation103_spill] sm:$0xff] }
 0x18b   : > { %v1549_v52 = vsel %vm1421_vm12, %v4860_v54, 0.0  ;;  %v1293_v36 = vadd.s32 480, %v3547_v25  ;;  %vm1423_vm14 = vcmp.eq.s32.totalorder %v1291_v35, %v4135_v21  ;;  %v1730_v41 = vsel %vm325_vm0, %v1548_v33, 0.0  ;;  %v4868_v33 = vld [vmem:[#allocation104_spill] sm:$0xff] }
 0x18c   : > { %v1721_v31 = vadd.f32 %v1720_v48, %v1719_v1  ;;  %v1550_v34 = vsel %vm1422_vm13, %v4861_v26, 0.0  ;;  %v1294_v50 = vadd.s32 488, %v3547_v25  ;;  %vm1424_vm15 = vcmp.eq.s32.totalorder %v1292_v30, %v4135_v21 }
 0x18d   : > { %v1732_v3 = vsel %vm325_vm0, %v1549_v52, 0.0  ;;  %v1551_v17 = vsel %vm1423_vm14, %v4862_v58, 0.0  ;;  %v1295_v8 = vadd.s32 496, %v3547_v25  ;;  %vm1425_vm1 = vcmp.eq.s32.totalorder %v1293_v36, %v4135_v21  ;;  %v4869_v52 = vld [vmem:[#allocation105_spill] sm:$0xff] }
 0x18e   : > { %v1723_v44 = vadd.f32 %v1722_v37, %v1721_v31  ;;  %v1734_v22 = vsel %vm325_vm0, %v1550_v34, 0.0  ;;  %v1552_v5 = vsel %vm1424_vm15, %v4863_v49, 0.0  ;;  %v1296_v59 = vadd.s32 504, %v3547_v25  ;;  %v4870_v34 = vld [vmem:[#allocation106_spill] sm:$0xff] }
 0x18f   : > { %vm1426_vm2 = vcmp.eq.s32.totalorder %v1294_v50, %v4135_v21  ;;  %v1736_v60 = vsel %vm325_vm0, %v1551_v17, 0.0  ;;  %v1553_v29 = vsel %vm1425_vm1, %v4864_v12, 0.0  ;;  %v1297_v48 = vadd.s32 512, %v3547_v25 }
 0x190   : > { %v1725_v23 = vadd.f32 %v1724_v11, %v1723_v44  ;;  %vm1427_vm3 = vcmp.eq.s32.totalorder %v1295_v8, %v4135_v21  ;;  %v1738_v15 = vsel %vm325_vm0, %v1552_v5, 0.0  ;;  %v1554_v1 = vsel %vm1426_vm2, %v4865_v16, 0.0 }
 0x191   : > { %v1298_v37 = vadd.s32 520, %v3547_v25  ;;  %vm1428_vm4 = vcmp.eq.s32.totalorder %v1296_v59, %v4135_v21  ;;  %v1740_v51 = vsel %vm325_vm0, %v1553_v29, 0.0  ;;  %v1555_v31 = vsel %vm1427_vm3, %v4866_v24, 0.0 }
 0x192   : > { %v1727_v61 = vadd.f32 %v1726_v46, %v1725_v23  ;;  %v1299_v11 = vadd.s32 528, %v3547_v25  ;;  %vm1429_vm5 = vcmp.eq.s32.totalorder %v1297_v48, %v4135_v21  ;;  %v1742_v32 = vsel %vm325_vm0, %v1554_v1, 0.0  ;;  %v4872_v48 = vld [vmem:[#allocation46_spill] sm:$0xff] }
 0x193   : > { %v1556_v44 = vsel %vm1428_vm4, %v4867_v20, 0.0  ;;  %v1300_v46 = vadd.s32 536, %v3547_v25  ;;  %vm1430_vm6 = vcmp.eq.s32.totalorder %v1298_v37, %v4135_v21  ;;  %v1744_v45 = vsel %vm325_vm0, %v1555_v31, 0.0 }
 0x194   : > { %v1729_v19 = vadd.f32 %v1728_v40, %v1727_v61  ;;  %v1557_v23 = vsel %vm1429_vm5, %v4868_v33, 0.0  ;;  %v1301_v40 = vadd.s32 544, %v3547_v25  ;;  %vm1431_vm7 = vcmp.eq.s32.totalorder %v1299_v11, %v4135_v21 }
 0x195   : > { %v1746_v54 = vsel %vm325_vm0, %v1556_v44, 0.0  ;;  %v1558_v61 = vsel %vm1430_vm6, %v4869_v52, 0.0  ;;  %vm1432_vm8 = vcmp.eq.s32.totalorder %v1300_v46, %v4135_v21  ;;  %v1748_v26 = vsel %vm325_vm0, %v1557_v23, 0.0 }
 0x196   : > { %v1731_v10 = vadd.f32 %v1730_v41, %v1729_v19  ;;  %v1302_v41 = vadd.s32 552, %v3547_v25  ;;  %v1559_v19 = vsel %vm1431_vm7, %v4870_v34, 0.0  ;;  %vm1433_vm9 = vcmp.eq.s32.totalorder %v1301_v40, %v4135_v21 }
 0x197   : > { %v1750_v58 = vsel %vm325_vm0, %v1558_v61, 0.0  ;;  %v1560_v17 = vsel %vm1432_vm8, %v3511_v2, 0.0  ;;  %v1304_v8 = vadd.s32 568, %v3547_v25  ;;  %v1561_v49 = vsel %vm1433_vm9, %v3517_v42, 0.0 }
 0x198   : > { %v1733_v9 = vadd.f32 %v1732_v3, %v1731_v10  ;;  %v1303_v3 = vadd.s32 560, %v3547_v25  ;;  %vm1434_vm10 = vcmp.eq.s32.totalorder %v1302_v41, %v4135_v21  ;;  %v1754_v59 = vsel %vm325_vm0, %v1560_v17, 0.0 }
 0x199   : > { %v1306_v2 = vadd.s32 584, %v3547_v25  ;;  %vm1436_vm12 = vcmp.eq.s32.totalorder %v1304_v8, %v4135_v21  ;;  %v1307_v42 = vadd.s32 592, %v3547_v25  ;;  %v1308_v24 = vadd.s32 600, %v3547_v25  ;;  %v4879_v8 = vld [vmem:[#allocation53_spill] sm:$0xff] }
 0x19a   : > { %v1735_v0 = vadd.f32 %v1734_v22, %v1733_v9  ;;  %v1752_v22 = vsel %vm325_vm0, %v1559_v19, 0.0  ;;  %v1305_v9 = vadd.s32 576, %v3547_v25  ;;  %vm1435_vm11 = vcmp.eq.s32.totalorder %v1303_v3, %v4135_v21 }
 0x19b   : > { %vm1438_vm14 = vcmp.eq.s32.totalorder %v1306_v2, %v4135_v21  ;;  %v1309_v20 = vadd.s32 608, %v3547_v25  ;;  %vm1439_vm15 = vcmp.eq.s32.totalorder %v1307_v42, %v4135_v21  ;;  %v1310_v33 = vadd.s32 616, %v3547_v25 }
 0x19c   : > { %v1737_v55 = vadd.f32 %v1736_v60, %v1735_v0  ;;  %v4871_v60 = vld [vmem:[#allocation107_spill] sm:$0xff]  ;;  %v1756_v0 = vsel %vm325_vm0, %v1561_v49, 0.0  ;;  %vm1437_vm13 = vcmp.eq.s32.totalorder %v1305_v9, %v4135_v21  ;;  %vm1440_vm1 = vcmp.eq.s32.totalorder %v1308_v24, %v4135_v21 }
 0x19d   : > { %v1562_v12 = vsel %vm1434_vm10, %v4871_v60, 0.0  ;;  %v1311_v52 = vadd.s32 624, %v3547_v25  ;;  %vm1441_vm2 = vcmp.eq.s32.totalorder %v1309_v20, %v4135_v21  ;;  %v1312_v34 = vadd.s32 632, %v3547_v25 }
 0x19e   : > { %v1739_v4 = vadd.f32 %v1738_v15, %v1737_v55  ;;  %v1563_v15 = vsel %vm1435_vm11, %v4872_v48, 0.0  ;;  %v1758_v1 = vsel %vm325_vm0, %v1562_v12, 0.0  ;;  %v4873_v55 = vld [vmem:[#allocation47_spill] sm:$0xff]  ;;  %vm1442_vm3 = vcmp.eq.s32.totalorder %v1310_v33, %v4135_v21 }
 0x19f   : > { %v1564_v37 = vsel %vm1436_vm12, %v4873_v55, 0.0  ;;  %v1760_v31 = vsel %vm325_vm0, %v1563_v15, 0.0  ;;  %v1313_v17 = vadd.s32 640, %v3547_v25  ;;  %vm1443_vm4 = vcmp.eq.s32.totalorder %v1311_v52, %v4135_v21 }
 0x1a0   : > { %v1741_v35 = vadd.f32 %v1740_v51, %v1739_v4  ;;  %v4874_v4 = vld [vmem:[#allocation48_spill] sm:$0xff]  ;;  %v1762_v44 = vsel %vm325_vm0, %v1564_v37, 0.0  ;;  %vm1444_vm5 = vcmp.eq.s32.totalorder %v1312_v34, %v4135_v21 }
 0x1a1   : > { %v1565_v11 = vsel %vm1437_vm13, %v4874_v4, 0.0  ;;  %vm1445_vm6 = vcmp.eq.s32.totalorder %v1313_v17, %v4135_v21 }
 0x1a2   : > { %v1743_v30 = vadd.f32 %v1742_v32, %v1741_v35  ;;  %v4875_v35 = vld [vmem:[#allocation49_spill] sm:$0xff]  ;;  %v1764_v23 = vsel %vm325_vm0, %v1565_v11, 0.0 }
 0x1a3   : > { %v1566_v46 = vsel %vm1438_vm14, %v4875_v35, 0.0 }
 0x1a4   : > { %v1745_v36 = vadd.f32 %v1744_v45, %v1743_v30  ;;  %v4876_v30 = vld [vmem:[#allocation50_spill] sm:$0xff]  ;;  %v1766_v61 = vsel %vm325_vm0, %v1566_v46, 0.0 }
 0x1a5   : > { %v1567_v40 = vsel %vm1439_vm15, %v4876_v30, 0.0 }
 0x1a6   : > { %v1747_v50 = vadd.f32 %v1746_v54, %v1745_v36  ;;  %v4877_v36 = vld [vmem:[#allocation51_spill] sm:$0xff]  ;;  %v1768_v19 = vsel %vm325_vm0, %v1567_v40, 0.0 }
 0x1a7   : > { %v1568_v41 = vsel %vm1440_vm1, %v4877_v36, 0.0 }
 0x1a8   : > { %v1749_v10 = vadd.f32 %v1748_v26, %v1747_v50  ;;  %v4878_v50 = vld [vmem:[#allocation52_spill] sm:$0xff] }
 0x1a9   : > { %v1569_v3 = vsel %vm1441_vm2, %v4878_v50, 0.0 }
 0x1aa   : > { %v1751_v5 = vadd.f32 %v1750_v58, %v1749_v10  ;;  %v1770_v10 = vsel %vm325_vm0, %v1568_v41, 0.0  ;;  %v1772_v9 = vsel %vm325_vm0, %v1569_v3, 0.0 }
 0x1ac   : > { %v1753_v29 = vadd.f32 %v1752_v22, %v1751_v5  ;;  %v1570_v22 = vsel %vm1442_vm3, %v4879_v8, 0.0  ;;  %v1314_v5 = vadd.s32 648, %v3547_v25 }
 0x1ad   : > { %v1774_v2 = vsel %vm325_vm0, %v1570_v22, 0.0 }
 0x1ae   : > { %v1755_v16 = vadd.f32 %v1754_v59, %v1753_v29  ;;  %v4880_v59 = vld [vmem:[#allocation54_spill] sm:$0xff]  ;;  %v1315_v29 = vadd.s32 656, %v3547_v25  ;;  %vm1446_vm7 = vcmp.eq.s32.totalorder %v1314_v5, %v4135_v21 }
 0x1af   : > { %v1571_v60 = vsel %vm1443_vm4, %v4880_v59, 0.0 }
 0x1b0   : > { %v1757_v51 = vadd.f32 %v1756_v0, %v1755_v16  ;;  %v4881_v0 = vld [vmem:[#allocation55_spill] sm:$0xff]  ;;  %v1316_v16 = vadd.s32 664, %v3547_v25  ;;  %v1776_v42 = vsel %vm325_vm0, %v1571_v60, 0.0  ;;  %vm1447_vm8 = vcmp.eq.s32.totalorder %v1315_v29, %v4135_v21 }
 0x1b1   : > { %v1572_v48 = vsel %vm1444_vm5, %v4881_v0, 0.0 }
 0x1b2   : > { %v1759_v32 = vadd.f32 %v1758_v1, %v1757_v51  ;;  %v4882_v1 = vld [vmem:[#allocation56_spill] sm:$0xff]  ;;  %v1317_v51 = vadd.s32 672, %v3547_v25  ;;  %v1778_v24 = vsel %vm325_vm0, %v1572_v48, 0.0  ;;  %vm1448_vm9 = vcmp.eq.s32.totalorder %v1316_v16, %v4135_v21 }
 0x1b3   : > { %v1573_v55 = vsel %vm1445_vm6, %v4882_v1, 0.0 }
 0x1b4   : > { %v1761_v45 = vadd.f32 %v1760_v31, %v1759_v32  ;;  %v4883_v31 = vld [vmem:[#allocation57_spill] sm:$0xff]  ;;  %v1318_v32 = vadd.s32 680, %v3547_v25  ;;  %v1780_v20 = vsel %vm325_vm0, %v1573_v55, 0.0  ;;  %vm1449_vm10 = vcmp.eq.s32.totalorder %v1317_v51, %v4135_v21 }
 0x1b5   : > { %v1574_v4 = vsel %vm1446_vm7, %v4883_v31, 0.0 }
 0x1b6   : > { %v1763_v54 = vadd.f32 %v1762_v44, %v1761_v45  ;;  %v4884_v44 = vld [vmem:[#allocation58_spill] sm:$0xff]  ;;  %v1319_v45 = vadd.s32 688, %v3547_v25  ;;  %v1782_v33 = vsel %vm325_vm0, %v1574_v4, 0.0  ;;  %vm1450_vm11 = vcmp.eq.s32.totalorder %v1318_v32, %v4135_v21 }
 0x1b7   : > { %v1575_v35 = vsel %vm1447_vm8, %v4884_v44, 0.0  ;;  %v1327_v4 = vadd.s32 752, %v3547_v25  ;;  %v1328_v44 = vadd.s32 760, %v3547_v25 }
 0x1b8   : > { %v1765_v26 = vadd.f32 %v1764_v23, %v1763_v54  ;;  %v4885_v23 = vld [vmem:[#allocation59_spill] sm:$0xff]  ;;  %v1320_v54 = vadd.s32 696, %v3547_v25  ;;  %v1784_v52 = vsel %vm325_vm0, %v1575_v35, 0.0  ;;  %vm1451_vm12 = vcmp.eq.s32.totalorder %v1319_v45, %v4135_v21 }
 0x1b9   : > { %v1576_v30 = vsel %vm1448_vm9, %v4885_v23, 0.0  ;;  %vm1459_vm5 = vcmp.eq.s32.totalorder %v1327_v4, %v4135_v21  ;;  %vm1460_vm6 = vcmp.eq.s32.totalorder %v1328_v44, %v4135_v21 }
 0x1ba   : > { %v1767_v58 = vadd.f32 %v1766_v61, %v1765_v26  ;;  %v4886_v61 = vld [vmem:[#allocation60_spill] sm:$0xff]  ;;  %v1321_v26 = vadd.s32 704, %v3547_v25  ;;  %v1786_v34 = vsel %vm325_vm0, %v1576_v30, 0.0  ;;  %vm1452_vm13 = vcmp.eq.s32.totalorder %v1320_v54, %v4135_v21 }
 0x1bb   : > { %v1577_v36 = vsel %vm1449_vm10, %v4886_v61, 0.0 }
 0x1bc   : > { %v1769_v49 = vadd.f32 %v1768_v19, %v1767_v58  ;;  %v4887_v19 = vld [vmem:[#allocation61_spill] sm:$0xff]  ;;  %v1322_v58 = vadd.s32 712, %v3547_v25  ;;  %v1788_v17 = vsel %vm325_vm0, %v1577_v36, 0.0  ;;  %vm1453_vm14 = vcmp.eq.s32.totalorder %v1321_v26, %v4135_v21  ;;  %v4893_v26 = vld [vmem:[#allocation67_spill] sm:$0xff] }
 0x1bd   : > { %v1578_v50 = vsel %vm1450_vm11, %v4887_v19, 0.0  ;;  %v1331_v36 = vadd.s32 784, %v3547_v25 }
 0x1be   : > { %v1771_v12 = vadd.f32 %v1770_v10, %v1769_v49  ;;  %v4888_v10 = vld [vmem:[#allocation62_spill] sm:$0xff]  ;;  %v1323_v49 = vadd.s32 720, %v3547_v25  ;;  %v1790_v5 = vsel %vm325_vm0, %v1578_v50, 0.0  ;;  %vm1454_vm15 = vcmp.eq.s32.totalorder %v1322_v58, %v4135_v21 }
 0x1bf   : > { %v1579_v8 = vsel %vm1451_vm12, %v4888_v10, 0.0  ;;  %vm1463_vm9 = vcmp.eq.s32.totalorder %v1331_v36, %v4135_v21 }
 0x1c0   : > { %v1773_v15 = vadd.f32 %v1772_v9, %v1771_v12  ;;  %v4889_v9 = vld [vmem:[#allocation63_spill] sm:$0xff]  ;;  %v1324_v12 = vadd.s32 728, %v3547_v25  ;;  %v1792_v29 = vsel %vm325_vm0, %v1579_v8, 0.0  ;;  %vm1455_vm1 = vcmp.eq.s32.totalorder %v1323_v49, %v4135_v21 }
 0x1c1   : > { %v1580_v59 = vsel %vm1452_vm13, %v4889_v9, 0.0 }
 0x1c2   : > { %v1775_v37 = vadd.f32 %v1774_v2, %v1773_v15  ;;  %v4890_v2 = vld [vmem:[#allocation64_spill] sm:$0xff]  ;;  %v1325_v15 = vadd.s32 736, %v3547_v25  ;;  %v1794_v16 = vsel %vm325_vm0, %v1580_v59, 0.0  ;;  %vm1456_vm2 = vcmp.eq.s32.totalorder %v1324_v12, %v4135_v21 }
 0x1c3   : > { %v1581_v0 = vsel %vm1453_vm14, %v4890_v2, 0.0  ;;  %v1584_v32 = vsel %vm1456_vm2, %v2973_v13, 0.0  ;;  %v1330_v13 = vadd.s32 776, %v3547_v25 }
 0x1c4   : > { %v1777_v11 = vadd.f32 %v1776_v42, %v1775_v37  ;;  %v4891_v42 = vld [vmem:[#allocation65_spill] sm:$0xff]  ;;  %v1326_v37 = vadd.s32 744, %v3547_v25  ;;  %v1796_v51 = vsel %vm325_vm0, %v1581_v0, 0.0  ;;  %vm1457_vm3 = vcmp.eq.s32.totalorder %v1325_v15, %v4135_v21 }
 0x1c5   : > { %v1582_v1 = vsel %vm1454_vm15, %v4891_v42, 0.0  ;;  %v1802_v23 = vsel %vm325_vm0, %v1584_v32, 0.0  ;;  %vm1462_vm8 = vcmp.eq.s32.totalorder %v1330_v13, %v4135_v21 }
 0x1c6   : > { %v1779_v46 = vadd.f32 %v1778_v24, %v1777_v11  ;;  %v1583_v24 = vsel %vm1455_vm1, %v2969_v57, 0.0  ;;  %v1798_v11 = vsel %vm325_vm0, %v1582_v1, 0.0  ;;  %vm1458_vm4 = vcmp.eq.s32.totalorder %v1326_v37, %v4135_v21 }
 0x1c7   : > { %v1800_v35 = vsel %vm325_vm0, %v1583_v24, 0.0  ;;  %v1329_v57 = vadd.s32 768, %v3547_v25  ;;  %v1586_v30 = vsel %vm1458_vm4, %v2981_v27, 0.0  ;;  %v1332_v27 = vadd.s32 792, %v3547_v25 }
 0x1c8   : > { %v1781_v40 = vadd.f32 %v1780_v20, %v1779_v46  ;;  %v4892_v46 = vld [vmem:[#allocation66_spill] sm:$0xff]  ;;  %v1590_v10 = vsel %vm1462_vm8, %v2997_v6, 0.0  ;;  %v1336_v6 = vadd.s32 824, %v3547_v25 }
 0x1c9   : > { %v1585_v45 = vsel %vm1457_vm3, %v4892_v46, 0.0  ;;  %vm1461_vm7 = vcmp.eq.s32.totalorder %v1329_v57, %v4135_v21  ;;  %vm1464_vm10 = vcmp.eq.s32.totalorder %v1332_v27, %v4135_v21  ;;  %v1814_v59 = vsel %vm325_vm0, %v1590_v10, 0.0 }
 0x1ca   : > { %v1783_v41 = vadd.f32 %v1782_v33, %v1781_v40  ;;  %v1804_v54 = vsel %vm325_vm0, %v1585_v45, 0.0  ;;  %vm1468_vm14 = vcmp.eq.s32.totalorder %v1336_v6, %v4135_v21  ;;  %v4895_v45 = vld [vmem:[#allocation70_spill] sm:$0xff] }
 0x1cc   : > { %v1785_v3 = vadd.f32 %v1784_v52, %v1783_v41  ;;  %v1587_v52 = vsel %vm1459_vm5, %v2985_v28, 0.0  ;;  %v1806_v41 = vsel %vm325_vm0, %v1586_v30, 0.0  ;;  %v1333_v28 = vadd.s32 800, %v3547_v25  ;;  %v4896_v30 = vld [vmem:[#allocation71_spill] sm:$0xff] }
 0x1cd   : > { %v1808_v50 = vsel %vm325_vm0, %v1587_v52, 0.0 }
 0x1ce   : > { %v1787_v22 = vadd.f32 %v1786_v34, %v1785_v3  ;;  %v1588_v34 = vsel %vm1460_vm6, %v4893_v26, 0.0  ;;  %v1589_v3 = vsel %vm1461_vm7, %v2993_v47, 0.0  ;;  %v1335_v47 = vadd.s32 816, %v3547_v25 }
 0x1cf   : > { %v1812_v49 = vsel %vm325_vm0, %v1589_v3, 0.0  ;;  %vm1465_vm11 = vcmp.eq.s32.totalorder %v1333_v28, %v4135_v21  ;;  %v1345_v26 = vadd.s32 896, %v3547_v25  ;;  %v1346_v3 = vadd.s32 904, %v3547_v25  ;;  %v4899_v28 = vld [vmem:[#allocation30_spill] sm:$0xff] }
 0x1d0   : > { %v1789_v60 = vadd.f32 %v1788_v17, %v1787_v22  ;;  %v1810_v17 = vsel %vm325_vm0, %v1588_v34, 0.0  ;;  %v1334_v22 = vadd.s32 808, %v3547_v25  ;;  %v1593_v2 = vsel %vm1465_vm11, %v3009_v39, 0.0 }
 0x1d1   : > { %vm1467_vm13 = vcmp.eq.s32.totalorder %v1335_v47, %v4135_v21  ;;  %v1820_v42 = vsel %vm325_vm0, %v1593_v2, 0.0  ;;  %v1339_v39 = vadd.s32 848, %v3547_v25  ;;  %vm1477_vm8 = vcmp.eq.s32.totalorder %v1345_v26, %v4135_v21  ;;  %v4909_v26 = vld [vmem:[#allocation40_spill] sm:$0xff] }
 0x1d2   : > { %v1791_v48 = vadd.f32 %v1790_v5, %v1789_v60  ;;  %v1591_v5 = vsel %vm1463_vm9, %v3001_v7, 0.0  ;;  %v1592_v60 = vsel %vm1464_vm10, %v3005_v38, 0.0  ;;  %vm1466_vm12 = vcmp.eq.s32.totalorder %v1334_v22, %v4135_v21 }
 0x1d3   : > { %v1337_v7 = vadd.s32 832, %v3547_v25  ;;  %v1594_v15 = vsel %vm1466_vm12, %v3013_v62, 0.0  ;;  %v1338_v38 = vadd.s32 840, %v3547_v25  ;;  %v1595_v1 = vsel %vm1467_vm13, %v3017_v63, 0.0 }
 0x1d4   : > { %v1793_v55 = vadd.f32 %v1792_v29, %v1791_v48  ;;  %v1816_v29 = vsel %vm325_vm0, %v1591_v5, 0.0  ;;  %v1818_v48 = vsel %vm325_vm0, %v1592_v60, 0.0  ;;  %v1822_v37 = vsel %vm325_vm0, %v1594_v15, 0.0  ;;  %v4901_v60 = vld [vmem:[#allocation32_spill] sm:$0xff] }
 0x1d5   : > { %vm1469_vm15 = vcmp.eq.s32.totalorder %v1337_v7, %v4135_v21  ;;  %v1340_v62 = vadd.s32 856, %v3547_v25  ;;  %vm1470_vm1 = vcmp.eq.s32.totalorder %v1338_v38, %v4135_v21  ;;  %v1341_v63 = vadd.s32 864, %v3547_v25  ;;  %v4903_v38 = vld [vmem:[#allocation34_spill] sm:$0xff] }
 0x1d6   : > { %v1795_v31 = vadd.f32 %v1794_v16, %v1793_v55  ;;  %v1597_v4 = vsel %vm1469_vm15, %v4789_v43, 0.0  ;;  %vm1471_vm2 = vcmp.eq.s32.totalorder %v1339_v39, %v4135_v21  ;;  %v1343_v43 = vadd.s32 880, %v3547_v25 }
 0x1d7   : > { %vm1472_vm3 = vcmp.eq.s32.totalorder %v1340_v62, %v4135_v21  ;;  %v1828_v46 = vsel %vm325_vm0, %v1597_v4, 0.0  ;;  %vm1473_vm4 = vcmp.eq.s32.totalorder %v1341_v63, %v4135_v21  ;;  %v1348_v47 = vadd.s32 920, %v3547_v25  ;;  %v4905_v4 = vld [vmem:[#allocation36_spill] sm:$0xff] }
 0x1d8   : > { %v1797_v20 = vadd.f32 %v1796_v51, %v1795_v31  ;;  %v1596_v51 = vsel %vm1468_vm14, %v3021_v18, 0.0  ;;  %v1824_v31 = vsel %vm325_vm0, %v1595_v1, 0.0  ;;  %v1342_v18 = vadd.s32 872, %v3547_v25 }
 0x1d9   : > { %v1826_v32 = vsel %vm325_vm0, %v1596_v51, 0.0  ;;  %vm1475_vm6 = vcmp.eq.s32.totalorder %v1343_v43, %v4135_v21  ;;  %vm1478_vm9 = vcmp.eq.s32.totalorder %v1346_v3, %v4135_v21  ;;  %v1350_v15 = vadd.s32 936, %v3547_v25  ;;  %v4910_v3 = vld [vmem:[#allocation41_spill] sm:$0xff] }
 0x1da   : > { %v1799_v33 = vadd.f32 %v1798_v11, %v1797_v20  ;;  %v4894_v20 = vld [vmem:[#allocation69_spill] sm:$0xff]  ;;  %vm1474_vm5 = vcmp.eq.s32.totalorder %v1342_v18, %v4135_v21  ;;  %vm1480_vm11 = vcmp.eq.s32.totalorder %v1348_v47, %v4135_v21  ;;  %v1352_v62 = vadd.s32 952, %v3547_v25 }
 0x1db   : > { %v1598_v44 = vsel %vm1470_vm1, %v4894_v20, 0.0  ;;  %vm1482_vm13 = vcmp.eq.s32.totalorder %v1350_v15, %v4135_v21  ;;  %v1353_v20 = vadd.s32 960, %v3547_v25  ;;  %v4913_v15 = vld [vmem:[#allocation74_spill] sm:$0xff] }
 0x1dc   : > { %v1801_v40 = vadd.f32 %v1800_v35, %v1799_v33  ;;  %v1599_v33 = vsel %vm1471_vm2, %v4895_v45, 0.0  ;;  %v1354_v45 = vadd.s32 968, %v3547_v25  ;;  %vm1484_vm15 = vcmp.eq.s32.totalorder %v1352_v62, %v4135_v21 }
 0x1dd   : > { %v1832_v52 = vsel %vm325_vm0, %v1599_v33, 0.0  ;;  %vm1485_vm1 = vcmp.eq.s32.totalorder %v1353_v20, %v4135_v21 }
 0x1de   : > { %v1803_v61 = vadd.f32 %v1802_v23, %v1801_v40  ;;  %v1830_v23 = vsel %vm325_vm0, %v1598_v44, 0.0  ;;  %v1600_v40 = vsel %vm1472_vm3, %v4896_v30, 0.0  ;;  %vm1486_vm2 = vcmp.eq.s32.totalorder %v1354_v45, %v4135_v21 }
 0x1df   : > { %v1834_v34 = vsel %vm325_vm0, %v1600_v40, 0.0  ;;  %v1355_v40 = vadd.s32 976, %v3547_v25 }
 0x1e0   : > { %v1805_v19 = vadd.f32 %v1804_v54, %v1803_v61  ;;  %v1344_v54 = vadd.s32 888, %v3547_v25  ;;  %v4897_v61 = vld [vmem:[#allocation72_spill] sm:$0xff] }
 0x1e1   : > { %v1601_v36 = vsel %vm1473_vm4, %v4897_v61, 0.0  ;;  %vm1487_vm3 = vcmp.eq.s32.totalorder %v1355_v40, %v4135_v21 }
 0x1e2   : > { %v1807_v58 = vadd.f32 %v1806_v41, %v1805_v19  ;;  %v4898_v19 = vld [vmem:[#allocation73_spill] sm:$0xff]  ;;  %vm1476_vm7 = vcmp.eq.s32.totalorder %v1344_v54, %v4135_v21  ;;  %v4908_v54 = vld [vmem:[#allocation39_spill] sm:$0xff] }
 0x1e3   : > { %v1602_v27 = vsel %vm1474_vm5, %v4898_v19, 0.0 }
 0x1e4   : > { %v1809_v8 = vadd.f32 %v1808_v50, %v1807_v58  ;;  %v1836_v58 = vsel %vm325_vm0, %v1601_v36, 0.0  ;;  %v1838_v22 = vsel %vm325_vm0, %v1602_v27, 0.0  ;;  %v1356_v36 = vadd.s32 984, %v3547_v25 }
 0x1e6   : > { %v1811_v9 = vadd.f32 %v1810_v17, %v1809_v8  ;;  %v1603_v17 = vsel %vm1475_vm6, %v4899_v28, 0.0  ;;  %v1347_v8 = vadd.s32 912, %v3547_v25  ;;  %vm1488_vm4 = vcmp.eq.s32.totalorder %v1356_v36, %v4135_v21 }
 0x1e8   : > { %v1813_v12 = vadd.f32 %v1812_v49, %v1811_v9  ;;  %v4900_v49 = vld [vmem:[#allocation31_spill] sm:$0xff]  ;;  %vm1479_vm10 = vcmp.eq.s32.totalorder %v1347_v8, %v4135_v21  ;;  %v4911_v8 = vld [vmem:[#allocation42_spill] sm:$0xff] }
 0x1e9   : > { %v1604_v5 = vsel %vm1476_vm7, %v4900_v49, 0.0 }
 0x1ea   : > { %v1815_v0 = vadd.f32 %v1814_v59, %v1813_v12  ;;  %v1840_v59 = vsel %vm325_vm0, %v1603_v17, 0.0  ;;  %v1605_v12 = vsel %vm1477_vm8, %v4901_v60, 0.0  ;;  %v1842_v2 = vsel %vm325_vm0, %v1604_v5, 0.0 }
 0x1eb   : > { %v1358_v17 = vadd.s32 1000, %v3547_v25 }
 0x1ec   : > { %v1817_v16 = vadd.f32 %v1816_v29, %v1815_v0  ;;  %v1349_v29 = vadd.s32 928, %v3547_v25  ;;  %v4902_v0 = vld [vmem:[#allocation33_spill] sm:$0xff] }
 0x1ed   : > { %v1606_v7 = vsel %vm1478_vm9, %v4902_v0, 0.0  ;;  %vm1490_vm6 = vcmp.eq.s32.totalorder %v1358_v17, %v4135_v21  ;;  %vm1885_vm9 = vcmask 57344  }
 0x1ee   : > { %v1819_v55 = vadd.f32 %v1818_v48, %v1817_v16  ;;  %v1844_v16 = vsel %vm325_vm0, %v1605_v12, 0.0  ;;  %vm1481_vm12 = vcmp.eq.s32.totalorder %v1349_v29, %v4135_v21  ;;  %v1846_v39 = vsel %vm325_vm0, %v1606_v7, 0.0 }
 0x1f0   : > { %v1821_v24 = vadd.f32 %v1820_v42, %v1819_v55  ;;  %v1607_v42 = vsel %vm1479_vm10, %v4903_v38, 0.0  ;;  %v1351_v55 = vadd.s32 944, %v3547_v25 }
 0x1f2   : > { %v1823_v11 = vadd.f32 %v1822_v37, %v1821_v24  ;;  %v4904_v37 = vld [vmem:[#allocation35_spill] sm:$0xff]  ;;  %vm1483_vm14 = vcmp.eq.s32.totalorder %v1351_v55, %v4135_v21 }
 0x1f3   : > { %v1608_v51 = vsel %vm1480_vm11, %v4904_v37, 0.0 }
 0x1f4   : > { %v1825_v35 = vadd.f32 %v1824_v31, %v1823_v11  ;;  %v1848_v31 = vsel %vm325_vm0, %v1607_v42, 0.0  ;;  %v1609_v11 = vsel %vm1481_vm12, %v4905_v4, 0.0  ;;  %v1850_v44 = vsel %vm325_vm0, %v1608_v51, 0.0 }
 0x1f5   : > { %v1852_v33 = vsel %vm325_vm0, %v1609_v11, 0.0 }
 0x1f6   : > { %v1827_v57 = vadd.f32 %v1826_v32, %v1825_v35  ;;  %v1226_v32 = vrot.slane %v4118_v56, 4  ;;  %v4906_v35 = vld [vmem:[#allocation37_spill] sm:$0xff] }
 0x1f7   : > { %v1610_v18 = vsel %vm1482_vm13, %v4906_v35, 0.0 }
 0x1f8   : > { %v1829_v13 = vadd.f32 %v1828_v46, %v1827_v57  ;;  %v4907_v57 = vld [vmem:[#allocation38_spill] sm:$0xff]  ;;  %v1227_v30 = vadd.f32 %v1226_v32, %v4118_v56  ;;  %v1357_v56 = vadd.s32 992, %v3547_v25 }
 0x1f9   : > { %v1611_v43 = vsel %vm1483_vm14, %v4907_v57, 0.0 }
 0x1fa   : > { %v1831_v41 = vadd.f32 %v1830_v23, %v1829_v13  ;;  %v1854_v13 = vsel %vm325_vm0, %v1610_v18, 0.0  ;;  %v1228_v27 = vrot.slane %v1227_v30, 2  ;;  %vm1489_vm5 = vcmp.eq.s32.totalorder %v1357_v56, %v4135_v21 }
 0x1fc   : > { %v1833_v50 = vadd.f32 %v1832_v52, %v1831_v41  ;;  %v1612_v52 = vsel %vm1484_vm15, %v4908_v54, 0.0  ;;  %v1856_v41 = vsel %vm325_vm0, %v1611_v43, 0.0  ;;  %v1229_v5 = vadd.f32 %v1228_v27, %v1227_v30 }
 0x1fe   : > { %v1835_v10 = vadd.f32 %v1834_v34, %v1833_v50  ;;  %v1613_v34 = vsel %vm1485_vm1, %v4909_v26, 0.0  ;;  %v1858_v50 = vsel %vm325_vm0, %v1612_v52, 0.0  ;;  %v1230_v7 = vrot.slane %v1229_v5, 1 }
 0x200   : > { %v1837_v9 = vadd.f32 %v1836_v58, %v1835_v10  ;;  %v1614_v58 = vsel %vm1486_vm2, %v4910_v3, 0.0  ;;  %v1860_v10 = vsel %vm325_vm0, %v1613_v34, 0.0 }
 0x201   : > { %v1862_v47 = vsel %vm325_vm0, %v1614_v58, 0.0 }
 0x202   : > { %v1839_v6 = vadd.f32 %v1838_v22, %v1837_v9  ;;  %v1615_v22 = vsel %vm1487_vm3, %v4911_v8, 0.0  ;;  %v1359_v9 = vadd.s32 1008, %v3547_v25 }
 0x203   : > { %v1864_v29 = vsel %vm325_vm0, %v1615_v22, 0.0 }
 0x204   : > { %v1841_v48 = vadd.f32 %v1840_v59, %v1839_v6  ;;  %v4912_v59 = vld [vmem:[#allocation43_spill] sm:$0xff]  ;;  %v1360_v6 = vadd.s32 1016, %v3547_v25  ;;  %vm1491_vm7 = vcmp.eq.s32.totalorder %v1359_v9, %v4135_v21  ;;  %v4914_v25 = vld [vmem:[#allocation45_spill] sm:$0xff] }
 0x205   : > { %v1616_v60 = vsel %vm1488_vm4, %v4912_v59, 0.0 }
 0x206   : > { %v1843_v1 = vadd.f32 %v1842_v2, %v1841_v48  ;;  %v1617_v2 = vsel %vm1489_vm5, %v4819_v14, 0.0  ;;  %v1866_v48 = vsel %vm325_vm0, %v1616_v60, 0.0  ;;  %vm1492_vm8 = vcmp.eq.s32.totalorder %v1360_v6, %v4135_v21 }
 0x207   : > { %v1868_v42 = vsel %vm325_vm0, %v1617_v2, 0.0  ;;  %v1620_v14 = vsel %vm1492_vm8, %v4824_v53, 0.0 }
 0x208   : > { %v1845_v24 = vadd.f32 %v1844_v16, %v1843_v1  ;;  %v1618_v16 = vsel %vm1490_vm6, %v4913_v15, 0.0  ;;  %v1619_v1 = vsel %vm1491_vm7, %v4914_v25, 0.0 }
 0x209   : > { %v1870_v37 = vsel %vm325_vm0, %v1618_v16, 0.0 }
 0x20a   : > { %v1847_v63 = vadd.f32 %v1846_v39, %v1845_v24  ;;  %v1231_v39 = vadd.f32 %v1230_v7, %v1229_v5  ;;  %v1872_v24 = vsel %vm325_vm0, %v1619_v1, 0.0 }
 0x20c   : > { %v1849_v46 = vadd.f32 %v1848_v31, %v1847_v63  ;;  %v1874_v31 = vsel %vm325_vm0, %v1620_v14, 0.0  ;;  %2261 = vlog2.f32 %v1231_v39 }
 0x20e   : > { %v1851_v23 = vadd.f32 %v1850_v44, %v1849_v46 }
 0x210   : > { %v1853_v61 = vadd.f32 %v1852_v33, %v1851_v23 }
 0x212   : > { %v1855_v19 = vadd.f32 %v1854_v13, %v1853_v61 }
 0x214   : > { %v1857_v28 = vadd.f32 %v1856_v41, %v1855_v19 }
 0x216   : > { %v1859_v49 = vadd.f32 %v1858_v50, %v1857_v28  ;;  %v2262_v20 = vpop.eup %2261 }
 0x217   : > { %v1883_v18 = vmul.f32 0.6931472, %v2262_v20 }
 0x218   : > { %v1861_v12 = vadd.f32 %v1860_v10, %v1859_v49 }
 0x21a   : > { %v1863_v0 = vadd.f32 %v1862_v47, %v1861_v12 }
 0x21c   : > { %v1865_v38 = vadd.f32 %v1864_v29, %v1863_v0 }
 0x21e   : > { %v1867_v55 = vadd.f32 %v1866_v48, %v1865_v38 }
 0x220   : > { %v1869_v51 = vadd.f32 %v1868_v42, %v1867_v55 }
 0x222   : > { %v1871_v62 = vadd.f32 %v1870_v37, %v1869_v51 }
 0x224   : > { %v1873_v4 = vadd.f32 %v1872_v24, %v1871_v62 }
 0x226   : > { %v1875_v21 = vadd.f32 %v1874_v31, %v1873_v4 }
 0x228   : > { %v1876_v11 = vrot.slane %v1875_v21, 4 }
 0x22a   : > { %v1877_v63 = vadd.f32 %v1876_v11, %v1875_v21 }
 0x22c   : > { %v1878_v32 = vrot.slane %v1877_v63, 2 }
 0x22e   : > { %v1879_v44 = vadd.f32 %v1878_v32, %v1877_v63 }
 0x230   : > { %v1880_v35 = vrot.slane %v1879_v44, 1 }
 0x232   : > { %v1881_v46 = vadd.f32 %v1880_v35, %v1879_v44 }
 0x234   : > { %v1884_v53 = vsub.f32 %v1883_v18, %v1881_v46 }
 0x236   : > { %1886 = vst.msk [vmem:[%s195_s22] sm:$0x1] %vm1885_vm9, %v1884_v53 }
 0x237 PF: > { %s12_s11 = sadd.s32 1, %s2328_s11   ;;  %s4915_s9 = smov %s2324_s10 }
 0x238   : > { %p9_p5 = scmp.ge.s32.totalorder %s12_s11, 4   ;;  %s4916_s10 = smov %s4918_s12 }
 0x23a   :  { %11 = sbr.rel (!%p9_p5) target bundleno = 2 (0x2), region = 61 }

</bundles_post_ra>
